<compile_context>
chip_gen: v7x
topology: tpu7x:2x2x1
jax: 0.10.0
libtpu: 0.0.40
codegen_flags: <defaults>
</compile_context>

<pallas_src>
import jax
import jax.numpy as jnp
from jax import lax
from jax.experimental import pallas as pl
from jax.experimental.pallas import tpu as pltpu

NEURON_CDECAY = 0.5          # 1/2
NEURON_VDECAY = 0.75         # 3/4
VTH_TEMPORAL_INIT = 0.5      # NEURON_VTH_*_temporal initial fill value


def _round_up(x, m):
    return ((x + m - 1) // m) * m


def build_spike_mlp(in_pop_dim, hidden_sizes, out_pop_dim, spike_ts, batch_size):
    """Returns (forward, prepare_params).

    forward(spikes_BDT, prepared_params) -> (batch, out_pop_dim) spike rates.
    prepare_params(params) pads/casts weights ONCE (call outside the hot path).
    """
    hidden_sizes = tuple(hidden_sizes)
    n_hidden = len(hidden_sizes)
    # NEURON_VTH_2_temporal is a single global shared by hidden layers >= 1 in the
    # reference, so those layers must all have the same width.
    if n_hidden > 1:
        assert all(h == hidden_sizes[1] for h in hidden_sizes[1:])
    n_layers = n_hidden + 1

    dims_real = [in_pop_dim] + list(hidden_sizes) + [out_pop_dim]
    b_pad = _round_up(max(batch_size, 8), 8)            # f32 sublane alignment
    dims_pad = [_round_up(d, 128) for d in dims_real]   # lane alignment
    rows_valid = spike_ts * b_pad
    rows_pad = _round_up(rows_valid, 16)                # bf16 sublane alignment of slab
    inv_ts = 1.0 / float(spike_ts)

    def kernel(spikes_ref, *refs):
        param_refs = refs[:2 * n_layers]        # w0, b0, w1, b1, ..., w_out, b_out
        out_ref = refs[2 * n_layers]
        syn0_ref = refs[2 * n_layers + 1]       # VMEM scratch (rows_pad, H1_pad) f32

        # --- validity masks (hoisted, deduped).  Padded weight rows/cols are zero so
        # padded lanes never feed the matmuls; masks only guard the GLOBAL mean/max/min
        # homeostasis statistics. ---
        row_valid = None
        if batch_size != b_pad:
            row_valid = lax.broadcasted_iota(jnp.int32, (b_pad, 1), 0) < batch_size

        def layer_mask(width_real, width_pad):
            if width_real == width_pad:
                return row_valid                                   # (b_pad,1) or None
            col_valid = lax.broadcasted_iota(jnp.int32, (1, width_pad), 1) < width_real
            if row_valid is None:
                return col_valid
            return jnp.logical_and(row_valid, col_valid)           # (b_pad, width_pad)

        masks = [layer_mask(dims_real[l + 1], dims_pad[l + 1]) for l in range(n_layers)]
        inv_counts = [1.0 / float(batch_size * dims_real[l + 1]) for l in range(n_layers)]

        def masked_stats(x, mask, inv_count):
            if mask is None:
                return jnp.sum(x) * inv_count, jnp.max(x), jnp.min(x)
            mean = jnp.sum(jnp.where(mask, x, 0.0)) * inv_count
            mx = jnp.max(jnp.where(mask, x, -jnp.inf))
            mn = jnp.min(jnp.where(mask, x, jnp.inf))
            return mean, mx, mn

        # --- bias loads / broadcasts hoisted out of the time loop (layers >= 1 only;
        # layer 0's bias is applied once inside the folded matmul below). ---
        biases = [None] * n_layers
        for l in range(1, n_layers):
            biases[l] = jnp.broadcast_to(param_refs[2 * l + 1][...],
                                         (b_pad, dims_pad[l + 1]))

        # --- time-folded layer-0 synaptic input: one big MXU matmul, parked in VMEM ---
        syn0_ref[...] = jnp.dot(spikes_ref[...], param_refs[0][...],
                                preferred_element_type=jnp.float32) + param_refs[1][...]

        def lif_step(syn, state, temp, mask, inv_count):
            """neuron_model_dth / dth2 / dth3 + temporal-threshold homeostasis."""
            cur_prev, volt_prev, spk_prev = state
            cur = cur_prev * NEURON_CDECAY + syn
            volt = volt_prev * NEURON_VDECAY * (1.0 - spk_prev) + cur

            # NEURON_VTH = 0.5 * temporal + 0.5 * (exp((volt_prev - volt)/3) - 1)
            energy = jnp.exp((volt_prev - volt) * (1.0 / 3.0)) - 1.0
            vth = 0.5 * temp + 0.5 * energy
            spk = (volt > vth).astype(jnp.float32)   # strict > (PseudoSpikeRect .gt)

            # temporal threshold update (GLOBAL mean/max/min over the valid region)
            v_mean, v_max, v_min = masked_stats(volt, mask, inv_count)
            t_mean, t_max, t_min = masked_stats(vth, mask, inv_count)
            v_m = v_mean - 0.2 * (v_max - v_min)
            v_theta = t_mean - 0.2 * (t_max - t_min)
            z = (volt - v_m) * (1.0 / 6.0)
            # stable softplus == log(1 + exp(z)) in the non-overflow regime
            softplus = jnp.maximum(z, 0.0) + jnp.log(1.0 + jnp.exp(-jnp.abs(z)))
            new_temp = 0.01 * (volt - v_m) + v_theta + softplus
            return (cur, volt, spk), new_temp

        # --- initial state: register-resident values, no per-step VMEM traffic ---
        def zeros3(width):
            z = jnp.zeros((b_pad, width), jnp.float32)
            return (z, z, z)

        states = [zeros3(dims_pad[l + 1]) for l in range(n_layers)]
        temps = [jnp.full((b_pad, dims_pad[1]), VTH_TEMPORAL_INIT, jnp.float32)]
        if n_hidden > 1:
            temps.append(jnp.full((b_pad, dims_pad[2]), VTH_TEMPORAL_INIT, jnp.float32))
        temps.append(jnp.full((b_pad, dims_pad[-1]), VTH_TEMPORAL_INIT, jnp.float32))
        acc = jnp.zeros((b_pad, dims_pad[-1]), jnp.float32)

        # --- fully unrolled temporal recurrence (spike_ts is static & small) ---
        for t in range(spike_ts):
            syn0 = syn0_ref[t * b_pad:(t + 1) * b_pad, :]   # static VMEM slice
            states[0], temps[0] = lif_step(syn0, states[0], temps[0],
                                           masks[0], inv_counts[0])
            spk = states[0][2]
            for layer in range(1, n_hidden):
                syn = jnp.dot(spk.astype(jnp.bfloat16), param_refs[2 * layer][...],
                              preferred_element_type=jnp.float32) + biases[layer]
                states[layer], temps[1] = lif_step(syn, states[layer], temps[1],
                                                   masks[layer], inv_counts[layer])
                spk = states[layer][2]
            syn = jnp.dot(spk.astype(jnp.bfloat16), param_refs[2 * n_hidden][...],
                          preferred_element_type=jnp.float32) + biases[n_hidden]
            states[n_hidden], temps[-1] = lif_step(syn, states[n_hidden], temps[-1],
                                                   masks[n_hidden], inv_counts[n_hidden])
            acc = acc + states[n_hidden][2]

        out_ref[...] = acc * inv_ts   # multiply by precomputed 1/spike_ts

    n_inputs = 1 + 2 * n_layers
    call = pl.pallas_call(
        kernel,
        out_shape=jax.ShapeDtypeStruct((b_pad, dims_pad[-1]), jnp.float32),
        in_specs=[pl.BlockSpec(memory_space=pltpu.MemorySpace.VMEM)] * n_inputs,
        out_specs=pl.BlockSpec(memory_space=pltpu.MemorySpace.VMEM),
        scratch_shapes=[pltpu.VMEM((rows_pad, dims_pad[1]), jnp.float32)],
    )

    def prepare_params(params):
        """One-time weight/bias padding + bf16 cast (keep OUT of the per-call path)."""
        padded = []
        for l in range(n_layers):
            w, b = params[2 * l], params[2 * l + 1]
            w = jnp.pad(w, ((0, dims_pad[l] - dims_real[l]),
                            (0, dims_pad[l + 1] - dims_real[l + 1]))).astype(jnp.bfloat16)
            b = jnp.pad(b, ((0, 0),
                            (0, dims_pad[l + 1] - dims_real[l + 1]))).astype(jnp.float32)
            padded += [w, b]
        return tuple(padded)

    @jax.jit
    def forward(in_pop_spikes_bdt, prepared_params):
        # (B, Din, T) -> time-major 2-D slab (rows_pad, Din_pad), bf16 (spikes are 0/1)
        spikes = jnp.transpose(in_pop_spikes_bdt.astype(jnp.float32), (2, 0, 1))
        spikes = jnp.pad(spikes, ((0, 0),
                                  (0, b_pad - batch_size),
                                  (0, dims_pad[0] - in_pop_dim)))
        spikes2d = spikes.reshape(spike_ts * b_pad, dims_pad[0])
        spikes2d = jnp.pad(spikes2d,
                           ((0, rows_pad - spike_ts * b_pad), (0, 0))).astype(jnp.bfloat16)
        out_padded = call(spikes2d, *prepared_params)
        return out_padded[:batch_size, :out_pop_dim]

    return forward, prepare_params


def init_params(key, in_pop_dim, hidden_sizes, out_pop_dim):
    """PyTorch nn.Linear default init (uniform +- 1/sqrt(fan_in)); W stored (in, out)."""
    dims = [in_pop_dim] + list(hidden_sizes) + [out_pop_dim]
    params = []
    for l in range(len(dims) - 1):
        fan_in, fan_out = dims[l], dims[l + 1]
        bound = 1.0 / (fan_in ** 0.5)
        key, kw, kb = jax.random.split(key, 3)
        w = jax.random.uniform(kw, (fan_in, fan_out), jnp.float32, -bound, bound)
        b = jax.random.uniform(kb, (1, fan_out), jnp.float32, -bound, bound)
        params += [w, b]
    return params


if __name__ == "__main__":
    # Hidden widths 256 and out_pop_dim 80 are baked into the reference globals
    # (NEURON_VTH_1/2 are (1,256), NEURON_VTH_3 is (1,80)); keep them.
    batch_size = 2
    in_pop_dim = 64
    hidden_sizes = (256, 256)
    out_pop_dim = 80
    spike_ts = 5

    key = jax.random.PRNGKey(0)
    key, k_spk = jax.random.split(key)
    in_pop_spikes = jax.random.bernoulli(
        k_spk, 0.3, (batch_size, in_pop_dim, spike_ts)).astype(jnp.float32)
    params = init_params(key, in_pop_dim, hidden_sizes, out_pop_dim)

    forward, prepare_params = build_spike_mlp(in_pop_dim, hidden_sizes, out_pop_dim,
                                              spike_ts, batch_size)
    prepared = jax.block_until_ready(prepare_params(params))   # one-time padding/cast
    out_pop_act = forward(in_pop_spikes, prepared)
    jax.block_until_ready(out_pop_act)
    assert out_pop_act.shape == (batch_size, out_pop_dim)
    assert bool(jnp.all(jnp.isfinite(out_pop_act)))
    print("KERNEL_OK")
</pallas_src>

<mosaic_0001>
module attributes {stable_mosaic.version = 11 : i64} {
  func.func @kernel(%arg0: memref<48x128xbf16, #tpu.memory_space<vmem>>, %arg1: memref<128x256xbf16, #tpu.memory_space<vmem>>, %arg2: memref<1x256xf32, #tpu.memory_space<vmem>>, %arg3: memref<256x256xbf16, #tpu.memory_space<vmem>>, %arg4: memref<1x256xf32, #tpu.memory_space<vmem>>, %arg5: memref<256x128xbf16, #tpu.memory_space<vmem>>, %arg6: memref<1x128xf32, #tpu.memory_space<vmem>>, %arg7: memref<8x128xf32, #tpu.memory_space<vmem>>, %arg8: memref<48x256xf32, #tpu.memory_space<vmem>>) attributes {dimension_semantics = [], scalar_prefetch = 0 : i64, scratch_operands = 1 : i64, tpu.core_type = #tpu.core_type<tc>} {
    %0 = tpu.iota {dimensions = array<i32: 0>} : vector<8x1xi32>
    %c2_i32 = arith.constant 2 : i32
    %1 = vector.broadcast %c2_i32 : i32 to vector<8x1xi32>
    %2 = arith.cmpi slt, %0, %1 : vector<8x1xi32>
    %3 = tpu.iota {dimensions = array<i32: 1>} : vector<1x128xi32>
    %c80_i32 = arith.constant 80 : i32
    %4 = vector.broadcast %c80_i32 : i32 to vector<1x128xi32>
    %5 = arith.cmpi slt, %3, %4 : vector<1x128xi32>
    %6 = vector.broadcast %2 : vector<8x1xi1> to vector<8x128xi1>
    %7 = vector.broadcast %5 : vector<1x128xi1> to vector<8x128xi1>
    %8 = arith.andi %6, %7 : vector<8x128xi1>
    %c0 = arith.constant 0 : index
    %c0_0 = arith.constant 0 : index
    %9 = vector.load %arg4[%c0, %c0_0] : memref<1x256xf32, #tpu.memory_space<vmem>>, vector<1x256xf32>
    %10 = vector.shape_cast %9 : vector<1x256xf32> to vector<1x256xf32>
    %11 = vector.broadcast %10 : vector<1x256xf32> to vector<8x256xf32>
    %c0_1 = arith.constant 0 : index
    %c0_2 = arith.constant 0 : index
    %12 = vector.load %arg6[%c0_1, %c0_2] : memref<1x128xf32, #tpu.memory_space<vmem>>, vector<1x128xf32>
    %13 = vector.shape_cast %12 : vector<1x128xf32> to vector<1x128xf32>
    %14 = vector.broadcast %13 : vector<1x128xf32> to vector<8x128xf32>
    %c0_3 = arith.constant 0 : index
    %c0_4 = arith.constant 0 : index
    %15 = vector.load %arg0[%c0_3, %c0_4] : memref<48x128xbf16, #tpu.memory_space<vmem>>, vector<48x128xbf16>
    %c0_5 = arith.constant 0 : index
    %c0_6 = arith.constant 0 : index
    %16 = vector.load %arg1[%c0_5, %c0_6] : memref<128x256xbf16, #tpu.memory_space<vmem>>, vector<128x256xbf16>
    %cst = arith.constant dense<0.000000e+00> : vector<48x256xf32>
    %17 = tpu.matmul %15, %16, %cst {dimension_numbers = #tpu.dot_dimension_numbers<[1], [0], [0], [1], [0, 0, 1, 1], [], []>} : vector<48x128xbf16>, vector<128x256xbf16>, vector<48x256xf32> -> vector<48x256xf32>
    %c0_7 = arith.constant 0 : index
    %c0_8 = arith.constant 0 : index
    %18 = vector.load %arg2[%c0_7, %c0_8] : memref<1x256xf32, #tpu.memory_space<vmem>>, vector<1x256xf32>
    %19 = vector.broadcast %18 : vector<1x256xf32> to vector<48x256xf32>
    %20 = arith.addf %17, %19 : vector<48x256xf32>
    %c0_9 = arith.constant 0 : index
    %c0_10 = arith.constant 0 : index
    %21 = vector.load %arg8[%c0_9, %c0_10] : memref<48x256xf32, #tpu.memory_space<vmem>>, vector<48x256xf32>
    tpu.vector_store %arg8[%c0_9, %c0_10], %20 {strides = array<i32>} : memref<48x256xf32, #tpu.memory_space<vmem>>, vector<48x256xf32>,
    %cst_11 = arith.constant 0.000000e+00 : f32
    %22 = vector.broadcast %cst_11 : f32 to vector<8x256xf32>
    %cst_12 = arith.constant 0.000000e+00 : f32
    %23 = vector.broadcast %cst_12 : f32 to vector<8x256xf32>
    %cst_13 = arith.constant 0.000000e+00 : f32
    %24 = vector.broadcast %cst_13 : f32 to vector<8x128xf32>
    %cst_14 = arith.constant 5.000000e-01 : f32
    %25 = vector.broadcast %cst_14 : f32 to vector<8x256xf32>
    %cst_15 = arith.constant 5.000000e-01 : f32
    %26 = vector.broadcast %cst_15 : f32 to vector<8x256xf32>
    %cst_16 = arith.constant 5.000000e-01 : f32
    %27 = vector.broadcast %cst_16 : f32 to vector<8x128xf32>
    %cst_17 = arith.constant 0.000000e+00 : f32
    %28 = vector.broadcast %cst_17 : f32 to vector<8x128xf32>
    %c0_18 = arith.constant 0 : index
    %c0_19 = arith.constant 0 : index
    %29 = vector.load %arg8[%c0_18, %c0_19] : memref<48x256xf32, #tpu.memory_space<vmem>>, vector<8x256xf32>
    %cst_20 = arith.constant 5.000000e-01 : f32
    %30 = vector.broadcast %cst_20 : f32 to vector<8x256xf32>
    %31 = arith.mulf %22, %30 : vector<8x256xf32>
    %32 = arith.addf %31, %29 : vector<8x256xf32>
    %cst_21 = arith.constant 7.500000e-01 : f32
    %33 = vector.broadcast %cst_21 : f32 to vector<8x256xf32>
    %34 = arith.mulf %22, %33 : vector<8x256xf32>
    %cst_22 = arith.constant 1.000000e+00 : f32
    %35 = vector.broadcast %cst_22 : f32 to vector<8x256xf32>
    %36 = arith.subf %35, %22 : vector<8x256xf32>
    %37 = arith.mulf %34, %36 : vector<8x256xf32>
    %38 = arith.addf %37, %32 : vector<8x256xf32>
    %39 = arith.subf %22, %38 : vector<8x256xf32>
    %cst_23 = arith.constant 0.333333343 : f32
    %40 = vector.broadcast %cst_23 : f32 to vector<8x256xf32>
    %41 = arith.mulf %39, %40 : vector<8x256xf32>
    %42 = math.exp %41 : vector<8x256xf32>
    %cst_24 = arith.constant 1.000000e+00 : f32
    %43 = vector.broadcast %cst_24 : f32 to vector<8x256xf32>
    %44 = arith.subf %42, %43 : vector<8x256xf32>
    %cst_25 = arith.constant 5.000000e-01 : f32
    %45 = vector.broadcast %cst_25 : f32 to vector<8x256xf32>
    %46 = arith.mulf %45, %25 : vector<8x256xf32>
    %cst_26 = arith.constant 5.000000e-01 : f32
    %47 = vector.broadcast %cst_26 : f32 to vector<8x256xf32>
    %48 = arith.mulf %47, %44 : vector<8x256xf32>
    %49 = arith.addf %46, %48 : vector<8x256xf32>
    %50 = arith.cmpf ogt, %38, %49 : vector<8x256xf32>
    %51 = arith.extui %50 : vector<8x256xi1> to vector<8x256xi32>
    %52 = arith.sitofp %51 : vector<8x256xi32> to vector<8x256xf32>
    %cst_27 = arith.constant 0.000000e+00 : f32
    %53 = vector.shape_cast %2 : vector<8x1xi1> to vector<8x1xi1>
    %54 = vector.broadcast %53 : vector<8x1xi1> to vector<8x256xi1>
    %55 = vector.broadcast %cst_27 : f32 to vector<8x256xf32>
    %56 = arith.select %54, %38, %55 : vector<8x256xi1>, vector<8x256xf32>
    %57 = vector.shape_cast %56 : vector<8x256xf32> to vector<1x8x256xf32>
    %cst_28 = arith.constant dense<0.000000e+00> : vector<1xf32>
    %58 = vector.multi_reduction <add>, %57, %cst_28 [1, 2] : vector<1x8x256xf32> to vector<1xf32>
    %59 = vector.shape_cast %58 : vector<1xf32> to vector<1x1x1xf32>
    %60 = vector.extract %59[0, 0, 0] : f32 from vector<1x1x1xf32>
    %cst_29 = arith.constant 0.001953125 : f32
    %61 = arith.mulf %60, %cst_29 : f32
    %cst_30 = arith.constant 0xFF800000 : f32
    %62 = vector.shape_cast %2 : vector<8x1xi1> to vector<8x1xi1>
    %63 = vector.broadcast %62 : vector<8x1xi1> to vector<8x256xi1>
    %64 = vector.broadcast %cst_30 : f32 to vector<8x256xf32>
    %65 = arith.select %63, %38, %64 : vector<8x256xi1>, vector<8x256xf32>
    %66 = vector.shape_cast %65 : vector<8x256xf32> to vector<1x8x256xf32>
    %cst_31 = arith.constant dense<0xFF800000> : vector<1xf32>
    %67 = vector.multi_reduction <maximumf>, %66, %cst_31 [1, 2] : vector<1x8x256xf32> to vector<1xf32>
    %68 = vector.shape_cast %67 : vector<1xf32> to vector<1x1x1xf32>
    %69 = vector.extract %68[0, 0, 0] : f32 from vector<1x1x1xf32>
    %cst_32 = arith.constant 0x7F800000 : f32
    %70 = vector.shape_cast %2 : vector<8x1xi1> to vector<8x1xi1>
    %71 = vector.broadcast %70 : vector<8x1xi1> to vector<8x256xi1>
    %72 = vector.broadcast %cst_32 : f32 to vector<8x256xf32>
    %73 = arith.select %71, %38, %72 : vector<8x256xi1>, vector<8x256xf32>
    %74 = vector.shape_cast %73 : vector<8x256xf32> to vector<1x8x256xf32>
    %cst_33 = arith.constant dense<0x7F800000> : vector<1xf32>
    %75 = vector.multi_reduction <minimumf>, %74, %cst_33 [1, 2] : vector<1x8x256xf32> to vector<1xf32>
    %76 = vector.shape_cast %75 : vector<1xf32> to vector<1x1x1xf32>
    %77 = vector.extract %76[0, 0, 0] : f32 from vector<1x1x1xf32>
    %cst_34 = arith.constant 0.000000e+00 : f32
    %78 = vector.shape_cast %2 : vector<8x1xi1> to vector<8x1xi1>
    %79 = vector.broadcast %78 : vector<8x1xi1> to vector<8x256xi1>
    %80 = vector.broadcast %cst_34 : f32 to vector<8x256xf32>
    %81 = arith.select %79, %49, %80 : vector<8x256xi1>, vector<8x256xf32>
    %82 = vector.shape_cast %81 : vector<8x256xf32> to vector<1x8x256xf32>
    %cst_35 = arith.constant dense<0.000000e+00> : vector<1xf32>
    %83 = vector.multi_reduction <add>, %82, %cst_35 [1, 2] : vector<1x8x256xf32> to vector<1xf32>
    %84 = vector.shape_cast %83 : vector<1xf32> to vector<1x1x1xf32>
    %85 = vector.extract %84[0, 0, 0] : f32 from vector<1x1x1xf32>
    %cst_36 = arith.constant 0.001953125 : f32
    %86 = arith.mulf %85, %cst_36 : f32
    %cst_37 = arith.constant 0xFF800000 : f32
    %87 = vector.shape_cast %2 : vector<8x1xi1> to vector<8x1xi1>
    %88 = vector.broadcast %87 : vector<8x1xi1> to vector<8x256xi1>
    %89 = vector.broadcast %cst_37 : f32 to vector<8x256xf32>
    %90 = arith.select %88, %49, %89 : vector<8x256xi1>, vector<8x256xf32>
    %91 = vector.shape_cast %90 : vector<8x256xf32> to vector<1x8x256xf32>
    %cst_38 = arith.constant dense<0xFF800000> : vector<1xf32>
    %92 = vector.multi_reduction <maximumf>, %91, %cst_38 [1, 2] : vector<1x8x256xf32> to vector<1xf32>
    %93 = vector.shape_cast %92 : vector<1xf32> to vector<1x1x1xf32>
    %94 = vector.extract %93[0, 0, 0] : f32 from vector<1x1x1xf32>
    %cst_39 = arith.constant 0x7F800000 : f32
    %95 = vector.shape_cast %2 : vector<8x1xi1> to vector<8x1xi1>
    %96 = vector.broadcast %95 : vector<8x1xi1> to vector<8x256xi1>
    %97 = vector.broadcast %cst_39 : f32 to vector<8x256xf32>
    %98 = arith.select %96, %49, %97 : vector<8x256xi1>, vector<8x256xf32>
    %99 = vector.shape_cast %98 : vector<8x256xf32> to vector<1x8x256xf32>
    %cst_40 = arith.constant dense<0x7F800000> : vector<1xf32>
    %100 = vector.multi_reduction <minimumf>, %99, %cst_40 [1, 2] : vector<1x8x256xf32> to vector<1xf32>
    %101 = vector.shape_cast %100 : vector<1xf32> to vector<1x1x1xf32>
    %102 = vector.extract %101[0, 0, 0] : f32 from vector<1x1x1xf32>
    %103 = arith.subf %69, %77 : f32
    %cst_41 = arith.constant 2.000000e-01 : f32
    %104 = arith.mulf %cst_41, %103 : f32
    %105 = arith.subf %61, %104 : f32
    %106 = arith.subf %94, %102 : f32
    %cst_42 = arith.constant 2.000000e-01 : f32
    %107 = arith.mulf %cst_42, %106 : f32
    %108 = arith.subf %86, %107 : f32
    %109 = vector.broadcast %105 : f32 to vector<8x256xf32>
    %110 = arith.subf %38, %109 : vector<8x256xf32>
    %cst_43 = arith.constant 0.166666672 : f32
    %111 = vector.broadcast %cst_43 : f32 to vector<8x256xf32>
    %112 = arith.mulf %110, %111 : vector<8x256xf32>
    %cst_44 = arith.constant 0.000000e+00 : f32
    %113 = vector.broadcast %cst_44 : f32 to vector<8x256xf32>
    %114 = arith.maximumf %112, %113 : vector<8x256xf32>
    %115 = math.absf %112 : vector<8x256xf32>
    %cst_45 = arith.constant 0.000000e+00 : f32
    %116 = vector.broadcast %cst_45 : f32 to vector<8x256xf32>
    %117 = arith.subf %116, %115 : vector<8x256xf32>
    %118 = math.exp %117 : vector<8x256xf32>
    %cst_46 = arith.constant 1.000000e+00 : f32
    %119 = vector.broadcast %cst_46 : f32 to vector<8x256xf32>
    %120 = arith.addf %119, %118 : vector<8x256xf32>
    %121 = math.log %120 : vector<8x256xf32>
    %122 = arith.addf %114, %121 : vector<8x256xf32>
    %123 = vector.broadcast %105 : f32 to vector<8x256xf32>
    %124 = arith.subf %38, %123 : vector<8x256xf32>
    %cst_47 = arith.constant 0.00999999977 : f32
    %125 = vector.broadcast %cst_47 : f32 to vector<8x256xf32>
    %126 = arith.mulf %125, %124 : vector<8x256xf32>
    %127 = vector.broadcast %108 : f32 to vector<8x256xf32>
    %128 = arith.addf %126, %127 : vector<8x256xf32>
    %129 = arith.addf %128, %122 : vector<8x256xf32>
    %130 = arith.truncf %52 : vector<8x256xf32> to vector<8x256xbf16>
    %c0_48 = arith.constant 0 : index
    %c0_49 = arith.constant 0 : index
    %131 = vector.load %arg3[%c0_48, %c0_49] : memref<256x256xbf16, #tpu.memory_space<vmem>>, vector<256x256xbf16>
    %cst_50 = arith.constant dense<0.000000e+00> : vector<8x256xf32>
    %132 = tpu.matmul %130, %131, %cst_50 {dimension_numbers = #tpu.dot_dimension_numbers<[1], [0], [0], [1], [0, 0, 1, 1], [], []>} : vector<8x256xbf16>, vector<256x256xbf16>, vector<8x256xf32> -> vector<8x256xf32>
    %133 = arith.addf %132, %11 : vector<8x256xf32>
    %cst_51 = arith.constant 5.000000e-01 : f32
    %134 = vector.broadcast %cst_51 : f32 to vector<8x256xf32>
    %135 = arith.mulf %23, %134 : vector<8x256xf32>
    %136 = arith.addf %135, %133 : vector<8x256xf32>
    %cst_52 = arith.constant 7.500000e-01 : f32
    %137 = vector.broadcast %cst_52 : f32 to vector<8x256xf32>
    %138 = arith.mulf %23, %137 : vector<8x256xf32>
    %cst_53 = arith.constant 1.000000e+00 : f32
    %139 = vector.broadcast %cst_53 : f32 to vector<8x256xf32>
    %140 = arith.subf %139, %23 : vector<8x256xf32>
    %141 = arith.mulf %138, %140 : vector<8x256xf32>
    %142 = arith.addf %141, %136 : vector<8x256xf32>
    %143 = arith.subf %23, %142 : vector<8x256xf32>
    %cst_54 = arith.constant 0.333333343 : f32
    %144 = vector.broadcast %cst_54 : f32 to vector<8x256xf32>
    %145 = arith.mulf %143, %144 : vector<8x256xf32>
    %146 = math.exp %145 : vector<8x256xf32>
    %cst_55 = arith.constant 1.000000e+00 : f32
    %147 = vector.broadcast %cst_55 : f32 to vector<8x256xf32>
    %148 = arith.subf %146, %147 : vector<8x256xf32>
    %cst_56 = arith.constant 5.000000e-01 : f32
    %149 = vector.broadcast %cst_56 : f32 to vector<8x256xf32>
    %150 = arith.mulf %149, %26 : vector<8x256xf32>
    %cst_57 = arith.constant 5.000000e-01 : f32
    %151 = vector.broadcast %cst_57 : f32 to vector<8x256xf32>
    %152 = arith.mulf %151, %148 : vector<8x256xf32>
    %153 = arith.addf %150, %152 : vector<8x256xf32>
    %154 = arith.cmpf ogt, %142, %153 : vector<8x256xf32>
    %155 = arith.extui %154 : vector<8x256xi1> to vector<8x256xi32>
    %156 = arith.sitofp %155 : vector<8x256xi32> to vector<8x256xf32>
    %cst_58 = arith.constant 0.000000e+00 : f32
    %157 = vector.shape_cast %2 : vector<8x1xi1> to vector<8x1xi1>
    %158 = vector.broadcast %157 : vector<8x1xi1> to vector<8x256xi1>
    %159 = vector.broadcast %cst_58 : f32 to vector<8x256xf32>
    %160 = arith.select %158, %142, %159 : vector<8x256xi1>, vector<8x256xf32>
    %161 = vector.shape_cast %160 : vector<8x256xf32> to vector<1x8x256xf32>
    %cst_59 = arith.constant dense<0.000000e+00> : vector<1xf32>
    %162 = vector.multi_reduction <add>, %161, %cst_59 [1, 2] : vector<1x8x256xf32> to vector<1xf32>
    %163 = vector.shape_cast %162 : vector<1xf32> to vector<1x1x1xf32>
    %164 = vector.extract %163[0, 0, 0] : f32 from vector<1x1x1xf32>
    %cst_60 = arith.constant 0.001953125 : f32
    %165 = arith.mulf %164, %cst_60 : f32
    %cst_61 = arith.constant 0xFF800000 : f32
    %166 = vector.shape_cast %2 : vector<8x1xi1> to vector<8x1xi1>
    %167 = vector.broadcast %166 : vector<8x1xi1> to vector<8x256xi1>
    %168 = vector.broadcast %cst_61 : f32 to vector<8x256xf32>
    %169 = arith.select %167, %142, %168 : vector<8x256xi1>, vector<8x256xf32>
    %170 = vector.shape_cast %169 : vector<8x256xf32> to vector<1x8x256xf32>
    %cst_62 = arith.constant dense<0xFF800000> : vector<1xf32>
    %171 = vector.multi_reduction <maximumf>, %170, %cst_62 [1, 2] : vector<1x8x256xf32> to vector<1xf32>
    %172 = vector.shape_cast %171 : vector<1xf32> to vector<1x1x1xf32>
    %173 = vector.extract %172[0, 0, 0] : f32 from vector<1x1x1xf32>
    %cst_63 = arith.constant 0x7F800000 : f32
    %174 = vector.shape_cast %2 : vector<8x1xi1> to vector<8x1xi1>
    %175 = vector.broadcast %174 : vector<8x1xi1> to vector<8x256xi1>
    %176 = vector.broadcast %cst_63 : f32 to vector<8x256xf32>
    %177 = arith.select %175, %142, %176 : vector<8x256xi1>, vector<8x256xf32>
    %178 = vector.shape_cast %177 : vector<8x256xf32> to vector<1x8x256xf32>
    %cst_64 = arith.constant dense<0x7F800000> : vector<1xf32>
    %179 = vector.multi_reduction <minimumf>, %178, %cst_64 [1, 2] : vector<1x8x256xf32> to vector<1xf32>
    %180 = vector.shape_cast %179 : vector<1xf32> to vector<1x1x1xf32>
    %181 = vector.extract %180[0, 0, 0] : f32 from vector<1x1x1xf32>
    %cst_65 = arith.constant 0.000000e+00 : f32
    %182 = vector.shape_cast %2 : vector<8x1xi1> to vector<8x1xi1>
    %183 = vector.broadcast %182 : vector<8x1xi1> to vector<8x256xi1>
    %184 = vector.broadcast %cst_65 : f32 to vector<8x256xf32>
    %185 = arith.select %183, %153, %184 : vector<8x256xi1>, vector<8x256xf32>
    %186 = vector.shape_cast %185 : vector<8x256xf32> to vector<1x8x256xf32>
    %cst_66 = arith.constant dense<0.000000e+00> : vector<1xf32>
    %187 = vector.multi_reduction <add>, %186, %cst_66 [1, 2] : vector<1x8x256xf32> to vector<1xf32>
    %188 = vector.shape_cast %187 : vector<1xf32> to vector<1x1x1xf32>
    %189 = vector.extract %188[0, 0, 0] : f32 from vector<1x1x1xf32>
    %cst_67 = arith.constant 0.001953125 : f32
    %190 = arith.mulf %189, %cst_67 : f32
    %cst_68 = arith.constant 0xFF800000 : f32
    %191 = vector.shape_cast %2 : vector<8x1xi1> to vector<8x1xi1>
    %192 = vector.broadcast %191 : vector<8x1xi1> to vector<8x256xi1>
    %193 = vector.broadcast %cst_68 : f32 to vector<8x256xf32>
    %194 = arith.select %192, %153, %193 : vector<8x256xi1>, vector<8x256xf32>
    %195 = vector.shape_cast %194 : vector<8x256xf32> to vector<1x8x256xf32>
    %cst_69 = arith.constant dense<0xFF800000> : vector<1xf32>
    %196 = vector.multi_reduction <maximumf>, %195, %cst_69 [1, 2] : vector<1x8x256xf32> to vector<1xf32>
    %197 = vector.shape_cast %196 : vector<1xf32> to vector<1x1x1xf32>
    %198 = vector.extract %197[0, 0, 0] : f32 from vector<1x1x1xf32>
    %cst_70 = arith.constant 0x7F800000 : f32
    %199 = vector.shape_cast %2 : vector<8x1xi1> to vector<8x1xi1>
    %200 = vector.broadcast %199 : vector<8x1xi1> to vector<8x256xi1>
    %201 = vector.broadcast %cst_70 : f32 to vector<8x256xf32>
    %202 = arith.select %200, %153, %201 : vector<8x256xi1>, vector<8x256xf32>
    %203 = vector.shape_cast %202 : vector<8x256xf32> to vector<1x8x256xf32>
    %cst_71 = arith.constant dense<0x7F800000> : vector<1xf32>
    %204 = vector.multi_reduction <minimumf>, %203, %cst_71 [1, 2] : vector<1x8x256xf32> to vector<1xf32>
    %205 = vector.shape_cast %204 : vector<1xf32> to vector<1x1x1xf32>
    %206 = vector.extract %205[0, 0, 0] : f32 from vector<1x1x1xf32>
    %207 = arith.subf %173, %181 : f32
    %cst_72 = arith.constant 2.000000e-01 : f32
    %208 = arith.mulf %cst_72, %207 : f32
    %209 = arith.subf %165, %208 : f32
    %210 = arith.subf %198, %206 : f32
    %cst_73 = arith.constant 2.000000e-01 : f32
    %211 = arith.mulf %cst_73, %210 : f32
    %212 = arith.subf %190, %211 : f32
    %213 = vector.broadcast %209 : f32 to vector<8x256xf32>
    %214 = arith.subf %142, %213 : vector<8x256xf32>
    %cst_74 = arith.constant 0.166666672 : f32
    %215 = vector.broadcast %cst_74 : f32 to vector<8x256xf32>
    %216 = arith.mulf %214, %215 : vector<8x256xf32>
    %cst_75 = arith.constant 0.000000e+00 : f32
    %217 = vector.broadcast %cst_75 : f32 to vector<8x256xf32>
    %218 = arith.maximumf %216, %217 : vector<8x256xf32>
    %219 = math.absf %216 : vector<8x256xf32>
    %cst_76 = arith.constant 0.000000e+00 : f32
    %220 = vector.broadcast %cst_76 : f32 to vector<8x256xf32>
    %221 = arith.subf %220, %219 : vector<8x256xf32>
    %222 = math.exp %221 : vector<8x256xf32>
    %cst_77 = arith.constant 1.000000e+00 : f32
    %223 = vector.broadcast %cst_77 : f32 to vector<8x256xf32>
    %224 = arith.addf %223, %222 : vector<8x256xf32>
    %225 = math.log %224 : vector<8x256xf32>
    %226 = arith.addf %218, %225 : vector<8x256xf32>
    %227 = vector.broadcast %209 : f32 to vector<8x256xf32>
    %228 = arith.subf %142, %227 : vector<8x256xf32>
    %cst_78 = arith.constant 0.00999999977 : f32
    %229 = vector.broadcast %cst_78 : f32 to vector<8x256xf32>
    %230 = arith.mulf %229, %228 : vector<8x256xf32>
    %231 = vector.broadcast %212 : f32 to vector<8x256xf32>
    %232 = arith.addf %230, %231 : vector<8x256xf32>
    %233 = arith.addf %232, %226 : vector<8x256xf32>
    %234 = arith.truncf %156 : vector<8x256xf32> to vector<8x256xbf16>
    %c0_79 = arith.constant 0 : index
    %c0_80 = arith.constant 0 : index
    %235 = vector.load %arg5[%c0_79, %c0_80] : memref<256x128xbf16, #tpu.memory_space<vmem>>, vector<256x128xbf16>
    %cst_81 = arith.constant dense<0.000000e+00> : vector<8x128xf32>
    %236 = tpu.matmul %234, %235, %cst_81 {dimension_numbers = #tpu.dot_dimension_numbers<[1], [0], [0], [1], [0, 0, 1, 1], [], []>} : vector<8x256xbf16>, vector<256x128xbf16>, vector<8x128xf32> -> vector<8x128xf32>
    %237 = arith.addf %236, %14 : vector<8x128xf32>
    %cst_82 = arith.constant 5.000000e-01 : f32
    %238 = vector.broadcast %cst_82 : f32 to vector<8x128xf32>
    %239 = arith.mulf %24, %238 : vector<8x128xf32>
    %240 = arith.addf %239, %237 : vector<8x128xf32>
    %cst_83 = arith.constant 7.500000e-01 : f32
    %241 = vector.broadcast %cst_83 : f32 to vector<8x128xf32>
    %242 = arith.mulf %24, %241 : vector<8x128xf32>
    %cst_84 = arith.constant 1.000000e+00 : f32
    %243 = vector.broadcast %cst_84 : f32 to vector<8x128xf32>
    %244 = arith.subf %243, %24 : vector<8x128xf32>
    %245 = arith.mulf %242, %244 : vector<8x128xf32>
    %246 = arith.addf %245, %240 : vector<8x128xf32>
    %247 = arith.subf %24, %246 : vector<8x128xf32>
    %cst_85 = arith.constant 0.333333343 : f32
    %248 = vector.broadcast %cst_85 : f32 to vector<8x128xf32>
    %249 = arith.mulf %247, %248 : vector<8x128xf32>
    %250 = math.exp %249 : vector<8x128xf32>
    %cst_86 = arith.constant 1.000000e+00 : f32
    %251 = vector.broadcast %cst_86 : f32 to vector<8x128xf32>
    %252 = arith.subf %250, %251 : vector<8x128xf32>
    %cst_87 = arith.constant 5.000000e-01 : f32
    %253 = vector.broadcast %cst_87 : f32 to vector<8x128xf32>
    %254 = arith.mulf %253, %27 : vector<8x128xf32>
    %cst_88 = arith.constant 5.000000e-01 : f32
    %255 = vector.broadcast %cst_88 : f32 to vector<8x128xf32>
    %256 = arith.mulf %255, %252 : vector<8x128xf32>
    %257 = arith.addf %254, %256 : vector<8x128xf32>
    %258 = arith.cmpf ogt, %246, %257 : vector<8x128xf32>
    %259 = arith.extui %258 : vector<8x128xi1> to vector<8x128xi32>
    %260 = arith.sitofp %259 : vector<8x128xi32> to vector<8x128xf32>
    %cst_89 = arith.constant 0.000000e+00 : f32
    %261 = vector.broadcast %cst_89 : f32 to vector<8x128xf32>
    %262 = arith.select %8, %246, %261 : vector<8x128xi1>, vector<8x128xf32>
    %263 = vector.shape_cast %262 : vector<8x128xf32> to vector<1x8x128xf32>
    %cst_90 = arith.constant dense<0.000000e+00> : vector<1xf32>
    %264 = vector.multi_reduction <add>, %263, %cst_90 [1, 2] : vector<1x8x128xf32> to vector<1xf32>
    %265 = vector.shape_cast %264 : vector<1xf32> to vector<1x1x1xf32>
    %266 = vector.extract %265[0, 0, 0] : f32 from vector<1x1x1xf32>
    %cst_91 = arith.constant 6.250000e-03 : f32
    %267 = arith.mulf %266, %cst_91 : f32
    %cst_92 = arith.constant 0xFF800000 : f32
    %268 = vector.broadcast %cst_92 : f32 to vector<8x128xf32>
    %269 = arith.select %8, %246, %268 : vector<8x128xi1>, vector<8x128xf32>
    %270 = vector.shape_cast %269 : vector<8x128xf32> to vector<1x8x128xf32>
    %cst_93 = arith.constant dense<0xFF800000> : vector<1xf32>
    %271 = vector.multi_reduction <maximumf>, %270, %cst_93 [1, 2] : vector<1x8x128xf32> to vector<1xf32>
    %272 = vector.shape_cast %271 : vector<1xf32> to vector<1x1x1xf32>
    %273 = vector.extract %272[0, 0, 0] : f32 from vector<1x1x1xf32>
    %cst_94 = arith.constant 0x7F800000 : f32
    %274 = vector.broadcast %cst_94 : f32 to vector<8x128xf32>
    %275 = arith.select %8, %246, %274 : vector<8x128xi1>, vector<8x128xf32>
    %276 = vector.shape_cast %275 : vector<8x128xf32> to vector<1x8x128xf32>
    %cst_95 = arith.constant dense<0x7F800000> : vector<1xf32>
    %277 = vector.multi_reduction <minimumf>, %276, %cst_95 [1, 2] : vector<1x8x128xf32> to vector<1xf32>
    %278 = vector.shape_cast %277 : vector<1xf32> to vector<1x1x1xf32>
    %279 = vector.extract %278[0, 0, 0] : f32 from vector<1x1x1xf32>
    %cst_96 = arith.constant 0.000000e+00 : f32
    %280 = vector.broadcast %cst_96 : f32 to vector<8x128xf32>
    %281 = arith.select %8, %257, %280 : vector<8x128xi1>, vector<8x128xf32>
    %282 = vector.shape_cast %281 : vector<8x128xf32> to vector<1x8x128xf32>
    %cst_97 = arith.constant dense<0.000000e+00> : vector<1xf32>
    %283 = vector.multi_reduction <add>, %282, %cst_97 [1, 2] : vector<1x8x128xf32> to vector<1xf32>
    %284 = vector.shape_cast %283 : vector<1xf32> to vector<1x1x1xf32>
    %285 = vector.extract %284[0, 0, 0] : f32 from vector<1x1x1xf32>
    %cst_98 = arith.constant 6.250000e-03 : f32
    %286 = arith.mulf %285, %cst_98 : f32
    %cst_99 = arith.constant 0xFF800000 : f32
    %287 = vector.broadcast %cst_99 : f32 to vector<8x128xf32>
    %288 = arith.select %8, %257, %287 : vector<8x128xi1>, vector<8x128xf32>
    %289 = vector.shape_cast %288 : vector<8x128xf32> to vector<1x8x128xf32>
    %cst_100 = arith.constant dense<0xFF800000> : vector<1xf32>
    %290 = vector.multi_reduction <maximumf>, %289, %cst_100 [1, 2] : vector<1x8x128xf32> to vector<1xf32>
    %291 = vector.shape_cast %290 : vector<1xf32> to vector<1x1x1xf32>
    %292 = vector.extract %291[0, 0, 0] : f32 from vector<1x1x1xf32>
    %cst_101 = arith.constant 0x7F800000 : f32
    %293 = vector.broadcast %cst_101 : f32 to vector<8x128xf32>
    %294 = arith.select %8, %257, %293 : vector<8x128xi1>, vector<8x128xf32>
    %295 = vector.shape_cast %294 : vector<8x128xf32> to vector<1x8x128xf32>
    %cst_102 = arith.constant dense<0x7F800000> : vector<1xf32>
    %296 = vector.multi_reduction <minimumf>, %295, %cst_102 [1, 2] : vector<1x8x128xf32> to vector<1xf32>
    %297 = vector.shape_cast %296 : vector<1xf32> to vector<1x1x1xf32>
    %298 = vector.extract %297[0, 0, 0] : f32 from vector<1x1x1xf32>
    %299 = arith.subf %273, %279 : f32
    %cst_103 = arith.constant 2.000000e-01 : f32
    %300 = arith.mulf %cst_103, %299 : f32
    %301 = arith.subf %267, %300 : f32
    %302 = arith.subf %292, %298 : f32
    %cst_104 = arith.constant 2.000000e-01 : f32
    %303 = arith.mulf %cst_104, %302 : f32
    %304 = arith.subf %286, %303 : f32
    %305 = vector.broadcast %301 : f32 to vector<8x128xf32>
    %306 = arith.subf %246, %305 : vector<8x128xf32>
    %cst_105 = arith.constant 0.166666672 : f32
    %307 = vector.broadcast %cst_105 : f32 to vector<8x128xf32>
    %308 = arith.mulf %306, %307 : vector<8x128xf32>
    %cst_106 = arith.constant 0.000000e+00 : f32
    %309 = vector.broadcast %cst_106 : f32 to vector<8x128xf32>
    %310 = arith.maximumf %308, %309 : vector<8x128xf32>
    %311 = math.absf %308 : vector<8x128xf32>
    %cst_107 = arith.constant 0.000000e+00 : f32
    %312 = vector.broadcast %cst_107 : f32 to vector<8x128xf32>
    %313 = arith.subf %312, %311 : vector<8x128xf32>
    %314 = math.exp %313 : vector<8x128xf32>
    %cst_108 = arith.constant 1.000000e+00 : f32
    %315 = vector.broadcast %cst_108 : f32 to vector<8x128xf32>
    %316 = arith.addf %315, %314 : vector<8x128xf32>
    %317 = math.log %316 : vector<8x128xf32>
    %318 = arith.addf %310, %317 : vector<8x128xf32>
    %319 = vector.broadcast %301 : f32 to vector<8x128xf32>
    %320 = arith.subf %246, %319 : vector<8x128xf32>
    %cst_109 = arith.constant 0.00999999977 : f32
    %321 = vector.broadcast %cst_109 : f32 to vector<8x128xf32>
    %322 = arith.mulf %321, %320 : vector<8x128xf32>
    %323 = vector.broadcast %304 : f32 to vector<8x128xf32>
    %324 = arith.addf %322, %323 : vector<8x128xf32>
    %325 = arith.addf %324, %318 : vector<8x128xf32>
    %326 = arith.addf %28, %260 : vector<8x128xf32>
    %c8 = arith.constant 8 : index
    %c0_110 = arith.constant 0 : index
    %327 = vector.load %arg8[%c8, %c0_110] : memref<48x256xf32, #tpu.memory_space<vmem>>, vector<8x256xf32>
    %cst_111 = arith.constant 5.000000e-01 : f32
    %328 = vector.broadcast %cst_111 : f32 to vector<8x256xf32>
    %329 = arith.mulf %32, %328 : vector<8x256xf32>
    %330 = arith.addf %329, %327 : vector<8x256xf32>
    %cst_112 = arith.constant 7.500000e-01 : f32
    %331 = vector.broadcast %cst_112 : f32 to vector<8x256xf32>
    %332 = arith.mulf %38, %331 : vector<8x256xf32>
    %cst_113 = arith.constant 1.000000e+00 : f32
    %333 = vector.broadcast %cst_113 : f32 to vector<8x256xf32>
    %334 = arith.subf %333, %52 : vector<8x256xf32>
    %335 = arith.mulf %332, %334 : vector<8x256xf32>
    %336 = arith.addf %335, %330 : vector<8x256xf32>
    %337 = arith.subf %38, %336 : vector<8x256xf32>
    %cst_114 = arith.constant 0.333333343 : f32
    %338 = vector.broadcast %cst_114 : f32 to vector<8x256xf32>
    %339 = arith.mulf %337, %338 : vector<8x256xf32>
    %340 = math.exp %339 : vector<8x256xf32>
    %cst_115 = arith.constant 1.000000e+00 : f32
    %341 = vector.broadcast %cst_115 : f32 to vector<8x256xf32>
    %342 = arith.subf %340, %341 : vector<8x256xf32>
    %cst_116 = arith.constant 5.000000e-01 : f32
    %343 = vector.broadcast %cst_116 : f32 to vector<8x256xf32>
    %344 = arith.mulf %343, %129 : vector<8x256xf32>
    %cst_117 = arith.constant 5.000000e-01 : f32
    %345 = vector.broadcast %cst_117 : f32 to vector<8x256xf32>
    %346 = arith.mulf %345, %342 : vector<8x256xf32>
    %347 = arith.addf %344, %346 : vector<8x256xf32>
    %348 = arith.cmpf ogt, %336, %347 : vector<8x256xf32>
    %349 = arith.extui %348 : vector<8x256xi1> to vector<8x256xi32>
    %350 = arith.sitofp %349 : vector<8x256xi32> to vector<8x256xf32>
    %cst_118 = arith.constant 0.000000e+00 : f32
    %351 = vector.shape_cast %2 : vector<8x1xi1> to vector<8x1xi1>
    %352 = vector.broadcast %351 : vector<8x1xi1> to vector<8x256xi1>
    %353 = vector.broadcast %cst_118 : f32 to vector<8x256xf32>
    %354 = arith.select %352, %336, %353 : vector<8x256xi1>, vector<8x256xf32>
    %355 = vector.shape_cast %354 : vector<8x256xf32> to vector<1x8x256xf32>
    %cst_119 = arith.constant dense<0.000000e+00> : vector<1xf32>
    %356 = vector.multi_reduction <add>, %355, %cst_119 [1, 2] : vector<1x8x256xf32> to vector<1xf32>
    %357 = vector.shape_cast %356 : vector<1xf32> to vector<1x1x1xf32>
    %358 = vector.extract %357[0, 0, 0] : f32 from vector<1x1x1xf32>
    %cst_120 = arith.constant 0.001953125 : f32
    %359 = arith.mulf %358, %cst_120 : f32
    %cst_121 = arith.constant 0xFF800000 : f32
    %360 = vector.shape_cast %2 : vector<8x1xi1> to vector<8x1xi1>
    %361 = vector.broadcast %360 : vector<8x1xi1> to vector<8x256xi1>
    %362 = vector.broadcast %cst_121 : f32 to vector<8x256xf32>
    %363 = arith.select %361, %336, %362 : vector<8x256xi1>, vector<8x256xf32>
    %364 = vector.shape_cast %363 : vector<8x256xf32> to vector<1x8x256xf32>
    %cst_122 = arith.constant dense<0xFF800000> : vector<1xf32>
    %365 = vector.multi_reduction <maximumf>, %364, %cst_122 [1, 2] : vector<1x8x256xf32> to vector<1xf32>
    %366 = vector.shape_cast %365 : vector<1xf32> to vector<1x1x1xf32>
    %367 = vector.extract %366[0, 0, 0] : f32 from vector<1x1x1xf32>
    %cst_123 = arith.constant 0x7F800000 : f32
    %368 = vector.shape_cast %2 : vector<8x1xi1> to vector<8x1xi1>
    %369 = vector.broadcast %368 : vector<8x1xi1> to vector<8x256xi1>
    %370 = vector.broadcast %cst_123 : f32 to vector<8x256xf32>
    %371 = arith.select %369, %336, %370 : vector<8x256xi1>, vector<8x256xf32>
    %372 = vector.shape_cast %371 : vector<8x256xf32> to vector<1x8x256xf32>
    %cst_124 = arith.constant dense<0x7F800000> : vector<1xf32>
    %373 = vector.multi_reduction <minimumf>, %372, %cst_124 [1, 2] : vector<1x8x256xf32> to vector<1xf32>
    %374 = vector.shape_cast %373 : vector<1xf32> to vector<1x1x1xf32>
    %375 = vector.extract %374[0, 0, 0] : f32 from vector<1x1x1xf32>
    %cst_125 = arith.constant 0.000000e+00 : f32
    %376 = vector.shape_cast %2 : vector<8x1xi1> to vector<8x1xi1>
    %377 = vector.broadcast %376 : vector<8x1xi1> to vector<8x256xi1>
    %378 = vector.broadcast %cst_125 : f32 to vector<8x256xf32>
    %379 = arith.select %377, %347, %378 : vector<8x256xi1>, vector<8x256xf32>
    %380 = vector.shape_cast %379 : vector<8x256xf32> to vector<1x8x256xf32>
    %cst_126 = arith.constant dense<0.000000e+00> : vector<1xf32>
    %381 = vector.multi_reduction <add>, %380, %cst_126 [1, 2] : vector<1x8x256xf32> to vector<1xf32>
    %382 = vector.shape_cast %381 : vector<1xf32> to vector<1x1x1xf32>
    %383 = vector.extract %382[0, 0, 0] : f32 from vector<1x1x1xf32>
    %cst_127 = arith.constant 0.001953125 : f32
    %384 = arith.mulf %383, %cst_127 : f32
    %cst_128 = arith.constant 0xFF800000 : f32
    %385 = vector.shape_cast %2 : vector<8x1xi1> to vector<8x1xi1>
    %386 = vector.broadcast %385 : vector<8x1xi1> to vector<8x256xi1>
    %387 = vector.broadcast %cst_128 : f32 to vector<8x256xf32>
    %388 = arith.select %386, %347, %387 : vector<8x256xi1>, vector<8x256xf32>
    %389 = vector.shape_cast %388 : vector<8x256xf32> to vector<1x8x256xf32>
    %cst_129 = arith.constant dense<0xFF800000> : vector<1xf32>
    %390 = vector.multi_reduction <maximumf>, %389, %cst_129 [1, 2] : vector<1x8x256xf32> to vector<1xf32>
    %391 = vector.shape_cast %390 : vector<1xf32> to vector<1x1x1xf32>
    %392 = vector.extract %391[0, 0, 0] : f32 from vector<1x1x1xf32>
    %cst_130 = arith.constant 0x7F800000 : f32
    %393 = vector.shape_cast %2 : vector<8x1xi1> to vector<8x1xi1>
    %394 = vector.broadcast %393 : vector<8x1xi1> to vector<8x256xi1>
    %395 = vector.broadcast %cst_130 : f32 to vector<8x256xf32>
    %396 = arith.select %394, %347, %395 : vector<8x256xi1>, vector<8x256xf32>
    %397 = vector.shape_cast %396 : vector<8x256xf32> to vector<1x8x256xf32>
    %cst_131 = arith.constant dense<0x7F800000> : vector<1xf32>
    %398 = vector.multi_reduction <minimumf>, %397, %cst_131 [1, 2] : vector<1x8x256xf32> to vector<1xf32>
    %399 = vector.shape_cast %398 : vector<1xf32> to vector<1x1x1xf32>
    %400 = vector.extract %399[0, 0, 0] : f32 from vector<1x1x1xf32>
    %401 = arith.subf %367, %375 : f32
    %cst_132 = arith.constant 2.000000e-01 : f32
    %402 = arith.mulf %cst_132, %401 : f32
    %403 = arith.subf %359, %402 : f32
    %404 = arith.subf %392, %400 : f32
    %cst_133 = arith.constant 2.000000e-01 : f32
    %405 = arith.mulf %cst_133, %404 : f32
    %406 = arith.subf %384, %405 : f32
    %407 = vector.broadcast %403 : f32 to vector<8x256xf32>
    %408 = arith.subf %336, %407 : vector<8x256xf32>
    %cst_134 = arith.constant 0.166666672 : f32
    %409 = vector.broadcast %cst_134 : f32 to vector<8x256xf32>
    %410 = arith.mulf %408, %409 : vector<8x256xf32>
    %cst_135 = arith.constant 0.000000e+00 : f32
    %411 = vector.broadcast %cst_135 : f32 to vector<8x256xf32>
    %412 = arith.maximumf %410, %411 : vector<8x256xf32>
    %413 = math.absf %410 : vector<8x256xf32>
    %cst_136 = arith.constant 0.000000e+00 : f32
    %414 = vector.broadcast %cst_136 : f32 to vector<8x256xf32>
    %415 = arith.subf %414, %413 : vector<8x256xf32>
    %416 = math.exp %415 : vector<8x256xf32>
    %cst_137 = arith.constant 1.000000e+00 : f32
    %417 = vector.broadcast %cst_137 : f32 to vector<8x256xf32>
    %418 = arith.addf %417, %416 : vector<8x256xf32>
    %419 = math.log %418 : vector<8x256xf32>
    %420 = arith.addf %412, %419 : vector<8x256xf32>
    %421 = vector.broadcast %403 : f32 to vector<8x256xf32>
    %422 = arith.subf %336, %421 : vector<8x256xf32>
    %cst_138 = arith.constant 0.00999999977 : f32
    %423 = vector.broadcast %cst_138 : f32 to vector<8x256xf32>
    %424 = arith.mulf %423, %422 : vector<8x256xf32>
    %425 = vector.broadcast %406 : f32 to vector<8x256xf32>
    %426 = arith.addf %424, %425 : vector<8x256xf32>
    %427 = arith.addf %426, %420 : vector<8x256xf32>
    %428 = arith.truncf %350 : vector<8x256xf32> to vector<8x256xbf16>
    %c0_139 = arith.constant 0 : index
    %c0_140 = arith.constant 0 : index
    %429 = vector.load %arg3[%c0_139, %c0_140] : memref<256x256xbf16, #tpu.memory_space<vmem>>, vector<256x256xbf16>
    %cst_141 = arith.constant dense<0.000000e+00> : vector<8x256xf32>
    %430 = tpu.matmul %428, %429, %cst_141 {dimension_numbers = #tpu.dot_dimension_numbers<[1], [0], [0], [1], [0, 0, 1, 1], [], []>} : vector<8x256xbf16>, vector<256x256xbf16>, vector<8x256xf32> -> vector<8x256xf32>
    %431 = arith.addf %430, %11 : vector<8x256xf32>
    %cst_142 = arith.constant 5.000000e-01 : f32
    %432 = vector.broadcast %cst_142 : f32 to vector<8x256xf32>
    %433 = arith.mulf %136, %432 : vector<8x256xf32>
    %434 = arith.addf %433, %431 : vector<8x256xf32>
    %cst_143 = arith.constant 7.500000e-01 : f32
    %435 = vector.broadcast %cst_143 : f32 to vector<8x256xf32>
    %436 = arith.mulf %142, %435 : vector<8x256xf32>
    %cst_144 = arith.constant 1.000000e+00 : f32
    %437 = vector.broadcast %cst_144 : f32 to vector<8x256xf32>
    %438 = arith.subf %437, %156 : vector<8x256xf32>
    %439 = arith.mulf %436, %438 : vector<8x256xf32>
    %440 = arith.addf %439, %434 : vector<8x256xf32>
    %441 = arith.subf %142, %440 : vector<8x256xf32>
    %cst_145 = arith.constant 0.333333343 : f32
    %442 = vector.broadcast %cst_145 : f32 to vector<8x256xf32>
    %443 = arith.mulf %441, %442 : vector<8x256xf32>
    %444 = math.exp %443 : vector<8x256xf32>
    %cst_146 = arith.constant 1.000000e+00 : f32
    %445 = vector.broadcast %cst_146 : f32 to vector<8x256xf32>
    %446 = arith.subf %444, %445 : vector<8x256xf32>
    %cst_147 = arith.constant 5.000000e-01 : f32
    %447 = vector.broadcast %cst_147 : f32 to vector<8x256xf32>
    %448 = arith.mulf %447, %233 : vector<8x256xf32>
    %cst_148 = arith.constant 5.000000e-01 : f32
    %449 = vector.broadcast %cst_148 : f32 to vector<8x256xf32>
    %450 = arith.mulf %449, %446 : vector<8x256xf32>
    %451 = arith.addf %448, %450 : vector<8x256xf32>
    %452 = arith.cmpf ogt, %440, %451 : vector<8x256xf32>
    %453 = arith.extui %452 : vector<8x256xi1> to vector<8x256xi32>
    %454 = arith.sitofp %453 : vector<8x256xi32> to vector<8x256xf32>
    %cst_149 = arith.constant 0.000000e+00 : f32
    %455 = vector.shape_cast %2 : vector<8x1xi1> to vector<8x1xi1>
    %456 = vector.broadcast %455 : vector<8x1xi1> to vector<8x256xi1>
    %457 = vector.broadcast %cst_149 : f32 to vector<8x256xf32>
    %458 = arith.select %456, %440, %457 : vector<8x256xi1>, vector<8x256xf32>
    %459 = vector.shape_cast %458 : vector<8x256xf32> to vector<1x8x256xf32>
    %cst_150 = arith.constant dense<0.000000e+00> : vector<1xf32>
    %460 = vector.multi_reduction <add>, %459, %cst_150 [1, 2] : vector<1x8x256xf32> to vector<1xf32>
    %461 = vector.shape_cast %460 : vector<1xf32> to vector<1x1x1xf32>
    %462 = vector.extract %461[0, 0, 0] : f32 from vector<1x1x1xf32>
    %cst_151 = arith.constant 0.001953125 : f32
    %463 = arith.mulf %462, %cst_151 : f32
    %cst_152 = arith.constant 0xFF800000 : f32
    %464 = vector.shape_cast %2 : vector<8x1xi1> to vector<8x1xi1>
    %465 = vector.broadcast %464 : vector<8x1xi1> to vector<8x256xi1>
    %466 = vector.broadcast %cst_152 : f32 to vector<8x256xf32>
    %467 = arith.select %465, %440, %466 : vector<8x256xi1>, vector<8x256xf32>
    %468 = vector.shape_cast %467 : vector<8x256xf32> to vector<1x8x256xf32>
    %cst_153 = arith.constant dense<0xFF800000> : vector<1xf32>
    %469 = vector.multi_reduction <maximumf>, %468, %cst_153 [1, 2] : vector<1x8x256xf32> to vector<1xf32>
    %470 = vector.shape_cast %469 : vector<1xf32> to vector<1x1x1xf32>
    %471 = vector.extract %470[0, 0, 0] : f32 from vector<1x1x1xf32>
    %cst_154 = arith.constant 0x7F800000 : f32
    %472 = vector.shape_cast %2 : vector<8x1xi1> to vector<8x1xi1>
    %473 = vector.broadcast %472 : vector<8x1xi1> to vector<8x256xi1>
    %474 = vector.broadcast %cst_154 : f32 to vector<8x256xf32>
    %475 = arith.select %473, %440, %474 : vector<8x256xi1>, vector<8x256xf32>
    %476 = vector.shape_cast %475 : vector<8x256xf32> to vector<1x8x256xf32>
    %cst_155 = arith.constant dense<0x7F800000> : vector<1xf32>
    %477 = vector.multi_reduction <minimumf>, %476, %cst_155 [1, 2] : vector<1x8x256xf32> to vector<1xf32>
    %478 = vector.shape_cast %477 : vector<1xf32> to vector<1x1x1xf32>
    %479 = vector.extract %478[0, 0, 0] : f32 from vector<1x1x1xf32>
    %cst_156 = arith.constant 0.000000e+00 : f32
    %480 = vector.shape_cast %2 : vector<8x1xi1> to vector<8x1xi1>
    %481 = vector.broadcast %480 : vector<8x1xi1> to vector<8x256xi1>
    %482 = vector.broadcast %cst_156 : f32 to vector<8x256xf32>
    %483 = arith.select %481, %451, %482 : vector<8x256xi1>, vector<8x256xf32>
    %484 = vector.shape_cast %483 : vector<8x256xf32> to vector<1x8x256xf32>
    %cst_157 = arith.constant dense<0.000000e+00> : vector<1xf32>
    %485 = vector.multi_reduction <add>, %484, %cst_157 [1, 2] : vector<1x8x256xf32> to vector<1xf32>
    %486 = vector.shape_cast %485 : vector<1xf32> to vector<1x1x1xf32>
    %487 = vector.extract %486[0, 0, 0] : f32 from vector<1x1x1xf32>
    %cst_158 = arith.constant 0.001953125 : f32
    %488 = arith.mulf %487, %cst_158 : f32
    %cst_159 = arith.constant 0xFF800000 : f32
    %489 = vector.shape_cast %2 : vector<8x1xi1> to vector<8x1xi1>
    %490 = vector.broadcast %489 : vector<8x1xi1> to vector<8x256xi1>
    %491 = vector.broadcast %cst_159 : f32 to vector<8x256xf32>
    %492 = arith.select %490, %451, %491 : vector<8x256xi1>, vector<8x256xf32>
    %493 = vector.shape_cast %492 : vector<8x256xf32> to vector<1x8x256xf32>
    %cst_160 = arith.constant dense<0xFF800000> : vector<1xf32>
    %494 = vector.multi_reduction <maximumf>, %493, %cst_160 [1, 2] : vector<1x8x256xf32> to vector<1xf32>
    %495 = vector.shape_cast %494 : vector<1xf32> to vector<1x1x1xf32>
    %496 = vector.extract %495[0, 0, 0] : f32 from vector<1x1x1xf32>
    %cst_161 = arith.constant 0x7F800000 : f32
    %497 = vector.shape_cast %2 : vector<8x1xi1> to vector<8x1xi1>
    %498 = vector.broadcast %497 : vector<8x1xi1> to vector<8x256xi1>
    %499 = vector.broadcast %cst_161 : f32 to vector<8x256xf32>
    %500 = arith.select %498, %451, %499 : vector<8x256xi1>, vector<8x256xf32>
    %501 = vector.shape_cast %500 : vector<8x256xf32> to vector<1x8x256xf32>
    %cst_162 = arith.constant dense<0x7F800000> : vector<1xf32>
    %502 = vector.multi_reduction <minimumf>, %501, %cst_162 [1, 2] : vector<1x8x256xf32> to vector<1xf32>
    %503 = vector.shape_cast %502 : vector<1xf32> to vector<1x1x1xf32>
    %504 = vector.extract %503[0, 0, 0] : f32 from vector<1x1x1xf32>
    %505 = arith.subf %471, %479 : f32
    %cst_163 = arith.constant 2.000000e-01 : f32
    %506 = arith.mulf %cst_163, %505 : f32
    %507 = arith.subf %463, %506 : f32
    %508 = arith.subf %496, %504 : f32
    %cst_164 = arith.constant 2.000000e-01 : f32
    %509 = arith.mulf %cst_164, %508 : f32
    %510 = arith.subf %488, %509 : f32
    %511 = vector.broadcast %507 : f32 to vector<8x256xf32>
    %512 = arith.subf %440, %511 : vector<8x256xf32>
    %cst_165 = arith.constant 0.166666672 : f32
    %513 = vector.broadcast %cst_165 : f32 to vector<8x256xf32>
    %514 = arith.mulf %512, %513 : vector<8x256xf32>
    %cst_166 = arith.constant 0.000000e+00 : f32
    %515 = vector.broadcast %cst_166 : f32 to vector<8x256xf32>
    %516 = arith.maximumf %514, %515 : vector<8x256xf32>
    %517 = math.absf %514 : vector<8x256xf32>
    %cst_167 = arith.constant 0.000000e+00 : f32
    %518 = vector.broadcast %cst_167 : f32 to vector<8x256xf32>
    %519 = arith.subf %518, %517 : vector<8x256xf32>
    %520 = math.exp %519 : vector<8x256xf32>
    %cst_168 = arith.constant 1.000000e+00 : f32
    %521 = vector.broadcast %cst_168 : f32 to vector<8x256xf32>
    %522 = arith.addf %521, %520 : vector<8x256xf32>
    %523 = math.log %522 : vector<8x256xf32>
    %524 = arith.addf %516, %523 : vector<8x256xf32>
    %525 = vector.broadcast %507 : f32 to vector<8x256xf32>
    %526 = arith.subf %440, %525 : vector<8x256xf32>
    %cst_169 = arith.constant 0.00999999977 : f32
    %527 = vector.broadcast %cst_169 : f32 to vector<8x256xf32>
    %528 = arith.mulf %527, %526 : vector<8x256xf32>
    %529 = vector.broadcast %510 : f32 to vector<8x256xf32>
    %530 = arith.addf %528, %529 : vector<8x256xf32>
    %531 = arith.addf %530, %524 : vector<8x256xf32>
    %532 = arith.truncf %454 : vector<8x256xf32> to vector<8x256xbf16>
    %c0_170 = arith.constant 0 : index
    %c0_171 = arith.constant 0 : index
    %533 = vector.load %arg5[%c0_170, %c0_171] : memref<256x128xbf16, #tpu.memory_space<vmem>>, vector<256x128xbf16>
    %cst_172 = arith.constant dense<0.000000e+00> : vector<8x128xf32>
    %534 = tpu.matmul %532, %533, %cst_172 {dimension_numbers = #tpu.dot_dimension_numbers<[1], [0], [0], [1], [0, 0, 1, 1], [], []>} : vector<8x256xbf16>, vector<256x128xbf16>, vector<8x128xf32> -> vector<8x128xf32>
    %535 = arith.addf %534, %14 : vector<8x128xf32>
    %cst_173 = arith.constant 5.000000e-01 : f32
    %536 = vector.broadcast %cst_173 : f32 to vector<8x128xf32>
    %537 = arith.mulf %240, %536 : vector<8x128xf32>
    %538 = arith.addf %537, %535 : vector<8x128xf32>
    %cst_174 = arith.constant 7.500000e-01 : f32
    %539 = vector.broadcast %cst_174 : f32 to vector<8x128xf32>
    %540 = arith.mulf %246, %539 : vector<8x128xf32>
    %cst_175 = arith.constant 1.000000e+00 : f32
    %541 = vector.broadcast %cst_175 : f32 to vector<8x128xf32>
    %542 = arith.subf %541, %260 : vector<8x128xf32>
    %543 = arith.mulf %540, %542 : vector<8x128xf32>
    %544 = arith.addf %543, %538 : vector<8x128xf32>
    %545 = arith.subf %246, %544 : vector<8x128xf32>
    %cst_176 = arith.constant 0.333333343 : f32
    %546 = vector.broadcast %cst_176 : f32 to vector<8x128xf32>
    %547 = arith.mulf %545, %546 : vector<8x128xf32>
    %548 = math.exp %547 : vector<8x128xf32>
    %cst_177 = arith.constant 1.000000e+00 : f32
    %549 = vector.broadcast %cst_177 : f32 to vector<8x128xf32>
    %550 = arith.subf %548, %549 : vector<8x128xf32>
    %cst_178 = arith.constant 5.000000e-01 : f32
    %551 = vector.broadcast %cst_178 : f32 to vector<8x128xf32>
    %552 = arith.mulf %551, %325 : vector<8x128xf32>
    %cst_179 = arith.constant 5.000000e-01 : f32
    %553 = vector.broadcast %cst_179 : f32 to vector<8x128xf32>
    %554 = arith.mulf %553, %550 : vector<8x128xf32>
    %555 = arith.addf %552, %554 : vector<8x128xf32>
    %556 = arith.cmpf ogt, %544, %555 : vector<8x128xf32>
    %557 = arith.extui %556 : vector<8x128xi1> to vector<8x128xi32>
    %558 = arith.sitofp %557 : vector<8x128xi32> to vector<8x128xf32>
    %cst_180 = arith.constant 0.000000e+00 : f32
    %559 = vector.broadcast %cst_180 : f32 to vector<8x128xf32>
    %560 = arith.select %8, %544, %559 : vector<8x128xi1>, vector<8x128xf32>
    %561 = vector.shape_cast %560 : vector<8x128xf32> to vector<1x8x128xf32>
    %cst_181 = arith.constant dense<0.000000e+00> : vector<1xf32>
    %562 = vector.multi_reduction <add>, %561, %cst_181 [1, 2] : vector<1x8x128xf32> to vector<1xf32>
    %563 = vector.shape_cast %562 : vector<1xf32> to vector<1x1x1xf32>
    %564 = vector.extract %563[0, 0, 0] : f32 from vector<1x1x1xf32>
    %cst_182 = arith.constant 6.250000e-03 : f32
    %565 = arith.mulf %564, %cst_182 : f32
    %cst_183 = arith.constant 0xFF800000 : f32
    %566 = vector.broadcast %cst_183 : f32 to vector<8x128xf32>
    %567 = arith.select %8, %544, %566 : vector<8x128xi1>, vector<8x128xf32>
    %568 = vector.shape_cast %567 : vector<8x128xf32> to vector<1x8x128xf32>
    %cst_184 = arith.constant dense<0xFF800000> : vector<1xf32>
    %569 = vector.multi_reduction <maximumf>, %568, %cst_184 [1, 2] : vector<1x8x128xf32> to vector<1xf32>
    %570 = vector.shape_cast %569 : vector<1xf32> to vector<1x1x1xf32>
    %571 = vector.extract %570[0, 0, 0] : f32 from vector<1x1x1xf32>
    %cst_185 = arith.constant 0x7F800000 : f32
    %572 = vector.broadcast %cst_185 : f32 to vector<8x128xf32>
    %573 = arith.select %8, %544, %572 : vector<8x128xi1>, vector<8x128xf32>
    %574 = vector.shape_cast %573 : vector<8x128xf32> to vector<1x8x128xf32>
    %cst_186 = arith.constant dense<0x7F800000> : vector<1xf32>
    %575 = vector.multi_reduction <minimumf>, %574, %cst_186 [1, 2] : vector<1x8x128xf32> to vector<1xf32>
    %576 = vector.shape_cast %575 : vector<1xf32> to vector<1x1x1xf32>
    %577 = vector.extract %576[0, 0, 0] : f32 from vector<1x1x1xf32>
    %cst_187 = arith.constant 0.000000e+00 : f32
    %578 = vector.broadcast %cst_187 : f32 to vector<8x128xf32>
    %579 = arith.select %8, %555, %578 : vector<8x128xi1>, vector<8x128xf32>
    %580 = vector.shape_cast %579 : vector<8x128xf32> to vector<1x8x128xf32>
    %cst_188 = arith.constant dense<0.000000e+00> : vector<1xf32>
    %581 = vector.multi_reduction <add>, %580, %cst_188 [1, 2] : vector<1x8x128xf32> to vector<1xf32>
    %582 = vector.shape_cast %581 : vector<1xf32> to vector<1x1x1xf32>
    %583 = vector.extract %582[0, 0, 0] : f32 from vector<1x1x1xf32>
    %cst_189 = arith.constant 6.250000e-03 : f32
    %584 = arith.mulf %583, %cst_189 : f32
    %cst_190 = arith.constant 0xFF800000 : f32
    %585 = vector.broadcast %cst_190 : f32 to vector<8x128xf32>
    %586 = arith.select %8, %555, %585 : vector<8x128xi1>, vector<8x128xf32>
    %587 = vector.shape_cast %586 : vector<8x128xf32> to vector<1x8x128xf32>
    %cst_191 = arith.constant dense<0xFF800000> : vector<1xf32>
    %588 = vector.multi_reduction <maximumf>, %587, %cst_191 [1, 2] : vector<1x8x128xf32> to vector<1xf32>
    %589 = vector.shape_cast %588 : vector<1xf32> to vector<1x1x1xf32>
    %590 = vector.extract %589[0, 0, 0] : f32 from vector<1x1x1xf32>
    %cst_192 = arith.constant 0x7F800000 : f32
    %591 = vector.broadcast %cst_192 : f32 to vector<8x128xf32>
    %592 = arith.select %8, %555, %591 : vector<8x128xi1>, vector<8x128xf32>
    %593 = vector.shape_cast %592 : vector<8x128xf32> to vector<1x8x128xf32>
    %cst_193 = arith.constant dense<0x7F800000> : vector<1xf32>
    %594 = vector.multi_reduction <minimumf>, %593, %cst_193 [1, 2] : vector<1x8x128xf32> to vector<1xf32>
    %595 = vector.shape_cast %594 : vector<1xf32> to vector<1x1x1xf32>
    %596 = vector.extract %595[0, 0, 0] : f32 from vector<1x1x1xf32>
    %597 = arith.subf %571, %577 : f32
    %cst_194 = arith.constant 2.000000e-01 : f32
    %598 = arith.mulf %cst_194, %597 : f32
    %599 = arith.subf %565, %598 : f32
    %600 = arith.subf %590, %596 : f32
    %cst_195 = arith.constant 2.000000e-01 : f32
    %601 = arith.mulf %cst_195, %600 : f32
    %602 = arith.subf %584, %601 : f32
    %603 = vector.broadcast %599 : f32 to vector<8x128xf32>
    %604 = arith.subf %544, %603 : vector<8x128xf32>
    %cst_196 = arith.constant 0.166666672 : f32
    %605 = vector.broadcast %cst_196 : f32 to vector<8x128xf32>
    %606 = arith.mulf %604, %605 : vector<8x128xf32>
    %cst_197 = arith.constant 0.000000e+00 : f32
    %607 = vector.broadcast %cst_197 : f32 to vector<8x128xf32>
    %608 = arith.maximumf %606, %607 : vector<8x128xf32>
    %609 = math.absf %606 : vector<8x128xf32>
    %cst_198 = arith.constant 0.000000e+00 : f32
    %610 = vector.broadcast %cst_198 : f32 to vector<8x128xf32>
    %611 = arith.subf %610, %609 : vector<8x128xf32>
    %612 = math.exp %611 : vector<8x128xf32>
    %cst_199 = arith.constant 1.000000e+00 : f32
    %613 = vector.broadcast %cst_199 : f32 to vector<8x128xf32>
    %614 = arith.addf %613, %612 : vector<8x128xf32>
    %615 = math.log %614 : vector<8x128xf32>
    %616 = arith.addf %608, %615 : vector<8x128xf32>
    %617 = vector.broadcast %599 : f32 to vector<8x128xf32>
    %618 = arith.subf %544, %617 : vector<8x128xf32>
    %cst_200 = arith.constant 0.00999999977 : f32
    %619 = vector.broadcast %cst_200 : f32 to vector<8x128xf32>
    %620 = arith.mulf %619, %618 : vector<8x128xf32>
    %621 = vector.broadcast %602 : f32 to vector<8x128xf32>
    %622 = arith.addf %620, %621 : vector<8x128xf32>
    %623 = arith.addf %622, %616 : vector<8x128xf32>
    %624 = arith.addf %326, %558 : vector<8x128xf32>
    %c16 = arith.constant 16 : index
    %c0_201 = arith.constant 0 : index
    %625 = vector.load %arg8[%c16, %c0_201] : memref<48x256xf32, #tpu.memory_space<vmem>>, vector<8x256xf32>
    %cst_202 = arith.constant 5.000000e-01 : f32
    %626 = vector.broadcast %cst_202 : f32 to vector<8x256xf32>
    %627 = arith.mulf %330, %626 : vector<8x256xf32>
    %628 = arith.addf %627, %625 : vector<8x256xf32>
    %cst_203 = arith.constant 7.500000e-01 : f32
    %629 = vector.broadcast %cst_203 : f32 to vector<8x256xf32>
    %630 = arith.mulf %336, %629 : vector<8x256xf32>
    %cst_204 = arith.constant 1.000000e+00 : f32
    %631 = vector.broadcast %cst_204 : f32 to vector<8x256xf32>
    %632 = arith.subf %631, %350 : vector<8x256xf32>
    %633 = arith.mulf %630, %632 : vector<8x256xf32>
    %634 = arith.addf %633, %628 : vector<8x256xf32>
    %635 = arith.subf %336, %634 : vector<8x256xf32>
    %cst_205 = arith.constant 0.333333343 : f32
    %636 = vector.broadcast %cst_205 : f32 to vector<8x256xf32>
    %637 = arith.mulf %635, %636 : vector<8x256xf32>
    %638 = math.exp %637 : vector<8x256xf32>
    %cst_206 = arith.constant 1.000000e+00 : f32
    %639 = vector.broadcast %cst_206 : f32 to vector<8x256xf32>
    %640 = arith.subf %638, %639 : vector<8x256xf32>
    %cst_207 = arith.constant 5.000000e-01 : f32
    %641 = vector.broadcast %cst_207 : f32 to vector<8x256xf32>
    %642 = arith.mulf %641, %427 : vector<8x256xf32>
    %cst_208 = arith.constant 5.000000e-01 : f32
    %643 = vector.broadcast %cst_208 : f32 to vector<8x256xf32>
    %644 = arith.mulf %643, %640 : vector<8x256xf32>
    %645 = arith.addf %642, %644 : vector<8x256xf32>
    %646 = arith.cmpf ogt, %634, %645 : vector<8x256xf32>
    %647 = arith.extui %646 : vector<8x256xi1> to vector<8x256xi32>
    %648 = arith.sitofp %647 : vector<8x256xi32> to vector<8x256xf32>
    %cst_209 = arith.constant 0.000000e+00 : f32
    %649 = vector.shape_cast %2 : vector<8x1xi1> to vector<8x1xi1>
    %650 = vector.broadcast %649 : vector<8x1xi1> to vector<8x256xi1>
    %651 = vector.broadcast %cst_209 : f32 to vector<8x256xf32>
    %652 = arith.select %650, %634, %651 : vector<8x256xi1>, vector<8x256xf32>
    %653 = vector.shape_cast %652 : vector<8x256xf32> to vector<1x8x256xf32>
    %cst_210 = arith.constant dense<0.000000e+00> : vector<1xf32>
    %654 = vector.multi_reduction <add>, %653, %cst_210 [1, 2] : vector<1x8x256xf32> to vector<1xf32>
    %655 = vector.shape_cast %654 : vector<1xf32> to vector<1x1x1xf32>
    %656 = vector.extract %655[0, 0, 0] : f32 from vector<1x1x1xf32>
    %cst_211 = arith.constant 0.001953125 : f32
    %657 = arith.mulf %656, %cst_211 : f32
    %cst_212 = arith.constant 0xFF800000 : f32
    %658 = vector.shape_cast %2 : vector<8x1xi1> to vector<8x1xi1>
    %659 = vector.broadcast %658 : vector<8x1xi1> to vector<8x256xi1>
    %660 = vector.broadcast %cst_212 : f32 to vector<8x256xf32>
    %661 = arith.select %659, %634, %660 : vector<8x256xi1>, vector<8x256xf32>
    %662 = vector.shape_cast %661 : vector<8x256xf32> to vector<1x8x256xf32>
    %cst_213 = arith.constant dense<0xFF800000> : vector<1xf32>
    %663 = vector.multi_reduction <maximumf>, %662, %cst_213 [1, 2] : vector<1x8x256xf32> to vector<1xf32>
    %664 = vector.shape_cast %663 : vector<1xf32> to vector<1x1x1xf32>
    %665 = vector.extract %664[0, 0, 0] : f32 from vector<1x1x1xf32>
    %cst_214 = arith.constant 0x7F800000 : f32
    %666 = vector.shape_cast %2 : vector<8x1xi1> to vector<8x1xi1>
    %667 = vector.broadcast %666 : vector<8x1xi1> to vector<8x256xi1>
    %668 = vector.broadcast %cst_214 : f32 to vector<8x256xf32>
    %669 = arith.select %667, %634, %668 : vector<8x256xi1>, vector<8x256xf32>
    %670 = vector.shape_cast %669 : vector<8x256xf32> to vector<1x8x256xf32>
    %cst_215 = arith.constant dense<0x7F800000> : vector<1xf32>
    %671 = vector.multi_reduction <minimumf>, %670, %cst_215 [1, 2] : vector<1x8x256xf32> to vector<1xf32>
    %672 = vector.shape_cast %671 : vector<1xf32> to vector<1x1x1xf32>
    %673 = vector.extract %672[0, 0, 0] : f32 from vector<1x1x1xf32>
    %cst_216 = arith.constant 0.000000e+00 : f32
    %674 = vector.shape_cast %2 : vector<8x1xi1> to vector<8x1xi1>
    %675 = vector.broadcast %674 : vector<8x1xi1> to vector<8x256xi1>
    %676 = vector.broadcast %cst_216 : f32 to vector<8x256xf32>
    %677 = arith.select %675, %645, %676 : vector<8x256xi1>, vector<8x256xf32>
    %678 = vector.shape_cast %677 : vector<8x256xf32> to vector<1x8x256xf32>
    %cst_217 = arith.constant dense<0.000000e+00> : vector<1xf32>
    %679 = vector.multi_reduction <add>, %678, %cst_217 [1, 2] : vector<1x8x256xf32> to vector<1xf32>
    %680 = vector.shape_cast %679 : vector<1xf32> to vector<1x1x1xf32>
    %681 = vector.extract %680[0, 0, 0] : f32 from vector<1x1x1xf32>
    %cst_218 = arith.constant 0.001953125 : f32
    %682 = arith.mulf %681, %cst_218 : f32
    %cst_219 = arith.constant 0xFF800000 : f32
    %683 = vector.shape_cast %2 : vector<8x1xi1> to vector<8x1xi1>
    %684 = vector.broadcast %683 : vector<8x1xi1> to vector<8x256xi1>
    %685 = vector.broadcast %cst_219 : f32 to vector<8x256xf32>
    %686 = arith.select %684, %645, %685 : vector<8x256xi1>, vector<8x256xf32>
    %687 = vector.shape_cast %686 : vector<8x256xf32> to vector<1x8x256xf32>
    %cst_220 = arith.constant dense<0xFF800000> : vector<1xf32>
    %688 = vector.multi_reduction <maximumf>, %687, %cst_220 [1, 2] : vector<1x8x256xf32> to vector<1xf32>
    %689 = vector.shape_cast %688 : vector<1xf32> to vector<1x1x1xf32>
    %690 = vector.extract %689[0, 0, 0] : f32 from vector<1x1x1xf32>
    %cst_221 = arith.constant 0x7F800000 : f32
    %691 = vector.shape_cast %2 : vector<8x1xi1> to vector<8x1xi1>
    %692 = vector.broadcast %691 : vector<8x1xi1> to vector<8x256xi1>
    %693 = vector.broadcast %cst_221 : f32 to vector<8x256xf32>
    %694 = arith.select %692, %645, %693 : vector<8x256xi1>, vector<8x256xf32>
    %695 = vector.shape_cast %694 : vector<8x256xf32> to vector<1x8x256xf32>
    %cst_222 = arith.constant dense<0x7F800000> : vector<1xf32>
    %696 = vector.multi_reduction <minimumf>, %695, %cst_222 [1, 2] : vector<1x8x256xf32> to vector<1xf32>
    %697 = vector.shape_cast %696 : vector<1xf32> to vector<1x1x1xf32>
    %698 = vector.extract %697[0, 0, 0] : f32 from vector<1x1x1xf32>
    %699 = arith.subf %665, %673 : f32
    %cst_223 = arith.constant 2.000000e-01 : f32
    %700 = arith.mulf %cst_223, %699 : f32
    %701 = arith.subf %657, %700 : f32
    %702 = arith.subf %690, %698 : f32
    %cst_224 = arith.constant 2.000000e-01 : f32
    %703 = arith.mulf %cst_224, %702 : f32
    %704 = arith.subf %682, %703 : f32
    %705 = vector.broadcast %701 : f32 to vector<8x256xf32>
    %706 = arith.subf %634, %705 : vector<8x256xf32>
    %cst_225 = arith.constant 0.166666672 : f32
    %707 = vector.broadcast %cst_225 : f32 to vector<8x256xf32>
    %708 = arith.mulf %706, %707 : vector<8x256xf32>
    %cst_226 = arith.constant 0.000000e+00 : f32
    %709 = vector.broadcast %cst_226 : f32 to vector<8x256xf32>
    %710 = arith.maximumf %708, %709 : vector<8x256xf32>
    %711 = math.absf %708 : vector<8x256xf32>
    %cst_227 = arith.constant 0.000000e+00 : f32
    %712 = vector.broadcast %cst_227 : f32 to vector<8x256xf32>
    %713 = arith.subf %712, %711 : vector<8x256xf32>
    %714 = math.exp %713 : vector<8x256xf32>
    %cst_228 = arith.constant 1.000000e+00 : f32
    %715 = vector.broadcast %cst_228 : f32 to vector<8x256xf32>
    %716 = arith.addf %715, %714 : vector<8x256xf32>
    %717 = math.log %716 : vector<8x256xf32>
    %718 = arith.addf %710, %717 : vector<8x256xf32>
    %719 = vector.broadcast %701 : f32 to vector<8x256xf32>
    %720 = arith.subf %634, %719 : vector<8x256xf32>
    %cst_229 = arith.constant 0.00999999977 : f32
    %721 = vector.broadcast %cst_229 : f32 to vector<8x256xf32>
    %722 = arith.mulf %721, %720 : vector<8x256xf32>
    %723 = vector.broadcast %704 : f32 to vector<8x256xf32>
    %724 = arith.addf %722, %723 : vector<8x256xf32>
    %725 = arith.addf %724, %718 : vector<8x256xf32>
    %726 = arith.truncf %648 : vector<8x256xf32> to vector<8x256xbf16>
    %c0_230 = arith.constant 0 : index
    %c0_231 = arith.constant 0 : index
    %727 = vector.load %arg3[%c0_230, %c0_231] : memref<256x256xbf16, #tpu.memory_space<vmem>>, vector<256x256xbf16>
    %cst_232 = arith.constant dense<0.000000e+00> : vector<8x256xf32>
    %728 = tpu.matmul %726, %727, %cst_232 {dimension_numbers = #tpu.dot_dimension_numbers<[1], [0], [0], [1], [0, 0, 1, 1], [], []>} : vector<8x256xbf16>, vector<256x256xbf16>, vector<8x256xf32> -> vector<8x256xf32>
    %729 = arith.addf %728, %11 : vector<8x256xf32>
    %cst_233 = arith.constant 5.000000e-01 : f32
    %730 = vector.broadcast %cst_233 : f32 to vector<8x256xf32>
    %731 = arith.mulf %434, %730 : vector<8x256xf32>
    %732 = arith.addf %731, %729 : vector<8x256xf32>
    %cst_234 = arith.constant 7.500000e-01 : f32
    %733 = vector.broadcast %cst_234 : f32 to vector<8x256xf32>
    %734 = arith.mulf %440, %733 : vector<8x256xf32>
    %cst_235 = arith.constant 1.000000e+00 : f32
    %735 = vector.broadcast %cst_235 : f32 to vector<8x256xf32>
    %736 = arith.subf %735, %454 : vector<8x256xf32>
    %737 = arith.mulf %734, %736 : vector<8x256xf32>
    %738 = arith.addf %737, %732 : vector<8x256xf32>
    %739 = arith.subf %440, %738 : vector<8x256xf32>
    %cst_236 = arith.constant 0.333333343 : f32
    %740 = vector.broadcast %cst_236 : f32 to vector<8x256xf32>
    %741 = arith.mulf %739, %740 : vector<8x256xf32>
    %742 = math.exp %741 : vector<8x256xf32>
    %cst_237 = arith.constant 1.000000e+00 : f32
    %743 = vector.broadcast %cst_237 : f32 to vector<8x256xf32>
    %744 = arith.subf %742, %743 : vector<8x256xf32>
    %cst_238 = arith.constant 5.000000e-01 : f32
    %745 = vector.broadcast %cst_238 : f32 to vector<8x256xf32>
    %746 = arith.mulf %745, %531 : vector<8x256xf32>
    %cst_239 = arith.constant 5.000000e-01 : f32
    %747 = vector.broadcast %cst_239 : f32 to vector<8x256xf32>
    %748 = arith.mulf %747, %744 : vector<8x256xf32>
    %749 = arith.addf %746, %748 : vector<8x256xf32>
    %750 = arith.cmpf ogt, %738, %749 : vector<8x256xf32>
    %751 = arith.extui %750 : vector<8x256xi1> to vector<8x256xi32>
    %752 = arith.sitofp %751 : vector<8x256xi32> to vector<8x256xf32>
    %cst_240 = arith.constant 0.000000e+00 : f32
    %753 = vector.shape_cast %2 : vector<8x1xi1> to vector<8x1xi1>
    %754 = vector.broadcast %753 : vector<8x1xi1> to vector<8x256xi1>
    %755 = vector.broadcast %cst_240 : f32 to vector<8x256xf32>
    %756 = arith.select %754, %738, %755 : vector<8x256xi1>, vector<8x256xf32>
    %757 = vector.shape_cast %756 : vector<8x256xf32> to vector<1x8x256xf32>
    %cst_241 = arith.constant dense<0.000000e+00> : vector<1xf32>
    %758 = vector.multi_reduction <add>, %757, %cst_241 [1, 2] : vector<1x8x256xf32> to vector<1xf32>
    %759 = vector.shape_cast %758 : vector<1xf32> to vector<1x1x1xf32>
    %760 = vector.extract %759[0, 0, 0] : f32 from vector<1x1x1xf32>
    %cst_242 = arith.constant 0.001953125 : f32
    %761 = arith.mulf %760, %cst_242 : f32
    %cst_243 = arith.constant 0xFF800000 : f32
    %762 = vector.shape_cast %2 : vector<8x1xi1> to vector<8x1xi1>
    %763 = vector.broadcast %762 : vector<8x1xi1> to vector<8x256xi1>
    %764 = vector.broadcast %cst_243 : f32 to vector<8x256xf32>
    %765 = arith.select %763, %738, %764 : vector<8x256xi1>, vector<8x256xf32>
    %766 = vector.shape_cast %765 : vector<8x256xf32> to vector<1x8x256xf32>
    %cst_244 = arith.constant dense<0xFF800000> : vector<1xf32>
    %767 = vector.multi_reduction <maximumf>, %766, %cst_244 [1, 2] : vector<1x8x256xf32> to vector<1xf32>
    %768 = vector.shape_cast %767 : vector<1xf32> to vector<1x1x1xf32>
    %769 = vector.extract %768[0, 0, 0] : f32 from vector<1x1x1xf32>
    %cst_245 = arith.constant 0x7F800000 : f32
    %770 = vector.shape_cast %2 : vector<8x1xi1> to vector<8x1xi1>
    %771 = vector.broadcast %770 : vector<8x1xi1> to vector<8x256xi1>
    %772 = vector.broadcast %cst_245 : f32 to vector<8x256xf32>
    %773 = arith.select %771, %738, %772 : vector<8x256xi1>, vector<8x256xf32>
    %774 = vector.shape_cast %773 : vector<8x256xf32> to vector<1x8x256xf32>
    %cst_246 = arith.constant dense<0x7F800000> : vector<1xf32>
    %775 = vector.multi_reduction <minimumf>, %774, %cst_246 [1, 2] : vector<1x8x256xf32> to vector<1xf32>
    %776 = vector.shape_cast %775 : vector<1xf32> to vector<1x1x1xf32>
    %777 = vector.extract %776[0, 0, 0] : f32 from vector<1x1x1xf32>
    %cst_247 = arith.constant 0.000000e+00 : f32
    %778 = vector.shape_cast %2 : vector<8x1xi1> to vector<8x1xi1>
    %779 = vector.broadcast %778 : vector<8x1xi1> to vector<8x256xi1>
    %780 = vector.broadcast %cst_247 : f32 to vector<8x256xf32>
    %781 = arith.select %779, %749, %780 : vector<8x256xi1>, vector<8x256xf32>
    %782 = vector.shape_cast %781 : vector<8x256xf32> to vector<1x8x256xf32>
    %cst_248 = arith.constant dense<0.000000e+00> : vector<1xf32>
    %783 = vector.multi_reduction <add>, %782, %cst_248 [1, 2] : vector<1x8x256xf32> to vector<1xf32>
    %784 = vector.shape_cast %783 : vector<1xf32> to vector<1x1x1xf32>
    %785 = vector.extract %784[0, 0, 0] : f32 from vector<1x1x1xf32>
    %cst_249 = arith.constant 0.001953125 : f32
    %786 = arith.mulf %785, %cst_249 : f32
    %cst_250 = arith.constant 0xFF800000 : f32
    %787 = vector.shape_cast %2 : vector<8x1xi1> to vector<8x1xi1>
    %788 = vector.broadcast %787 : vector<8x1xi1> to vector<8x256xi1>
    %789 = vector.broadcast %cst_250 : f32 to vector<8x256xf32>
    %790 = arith.select %788, %749, %789 : vector<8x256xi1>, vector<8x256xf32>
    %791 = vector.shape_cast %790 : vector<8x256xf32> to vector<1x8x256xf32>
    %cst_251 = arith.constant dense<0xFF800000> : vector<1xf32>
    %792 = vector.multi_reduction <maximumf>, %791, %cst_251 [1, 2] : vector<1x8x256xf32> to vector<1xf32>
    %793 = vector.shape_cast %792 : vector<1xf32> to vector<1x1x1xf32>
    %794 = vector.extract %793[0, 0, 0] : f32 from vector<1x1x1xf32>
    %cst_252 = arith.constant 0x7F800000 : f32
    %795 = vector.shape_cast %2 : vector<8x1xi1> to vector<8x1xi1>
    %796 = vector.broadcast %795 : vector<8x1xi1> to vector<8x256xi1>
    %797 = vector.broadcast %cst_252 : f32 to vector<8x256xf32>
    %798 = arith.select %796, %749, %797 : vector<8x256xi1>, vector<8x256xf32>
    %799 = vector.shape_cast %798 : vector<8x256xf32> to vector<1x8x256xf32>
    %cst_253 = arith.constant dense<0x7F800000> : vector<1xf32>
    %800 = vector.multi_reduction <minimumf>, %799, %cst_253 [1, 2] : vector<1x8x256xf32> to vector<1xf32>
    %801 = vector.shape_cast %800 : vector<1xf32> to vector<1x1x1xf32>
    %802 = vector.extract %801[0, 0, 0] : f32 from vector<1x1x1xf32>
    %803 = arith.subf %769, %777 : f32
    %cst_254 = arith.constant 2.000000e-01 : f32
    %804 = arith.mulf %cst_254, %803 : f32
    %805 = arith.subf %761, %804 : f32
    %806 = arith.subf %794, %802 : f32
    %cst_255 = arith.constant 2.000000e-01 : f32
    %807 = arith.mulf %cst_255, %806 : f32
    %808 = arith.subf %786, %807 : f32
    %809 = vector.broadcast %805 : f32 to vector<8x256xf32>
    %810 = arith.subf %738, %809 : vector<8x256xf32>
    %cst_256 = arith.constant 0.166666672 : f32
    %811 = vector.broadcast %cst_256 : f32 to vector<8x256xf32>
    %812 = arith.mulf %810, %811 : vector<8x256xf32>
    %cst_257 = arith.constant 0.000000e+00 : f32
    %813 = vector.broadcast %cst_257 : f32 to vector<8x256xf32>
    %814 = arith.maximumf %812, %813 : vector<8x256xf32>
    %815 = math.absf %812 : vector<8x256xf32>
    %cst_258 = arith.constant 0.000000e+00 : f32
    %816 = vector.broadcast %cst_258 : f32 to vector<8x256xf32>
    %817 = arith.subf %816, %815 : vector<8x256xf32>
    %818 = math.exp %817 : vector<8x256xf32>
    %cst_259 = arith.constant 1.000000e+00 : f32
    %819 = vector.broadcast %cst_259 : f32 to vector<8x256xf32>
    %820 = arith.addf %819, %818 : vector<8x256xf32>
    %821 = math.log %820 : vector<8x256xf32>
    %822 = arith.addf %814, %821 : vector<8x256xf32>
    %823 = vector.broadcast %805 : f32 to vector<8x256xf32>
    %824 = arith.subf %738, %823 : vector<8x256xf32>
    %cst_260 = arith.constant 0.00999999977 : f32
    %825 = vector.broadcast %cst_260 : f32 to vector<8x256xf32>
    %826 = arith.mulf %825, %824 : vector<8x256xf32>
    %827 = vector.broadcast %808 : f32 to vector<8x256xf32>
    %828 = arith.addf %826, %827 : vector<8x256xf32>
    %829 = arith.addf %828, %822 : vector<8x256xf32>
    %830 = arith.truncf %752 : vector<8x256xf32> to vector<8x256xbf16>
    %c0_261 = arith.constant 0 : index
    %c0_262 = arith.constant 0 : index
    %831 = vector.load %arg5[%c0_261, %c0_262] : memref<256x128xbf16, #tpu.memory_space<vmem>>, vector<256x128xbf16>
    %cst_263 = arith.constant dense<0.000000e+00> : vector<8x128xf32>
    %832 = tpu.matmul %830, %831, %cst_263 {dimension_numbers = #tpu.dot_dimension_numbers<[1], [0], [0], [1], [0, 0, 1, 1], [], []>} : vector<8x256xbf16>, vector<256x128xbf16>, vector<8x128xf32> -> vector<8x128xf32>
    %833 = arith.addf %832, %14 : vector<8x128xf32>
    %cst_264 = arith.constant 5.000000e-01 : f32
    %834 = vector.broadcast %cst_264 : f32 to vector<8x128xf32>
    %835 = arith.mulf %538, %834 : vector<8x128xf32>
    %836 = arith.addf %835, %833 : vector<8x128xf32>
    %cst_265 = arith.constant 7.500000e-01 : f32
    %837 = vector.broadcast %cst_265 : f32 to vector<8x128xf32>
    %838 = arith.mulf %544, %837 : vector<8x128xf32>
    %cst_266 = arith.constant 1.000000e+00 : f32
    %839 = vector.broadcast %cst_266 : f32 to vector<8x128xf32>
    %840 = arith.subf %839, %558 : vector<8x128xf32>
    %841 = arith.mulf %838, %840 : vector<8x128xf32>
    %842 = arith.addf %841, %836 : vector<8x128xf32>
    %843 = arith.subf %544, %842 : vector<8x128xf32>
    %cst_267 = arith.constant 0.333333343 : f32
    %844 = vector.broadcast %cst_267 : f32 to vector<8x128xf32>
    %845 = arith.mulf %843, %844 : vector<8x128xf32>
    %846 = math.exp %845 : vector<8x128xf32>
    %cst_268 = arith.constant 1.000000e+00 : f32
    %847 = vector.broadcast %cst_268 : f32 to vector<8x128xf32>
    %848 = arith.subf %846, %847 : vector<8x128xf32>
    %cst_269 = arith.constant 5.000000e-01 : f32
    %849 = vector.broadcast %cst_269 : f32 to vector<8x128xf32>
    %850 = arith.mulf %849, %623 : vector<8x128xf32>
    %cst_270 = arith.constant 5.000000e-01 : f32
    %851 = vector.broadcast %cst_270 : f32 to vector<8x128xf32>
    %852 = arith.mulf %851, %848 : vector<8x128xf32>
    %853 = arith.addf %850, %852 : vector<8x128xf32>
    %854 = arith.cmpf ogt, %842, %853 : vector<8x128xf32>
    %855 = arith.extui %854 : vector<8x128xi1> to vector<8x128xi32>
    %856 = arith.sitofp %855 : vector<8x128xi32> to vector<8x128xf32>
    %cst_271 = arith.constant 0.000000e+00 : f32
    %857 = vector.broadcast %cst_271 : f32 to vector<8x128xf32>
    %858 = arith.select %8, %842, %857 : vector<8x128xi1>, vector<8x128xf32>
    %859 = vector.shape_cast %858 : vector<8x128xf32> to vector<1x8x128xf32>
    %cst_272 = arith.constant dense<0.000000e+00> : vector<1xf32>
    %860 = vector.multi_reduction <add>, %859, %cst_272 [1, 2] : vector<1x8x128xf32> to vector<1xf32>
    %861 = vector.shape_cast %860 : vector<1xf32> to vector<1x1x1xf32>
    %862 = vector.extract %861[0, 0, 0] : f32 from vector<1x1x1xf32>
    %cst_273 = arith.constant 6.250000e-03 : f32
    %863 = arith.mulf %862, %cst_273 : f32
    %cst_274 = arith.constant 0xFF800000 : f32
    %864 = vector.broadcast %cst_274 : f32 to vector<8x128xf32>
    %865 = arith.select %8, %842, %864 : vector<8x128xi1>, vector<8x128xf32>
    %866 = vector.shape_cast %865 : vector<8x128xf32> to vector<1x8x128xf32>
    %cst_275 = arith.constant dense<0xFF800000> : vector<1xf32>
    %867 = vector.multi_reduction <maximumf>, %866, %cst_275 [1, 2] : vector<1x8x128xf32> to vector<1xf32>
    %868 = vector.shape_cast %867 : vector<1xf32> to vector<1x1x1xf32>
    %869 = vector.extract %868[0, 0, 0] : f32 from vector<1x1x1xf32>
    %cst_276 = arith.constant 0x7F800000 : f32
    %870 = vector.broadcast %cst_276 : f32 to vector<8x128xf32>
    %871 = arith.select %8, %842, %870 : vector<8x128xi1>, vector<8x128xf32>
    %872 = vector.shape_cast %871 : vector<8x128xf32> to vector<1x8x128xf32>
    %cst_277 = arith.constant dense<0x7F800000> : vector<1xf32>
    %873 = vector.multi_reduction <minimumf>, %872, %cst_277 [1, 2] : vector<1x8x128xf32> to vector<1xf32>
    %874 = vector.shape_cast %873 : vector<1xf32> to vector<1x1x1xf32>
    %875 = vector.extract %874[0, 0, 0] : f32 from vector<1x1x1xf32>
    %cst_278 = arith.constant 0.000000e+00 : f32
    %876 = vector.broadcast %cst_278 : f32 to vector<8x128xf32>
    %877 = arith.select %8, %853, %876 : vector<8x128xi1>, vector<8x128xf32>
    %878 = vector.shape_cast %877 : vector<8x128xf32> to vector<1x8x128xf32>
    %cst_279 = arith.constant dense<0.000000e+00> : vector<1xf32>
    %879 = vector.multi_reduction <add>, %878, %cst_279 [1, 2] : vector<1x8x128xf32> to vector<1xf32>
    %880 = vector.shape_cast %879 : vector<1xf32> to vector<1x1x1xf32>
    %881 = vector.extract %880[0, 0, 0] : f32 from vector<1x1x1xf32>
    %cst_280 = arith.constant 6.250000e-03 : f32
    %882 = arith.mulf %881, %cst_280 : f32
    %cst_281 = arith.constant 0xFF800000 : f32
    %883 = vector.broadcast %cst_281 : f32 to vector<8x128xf32>
    %884 = arith.select %8, %853, %883 : vector<8x128xi1>, vector<8x128xf32>
    %885 = vector.shape_cast %884 : vector<8x128xf32> to vector<1x8x128xf32>
    %cst_282 = arith.constant dense<0xFF800000> : vector<1xf32>
    %886 = vector.multi_reduction <maximumf>, %885, %cst_282 [1, 2] : vector<1x8x128xf32> to vector<1xf32>
    %887 = vector.shape_cast %886 : vector<1xf32> to vector<1x1x1xf32>
    %888 = vector.extract %887[0, 0, 0] : f32 from vector<1x1x1xf32>
    %cst_283 = arith.constant 0x7F800000 : f32
    %889 = vector.broadcast %cst_283 : f32 to vector<8x128xf32>
    %890 = arith.select %8, %853, %889 : vector<8x128xi1>, vector<8x128xf32>
    %891 = vector.shape_cast %890 : vector<8x128xf32> to vector<1x8x128xf32>
    %cst_284 = arith.constant dense<0x7F800000> : vector<1xf32>
    %892 = vector.multi_reduction <minimumf>, %891, %cst_284 [1, 2] : vector<1x8x128xf32> to vector<1xf32>
    %893 = vector.shape_cast %892 : vector<1xf32> to vector<1x1x1xf32>
    %894 = vector.extract %893[0, 0, 0] : f32 from vector<1x1x1xf32>
    %895 = arith.subf %869, %875 : f32
    %cst_285 = arith.constant 2.000000e-01 : f32
    %896 = arith.mulf %cst_285, %895 : f32
    %897 = arith.subf %863, %896 : f32
    %898 = arith.subf %888, %894 : f32
    %cst_286 = arith.constant 2.000000e-01 : f32
    %899 = arith.mulf %cst_286, %898 : f32
    %900 = arith.subf %882, %899 : f32
    %901 = vector.broadcast %897 : f32 to vector<8x128xf32>
    %902 = arith.subf %842, %901 : vector<8x128xf32>
    %cst_287 = arith.constant 0.166666672 : f32
    %903 = vector.broadcast %cst_287 : f32 to vector<8x128xf32>
    %904 = arith.mulf %902, %903 : vector<8x128xf32>
    %cst_288 = arith.constant 0.000000e+00 : f32
    %905 = vector.broadcast %cst_288 : f32 to vector<8x128xf32>
    %906 = arith.maximumf %904, %905 : vector<8x128xf32>
    %907 = math.absf %904 : vector<8x128xf32>
    %cst_289 = arith.constant 0.000000e+00 : f32
    %908 = vector.broadcast %cst_289 : f32 to vector<8x128xf32>
    %909 = arith.subf %908, %907 : vector<8x128xf32>
    %910 = math.exp %909 : vector<8x128xf32>
    %cst_290 = arith.constant 1.000000e+00 : f32
    %911 = vector.broadcast %cst_290 : f32 to vector<8x128xf32>
    %912 = arith.addf %911, %910 : vector<8x128xf32>
    %913 = math.log %912 : vector<8x128xf32>
    %914 = arith.addf %906, %913 : vector<8x128xf32>
    %915 = vector.broadcast %897 : f32 to vector<8x128xf32>
    %916 = arith.subf %842, %915 : vector<8x128xf32>
    %cst_291 = arith.constant 0.00999999977 : f32
    %917 = vector.broadcast %cst_291 : f32 to vector<8x128xf32>
    %918 = arith.mulf %917, %916 : vector<8x128xf32>
    %919 = vector.broadcast %900 : f32 to vector<8x128xf32>
    %920 = arith.addf %918, %919 : vector<8x128xf32>
    %921 = arith.addf %920, %914 : vector<8x128xf32>
    %922 = arith.addf %624, %856 : vector<8x128xf32>
    %c24 = arith.constant 24 : index
    %c0_292 = arith.constant 0 : index
    %923 = vector.load %arg8[%c24, %c0_292] : memref<48x256xf32, #tpu.memory_space<vmem>>, vector<8x256xf32>
    %cst_293 = arith.constant 5.000000e-01 : f32
    %924 = vector.broadcast %cst_293 : f32 to vector<8x256xf32>
    %925 = arith.mulf %628, %924 : vector<8x256xf32>
    %926 = arith.addf %925, %923 : vector<8x256xf32>
    %cst_294 = arith.constant 7.500000e-01 : f32
    %927 = vector.broadcast %cst_294 : f32 to vector<8x256xf32>
    %928 = arith.mulf %634, %927 : vector<8x256xf32>
    %cst_295 = arith.constant 1.000000e+00 : f32
    %929 = vector.broadcast %cst_295 : f32 to vector<8x256xf32>
    %930 = arith.subf %929, %648 : vector<8x256xf32>
    %931 = arith.mulf %928, %930 : vector<8x256xf32>
    %932 = arith.addf %931, %926 : vector<8x256xf32>
    %933 = arith.subf %634, %932 : vector<8x256xf32>
    %cst_296 = arith.constant 0.333333343 : f32
    %934 = vector.broadcast %cst_296 : f32 to vector<8x256xf32>
    %935 = arith.mulf %933, %934 : vector<8x256xf32>
    %936 = math.exp %935 : vector<8x256xf32>
    %cst_297 = arith.constant 1.000000e+00 : f32
    %937 = vector.broadcast %cst_297 : f32 to vector<8x256xf32>
    %938 = arith.subf %936, %937 : vector<8x256xf32>
    %cst_298 = arith.constant 5.000000e-01 : f32
    %939 = vector.broadcast %cst_298 : f32 to vector<8x256xf32>
    %940 = arith.mulf %939, %725 : vector<8x256xf32>
    %cst_299 = arith.constant 5.000000e-01 : f32
    %941 = vector.broadcast %cst_299 : f32 to vector<8x256xf32>
    %942 = arith.mulf %941, %938 : vector<8x256xf32>
    %943 = arith.addf %940, %942 : vector<8x256xf32>
    %944 = arith.cmpf ogt, %932, %943 : vector<8x256xf32>
    %945 = arith.extui %944 : vector<8x256xi1> to vector<8x256xi32>
    %946 = arith.sitofp %945 : vector<8x256xi32> to vector<8x256xf32>
    %cst_300 = arith.constant 0.000000e+00 : f32
    %947 = vector.shape_cast %2 : vector<8x1xi1> to vector<8x1xi1>
    %948 = vector.broadcast %947 : vector<8x1xi1> to vector<8x256xi1>
    %949 = vector.broadcast %cst_300 : f32 to vector<8x256xf32>
    %950 = arith.select %948, %932, %949 : vector<8x256xi1>, vector<8x256xf32>
    %951 = vector.shape_cast %950 : vector<8x256xf32> to vector<1x8x256xf32>
    %cst_301 = arith.constant dense<0.000000e+00> : vector<1xf32>
    %952 = vector.multi_reduction <add>, %951, %cst_301 [1, 2] : vector<1x8x256xf32> to vector<1xf32>
    %953 = vector.shape_cast %952 : vector<1xf32> to vector<1x1x1xf32>
    %954 = vector.extract %953[0, 0, 0] : f32 from vector<1x1x1xf32>
    %cst_302 = arith.constant 0.001953125 : f32
    %955 = arith.mulf %954, %cst_302 : f32
    %cst_303 = arith.constant 0xFF800000 : f32
    %956 = vector.shape_cast %2 : vector<8x1xi1> to vector<8x1xi1>
    %957 = vector.broadcast %956 : vector<8x1xi1> to vector<8x256xi1>
    %958 = vector.broadcast %cst_303 : f32 to vector<8x256xf32>
    %959 = arith.select %957, %932, %958 : vector<8x256xi1>, vector<8x256xf32>
    %960 = vector.shape_cast %959 : vector<8x256xf32> to vector<1x8x256xf32>
    %cst_304 = arith.constant dense<0xFF800000> : vector<1xf32>
    %961 = vector.multi_reduction <maximumf>, %960, %cst_304 [1, 2] : vector<1x8x256xf32> to vector<1xf32>
    %962 = vector.shape_cast %961 : vector<1xf32> to vector<1x1x1xf32>
    %963 = vector.extract %962[0, 0, 0] : f32 from vector<1x1x1xf32>
    %cst_305 = arith.constant 0x7F800000 : f32
    %964 = vector.shape_cast %2 : vector<8x1xi1> to vector<8x1xi1>
    %965 = vector.broadcast %964 : vector<8x1xi1> to vector<8x256xi1>
    %966 = vector.broadcast %cst_305 : f32 to vector<8x256xf32>
    %967 = arith.select %965, %932, %966 : vector<8x256xi1>, vector<8x256xf32>
    %968 = vector.shape_cast %967 : vector<8x256xf32> to vector<1x8x256xf32>
    %cst_306 = arith.constant dense<0x7F800000> : vector<1xf32>
    %969 = vector.multi_reduction <minimumf>, %968, %cst_306 [1, 2] : vector<1x8x256xf32> to vector<1xf32>
    %970 = vector.shape_cast %969 : vector<1xf32> to vector<1x1x1xf32>
    %971 = vector.extract %970[0, 0, 0] : f32 from vector<1x1x1xf32>
    %cst_307 = arith.constant 0.000000e+00 : f32
    %972 = vector.shape_cast %2 : vector<8x1xi1> to vector<8x1xi1>
    %973 = vector.broadcast %972 : vector<8x1xi1> to vector<8x256xi1>
    %974 = vector.broadcast %cst_307 : f32 to vector<8x256xf32>
    %975 = arith.select %973, %943, %974 : vector<8x256xi1>, vector<8x256xf32>
    %976 = vector.shape_cast %975 : vector<8x256xf32> to vector<1x8x256xf32>
    %cst_308 = arith.constant dense<0.000000e+00> : vector<1xf32>
    %977 = vector.multi_reduction <add>, %976, %cst_308 [1, 2] : vector<1x8x256xf32> to vector<1xf32>
    %978 = vector.shape_cast %977 : vector<1xf32> to vector<1x1x1xf32>
    %979 = vector.extract %978[0, 0, 0] : f32 from vector<1x1x1xf32>
    %cst_309 = arith.constant 0.001953125 : f32
    %980 = arith.mulf %979, %cst_309 : f32
    %cst_310 = arith.constant 0xFF800000 : f32
    %981 = vector.shape_cast %2 : vector<8x1xi1> to vector<8x1xi1>
    %982 = vector.broadcast %981 : vector<8x1xi1> to vector<8x256xi1>
    %983 = vector.broadcast %cst_310 : f32 to vector<8x256xf32>
    %984 = arith.select %982, %943, %983 : vector<8x256xi1>, vector<8x256xf32>
    %985 = vector.shape_cast %984 : vector<8x256xf32> to vector<1x8x256xf32>
    %cst_311 = arith.constant dense<0xFF800000> : vector<1xf32>
    %986 = vector.multi_reduction <maximumf>, %985, %cst_311 [1, 2] : vector<1x8x256xf32> to vector<1xf32>
    %987 = vector.shape_cast %986 : vector<1xf32> to vector<1x1x1xf32>
    %988 = vector.extract %987[0, 0, 0] : f32 from vector<1x1x1xf32>
    %cst_312 = arith.constant 0x7F800000 : f32
    %989 = vector.shape_cast %2 : vector<8x1xi1> to vector<8x1xi1>
    %990 = vector.broadcast %989 : vector<8x1xi1> to vector<8x256xi1>
    %991 = vector.broadcast %cst_312 : f32 to vector<8x256xf32>
    %992 = arith.select %990, %943, %991 : vector<8x256xi1>, vector<8x256xf32>
    %993 = vector.shape_cast %992 : vector<8x256xf32> to vector<1x8x256xf32>
    %cst_313 = arith.constant dense<0x7F800000> : vector<1xf32>
    %994 = vector.multi_reduction <minimumf>, %993, %cst_313 [1, 2] : vector<1x8x256xf32> to vector<1xf32>
    %995 = vector.shape_cast %994 : vector<1xf32> to vector<1x1x1xf32>
    %996 = vector.extract %995[0, 0, 0] : f32 from vector<1x1x1xf32>
    %997 = arith.subf %963, %971 : f32
    %cst_314 = arith.constant 2.000000e-01 : f32
    %998 = arith.mulf %cst_314, %997 : f32
    %999 = arith.subf %955, %998 : f32
    %1000 = arith.subf %988, %996 : f32
    %cst_315 = arith.constant 2.000000e-01 : f32
    %1001 = arith.mulf %cst_315, %1000 : f32
    %1002 = arith.subf %980, %1001 : f32
    %1003 = vector.broadcast %999 : f32 to vector<8x256xf32>
    %1004 = arith.subf %932, %1003 : vector<8x256xf32>
    %cst_316 = arith.constant 0.166666672 : f32
    %1005 = vector.broadcast %cst_316 : f32 to vector<8x256xf32>
    %1006 = arith.mulf %1004, %1005 : vector<8x256xf32>
    %cst_317 = arith.constant 0.000000e+00 : f32
    %1007 = vector.broadcast %cst_317 : f32 to vector<8x256xf32>
    %1008 = arith.maximumf %1006, %1007 : vector<8x256xf32>
    %1009 = math.absf %1006 : vector<8x256xf32>
    %cst_318 = arith.constant 0.000000e+00 : f32
    %1010 = vector.broadcast %cst_318 : f32 to vector<8x256xf32>
    %1011 = arith.subf %1010, %1009 : vector<8x256xf32>
    %1012 = math.exp %1011 : vector<8x256xf32>
    %cst_319 = arith.constant 1.000000e+00 : f32
    %1013 = vector.broadcast %cst_319 : f32 to vector<8x256xf32>
    %1014 = arith.addf %1013, %1012 : vector<8x256xf32>
    %1015 = math.log %1014 : vector<8x256xf32>
    %1016 = arith.addf %1008, %1015 : vector<8x256xf32>
    %1017 = vector.broadcast %999 : f32 to vector<8x256xf32>
    %1018 = arith.subf %932, %1017 : vector<8x256xf32>
    %cst_320 = arith.constant 0.00999999977 : f32
    %1019 = vector.broadcast %cst_320 : f32 to vector<8x256xf32>
    %1020 = arith.mulf %1019, %1018 : vector<8x256xf32>
    %1021 = vector.broadcast %1002 : f32 to vector<8x256xf32>
    %1022 = arith.addf %1020, %1021 : vector<8x256xf32>
    %1023 = arith.addf %1022, %1016 : vector<8x256xf32>
    %1024 = arith.truncf %946 : vector<8x256xf32> to vector<8x256xbf16>
    %c0_321 = arith.constant 0 : index
    %c0_322 = arith.constant 0 : index
    %1025 = vector.load %arg3[%c0_321, %c0_322] : memref<256x256xbf16, #tpu.memory_space<vmem>>, vector<256x256xbf16>
    %cst_323 = arith.constant dense<0.000000e+00> : vector<8x256xf32>
    %1026 = tpu.matmul %1024, %1025, %cst_323 {dimension_numbers = #tpu.dot_dimension_numbers<[1], [0], [0], [1], [0, 0, 1, 1], [], []>} : vector<8x256xbf16>, vector<256x256xbf16>, vector<8x256xf32> -> vector<8x256xf32>
    %1027 = arith.addf %1026, %11 : vector<8x256xf32>
    %cst_324 = arith.constant 5.000000e-01 : f32
    %1028 = vector.broadcast %cst_324 : f32 to vector<8x256xf32>
    %1029 = arith.mulf %732, %1028 : vector<8x256xf32>
    %1030 = arith.addf %1029, %1027 : vector<8x256xf32>
    %cst_325 = arith.constant 7.500000e-01 : f32
    %1031 = vector.broadcast %cst_325 : f32 to vector<8x256xf32>
    %1032 = arith.mulf %738, %1031 : vector<8x256xf32>
    %cst_326 = arith.constant 1.000000e+00 : f32
    %1033 = vector.broadcast %cst_326 : f32 to vector<8x256xf32>
    %1034 = arith.subf %1033, %752 : vector<8x256xf32>
    %1035 = arith.mulf %1032, %1034 : vector<8x256xf32>
    %1036 = arith.addf %1035, %1030 : vector<8x256xf32>
    %1037 = arith.subf %738, %1036 : vector<8x256xf32>
    %cst_327 = arith.constant 0.333333343 : f32
    %1038 = vector.broadcast %cst_327 : f32 to vector<8x256xf32>
    %1039 = arith.mulf %1037, %1038 : vector<8x256xf32>
    %1040 = math.exp %1039 : vector<8x256xf32>
    %cst_328 = arith.constant 1.000000e+00 : f32
    %1041 = vector.broadcast %cst_328 : f32 to vector<8x256xf32>
    %1042 = arith.subf %1040, %1041 : vector<8x256xf32>
    %cst_329 = arith.constant 5.000000e-01 : f32
    %1043 = vector.broadcast %cst_329 : f32 to vector<8x256xf32>
    %1044 = arith.mulf %1043, %829 : vector<8x256xf32>
    %cst_330 = arith.constant 5.000000e-01 : f32
    %1045 = vector.broadcast %cst_330 : f32 to vector<8x256xf32>
    %1046 = arith.mulf %1045, %1042 : vector<8x256xf32>
    %1047 = arith.addf %1044, %1046 : vector<8x256xf32>
    %1048 = arith.cmpf ogt, %1036, %1047 : vector<8x256xf32>
    %1049 = arith.extui %1048 : vector<8x256xi1> to vector<8x256xi32>
    %1050 = arith.sitofp %1049 : vector<8x256xi32> to vector<8x256xf32>
    %cst_331 = arith.constant 0.000000e+00 : f32
    %1051 = vector.shape_cast %2 : vector<8x1xi1> to vector<8x1xi1>
    %1052 = vector.broadcast %1051 : vector<8x1xi1> to vector<8x256xi1>
    %1053 = vector.broadcast %cst_331 : f32 to vector<8x256xf32>
    %1054 = arith.select %1052, %1036, %1053 : vector<8x256xi1>, vector<8x256xf32>
    %1055 = vector.shape_cast %1054 : vector<8x256xf32> to vector<1x8x256xf32>
    %cst_332 = arith.constant dense<0.000000e+00> : vector<1xf32>
    %1056 = vector.multi_reduction <add>, %1055, %cst_332 [1, 2] : vector<1x8x256xf32> to vector<1xf32>
    %1057 = vector.shape_cast %1056 : vector<1xf32> to vector<1x1x1xf32>
    %1058 = vector.extract %1057[0, 0, 0] : f32 from vector<1x1x1xf32>
    %cst_333 = arith.constant 0.001953125 : f32
    %1059 = arith.mulf %1058, %cst_333 : f32
    %cst_334 = arith.constant 0xFF800000 : f32
    %1060 = vector.shape_cast %2 : vector<8x1xi1> to vector<8x1xi1>
    %1061 = vector.broadcast %1060 : vector<8x1xi1> to vector<8x256xi1>
    %1062 = vector.broadcast %cst_334 : f32 to vector<8x256xf32>
    %1063 = arith.select %1061, %1036, %1062 : vector<8x256xi1>, vector<8x256xf32>
    %1064 = vector.shape_cast %1063 : vector<8x256xf32> to vector<1x8x256xf32>
    %cst_335 = arith.constant dense<0xFF800000> : vector<1xf32>
    %1065 = vector.multi_reduction <maximumf>, %1064, %cst_335 [1, 2] : vector<1x8x256xf32> to vector<1xf32>
    %1066 = vector.shape_cast %1065 : vector<1xf32> to vector<1x1x1xf32>
    %1067 = vector.extract %1066[0, 0, 0] : f32 from vector<1x1x1xf32>
    %cst_336 = arith.constant 0x7F800000 : f32
    %1068 = vector.shape_cast %2 : vector<8x1xi1> to vector<8x1xi1>
    %1069 = vector.broadcast %1068 : vector<8x1xi1> to vector<8x256xi1>
    %1070 = vector.broadcast %cst_336 : f32 to vector<8x256xf32>
    %1071 = arith.select %1069, %1036, %1070 : vector<8x256xi1>, vector<8x256xf32>
    %1072 = vector.shape_cast %1071 : vector<8x256xf32> to vector<1x8x256xf32>
    %cst_337 = arith.constant dense<0x7F800000> : vector<1xf32>
    %1073 = vector.multi_reduction <minimumf>, %1072, %cst_337 [1, 2] : vector<1x8x256xf32> to vector<1xf32>
    %1074 = vector.shape_cast %1073 : vector<1xf32> to vector<1x1x1xf32>
    %1075 = vector.extract %1074[0, 0, 0] : f32 from vector<1x1x1xf32>
    %cst_338 = arith.constant 0.000000e+00 : f32
    %1076 = vector.shape_cast %2 : vector<8x1xi1> to vector<8x1xi1>
    %1077 = vector.broadcast %1076 : vector<8x1xi1> to vector<8x256xi1>
    %1078 = vector.broadcast %cst_338 : f32 to vector<8x256xf32>
    %1079 = arith.select %1077, %1047, %1078 : vector<8x256xi1>, vector<8x256xf32>
    %1080 = vector.shape_cast %1079 : vector<8x256xf32> to vector<1x8x256xf32>
    %cst_339 = arith.constant dense<0.000000e+00> : vector<1xf32>
    %1081 = vector.multi_reduction <add>, %1080, %cst_339 [1, 2] : vector<1x8x256xf32> to vector<1xf32>
    %1082 = vector.shape_cast %1081 : vector<1xf32> to vector<1x1x1xf32>
    %1083 = vector.extract %1082[0, 0, 0] : f32 from vector<1x1x1xf32>
    %cst_340 = arith.constant 0.001953125 : f32
    %1084 = arith.mulf %1083, %cst_340 : f32
    %cst_341 = arith.constant 0xFF800000 : f32
    %1085 = vector.shape_cast %2 : vector<8x1xi1> to vector<8x1xi1>
    %1086 = vector.broadcast %1085 : vector<8x1xi1> to vector<8x256xi1>
    %1087 = vector.broadcast %cst_341 : f32 to vector<8x256xf32>
    %1088 = arith.select %1086, %1047, %1087 : vector<8x256xi1>, vector<8x256xf32>
    %1089 = vector.shape_cast %1088 : vector<8x256xf32> to vector<1x8x256xf32>
    %cst_342 = arith.constant dense<0xFF800000> : vector<1xf32>
    %1090 = vector.multi_reduction <maximumf>, %1089, %cst_342 [1, 2] : vector<1x8x256xf32> to vector<1xf32>
    %1091 = vector.shape_cast %1090 : vector<1xf32> to vector<1x1x1xf32>
    %1092 = vector.extract %1091[0, 0, 0] : f32 from vector<1x1x1xf32>
    %cst_343 = arith.constant 0x7F800000 : f32
    %1093 = vector.shape_cast %2 : vector<8x1xi1> to vector<8x1xi1>
    %1094 = vector.broadcast %1093 : vector<8x1xi1> to vector<8x256xi1>
    %1095 = vector.broadcast %cst_343 : f32 to vector<8x256xf32>
    %1096 = arith.select %1094, %1047, %1095 : vector<8x256xi1>, vector<8x256xf32>
    %1097 = vector.shape_cast %1096 : vector<8x256xf32> to vector<1x8x256xf32>
    %cst_344 = arith.constant dense<0x7F800000> : vector<1xf32>
    %1098 = vector.multi_reduction <minimumf>, %1097, %cst_344 [1, 2] : vector<1x8x256xf32> to vector<1xf32>
    %1099 = vector.shape_cast %1098 : vector<1xf32> to vector<1x1x1xf32>
    %1100 = vector.extract %1099[0, 0, 0] : f32 from vector<1x1x1xf32>
    %1101 = arith.subf %1067, %1075 : f32
    %cst_345 = arith.constant 2.000000e-01 : f32
    %1102 = arith.mulf %cst_345, %1101 : f32
    %1103 = arith.subf %1059, %1102 : f32
    %1104 = arith.subf %1092, %1100 : f32
    %cst_346 = arith.constant 2.000000e-01 : f32
    %1105 = arith.mulf %cst_346, %1104 : f32
    %1106 = arith.subf %1084, %1105 : f32
    %1107 = vector.broadcast %1103 : f32 to vector<8x256xf32>
    %1108 = arith.subf %1036, %1107 : vector<8x256xf32>
    %cst_347 = arith.constant 0.166666672 : f32
    %1109 = vector.broadcast %cst_347 : f32 to vector<8x256xf32>
    %1110 = arith.mulf %1108, %1109 : vector<8x256xf32>
    %cst_348 = arith.constant 0.000000e+00 : f32
    %1111 = vector.broadcast %cst_348 : f32 to vector<8x256xf32>
    %1112 = arith.maximumf %1110, %1111 : vector<8x256xf32>
    %1113 = math.absf %1110 : vector<8x256xf32>
    %cst_349 = arith.constant 0.000000e+00 : f32
    %1114 = vector.broadcast %cst_349 : f32 to vector<8x256xf32>
    %1115 = arith.subf %1114, %1113 : vector<8x256xf32>
    %1116 = math.exp %1115 : vector<8x256xf32>
    %cst_350 = arith.constant 1.000000e+00 : f32
    %1117 = vector.broadcast %cst_350 : f32 to vector<8x256xf32>
    %1118 = arith.addf %1117, %1116 : vector<8x256xf32>
    %1119 = math.log %1118 : vector<8x256xf32>
    %1120 = arith.addf %1112, %1119 : vector<8x256xf32>
    %1121 = vector.broadcast %1103 : f32 to vector<8x256xf32>
    %1122 = arith.subf %1036, %1121 : vector<8x256xf32>
    %cst_351 = arith.constant 0.00999999977 : f32
    %1123 = vector.broadcast %cst_351 : f32 to vector<8x256xf32>
    %1124 = arith.mulf %1123, %1122 : vector<8x256xf32>
    %1125 = vector.broadcast %1106 : f32 to vector<8x256xf32>
    %1126 = arith.addf %1124, %1125 : vector<8x256xf32>
    %1127 = arith.addf %1126, %1120 : vector<8x256xf32>
    %1128 = arith.truncf %1050 : vector<8x256xf32> to vector<8x256xbf16>
    %c0_352 = arith.constant 0 : index
    %c0_353 = arith.constant 0 : index
    %1129 = vector.load %arg5[%c0_352, %c0_353] : memref<256x128xbf16, #tpu.memory_space<vmem>>, vector<256x128xbf16>
    %cst_354 = arith.constant dense<0.000000e+00> : vector<8x128xf32>
    %1130 = tpu.matmul %1128, %1129, %cst_354 {dimension_numbers = #tpu.dot_dimension_numbers<[1], [0], [0], [1], [0, 0, 1, 1], [], []>} : vector<8x256xbf16>, vector<256x128xbf16>, vector<8x128xf32> -> vector<8x128xf32>
    %1131 = arith.addf %1130, %14 : vector<8x128xf32>
    %cst_355 = arith.constant 5.000000e-01 : f32
    %1132 = vector.broadcast %cst_355 : f32 to vector<8x128xf32>
    %1133 = arith.mulf %836, %1132 : vector<8x128xf32>
    %1134 = arith.addf %1133, %1131 : vector<8x128xf32>
    %cst_356 = arith.constant 7.500000e-01 : f32
    %1135 = vector.broadcast %cst_356 : f32 to vector<8x128xf32>
    %1136 = arith.mulf %842, %1135 : vector<8x128xf32>
    %cst_357 = arith.constant 1.000000e+00 : f32
    %1137 = vector.broadcast %cst_357 : f32 to vector<8x128xf32>
    %1138 = arith.subf %1137, %856 : vector<8x128xf32>
    %1139 = arith.mulf %1136, %1138 : vector<8x128xf32>
    %1140 = arith.addf %1139, %1134 : vector<8x128xf32>
    %1141 = arith.subf %842, %1140 : vector<8x128xf32>
    %cst_358 = arith.constant 0.333333343 : f32
    %1142 = vector.broadcast %cst_358 : f32 to vector<8x128xf32>
    %1143 = arith.mulf %1141, %1142 : vector<8x128xf32>
    %1144 = math.exp %1143 : vector<8x128xf32>
    %cst_359 = arith.constant 1.000000e+00 : f32
    %1145 = vector.broadcast %cst_359 : f32 to vector<8x128xf32>
    %1146 = arith.subf %1144, %1145 : vector<8x128xf32>
    %cst_360 = arith.constant 5.000000e-01 : f32
    %1147 = vector.broadcast %cst_360 : f32 to vector<8x128xf32>
    %1148 = arith.mulf %1147, %921 : vector<8x128xf32>
    %cst_361 = arith.constant 5.000000e-01 : f32
    %1149 = vector.broadcast %cst_361 : f32 to vector<8x128xf32>
    %1150 = arith.mulf %1149, %1146 : vector<8x128xf32>
    %1151 = arith.addf %1148, %1150 : vector<8x128xf32>
    %1152 = arith.cmpf ogt, %1140, %1151 : vector<8x128xf32>
    %1153 = arith.extui %1152 : vector<8x128xi1> to vector<8x128xi32>
    %1154 = arith.sitofp %1153 : vector<8x128xi32> to vector<8x128xf32>
    %cst_362 = arith.constant 0.000000e+00 : f32
    %1155 = vector.broadcast %cst_362 : f32 to vector<8x128xf32>
    %1156 = arith.select %8, %1140, %1155 : vector<8x128xi1>, vector<8x128xf32>
    %1157 = vector.shape_cast %1156 : vector<8x128xf32> to vector<1x8x128xf32>
    %cst_363 = arith.constant dense<0.000000e+00> : vector<1xf32>
    %1158 = vector.multi_reduction <add>, %1157, %cst_363 [1, 2] : vector<1x8x128xf32> to vector<1xf32>
    %1159 = vector.shape_cast %1158 : vector<1xf32> to vector<1x1x1xf32>
    %1160 = vector.extract %1159[0, 0, 0] : f32 from vector<1x1x1xf32>
    %cst_364 = arith.constant 6.250000e-03 : f32
    %1161 = arith.mulf %1160, %cst_364 : f32
    %cst_365 = arith.constant 0xFF800000 : f32
    %1162 = vector.broadcast %cst_365 : f32 to vector<8x128xf32>
    %1163 = arith.select %8, %1140, %1162 : vector<8x128xi1>, vector<8x128xf32>
    %1164 = vector.shape_cast %1163 : vector<8x128xf32> to vector<1x8x128xf32>
    %cst_366 = arith.constant dense<0xFF800000> : vector<1xf32>
    %1165 = vector.multi_reduction <maximumf>, %1164, %cst_366 [1, 2] : vector<1x8x128xf32> to vector<1xf32>
    %1166 = vector.shape_cast %1165 : vector<1xf32> to vector<1x1x1xf32>
    %1167 = vector.extract %1166[0, 0, 0] : f32 from vector<1x1x1xf32>
    %cst_367 = arith.constant 0x7F800000 : f32
    %1168 = vector.broadcast %cst_367 : f32 to vector<8x128xf32>
    %1169 = arith.select %8, %1140, %1168 : vector<8x128xi1>, vector<8x128xf32>
    %1170 = vector.shape_cast %1169 : vector<8x128xf32> to vector<1x8x128xf32>
    %cst_368 = arith.constant dense<0x7F800000> : vector<1xf32>
    %1171 = vector.multi_reduction <minimumf>, %1170, %cst_368 [1, 2] : vector<1x8x128xf32> to vector<1xf32>
    %1172 = vector.shape_cast %1171 : vector<1xf32> to vector<1x1x1xf32>
    %1173 = vector.extract %1172[0, 0, 0] : f32 from vector<1x1x1xf32>
    %cst_369 = arith.constant 0.000000e+00 : f32
    %1174 = vector.broadcast %cst_369 : f32 to vector<8x128xf32>
    %1175 = arith.select %8, %1151, %1174 : vector<8x128xi1>, vector<8x128xf32>
    %1176 = vector.shape_cast %1175 : vector<8x128xf32> to vector<1x8x128xf32>
    %cst_370 = arith.constant dense<0.000000e+00> : vector<1xf32>
    %1177 = vector.multi_reduction <add>, %1176, %cst_370 [1, 2] : vector<1x8x128xf32> to vector<1xf32>
    %1178 = vector.shape_cast %1177 : vector<1xf32> to vector<1x1x1xf32>
    %1179 = vector.extract %1178[0, 0, 0] : f32 from vector<1x1x1xf32>
    %cst_371 = arith.constant 6.250000e-03 : f32
    %1180 = arith.mulf %1179, %cst_371 : f32
    %cst_372 = arith.constant 0xFF800000 : f32
    %1181 = vector.broadcast %cst_372 : f32 to vector<8x128xf32>
    %1182 = arith.select %8, %1151, %1181 : vector<8x128xi1>, vector<8x128xf32>
    %1183 = vector.shape_cast %1182 : vector<8x128xf32> to vector<1x8x128xf32>
    %cst_373 = arith.constant dense<0xFF800000> : vector<1xf32>
    %1184 = vector.multi_reduction <maximumf>, %1183, %cst_373 [1, 2] : vector<1x8x128xf32> to vector<1xf32>
    %1185 = vector.shape_cast %1184 : vector<1xf32> to vector<1x1x1xf32>
    %1186 = vector.extract %1185[0, 0, 0] : f32 from vector<1x1x1xf32>
    %cst_374 = arith.constant 0x7F800000 : f32
    %1187 = vector.broadcast %cst_374 : f32 to vector<8x128xf32>
    %1188 = arith.select %8, %1151, %1187 : vector<8x128xi1>, vector<8x128xf32>
    %1189 = vector.shape_cast %1188 : vector<8x128xf32> to vector<1x8x128xf32>
    %cst_375 = arith.constant dense<0x7F800000> : vector<1xf32>
    %1190 = vector.multi_reduction <minimumf>, %1189, %cst_375 [1, 2] : vector<1x8x128xf32> to vector<1xf32>
    %1191 = vector.shape_cast %1190 : vector<1xf32> to vector<1x1x1xf32>
    %1192 = vector.extract %1191[0, 0, 0] : f32 from vector<1x1x1xf32>
    %1193 = arith.subf %1167, %1173 : f32
    %cst_376 = arith.constant 2.000000e-01 : f32
    %1194 = arith.mulf %cst_376, %1193 : f32
    %1195 = arith.subf %1161, %1194 : f32
    %1196 = arith.subf %1186, %1192 : f32
    %cst_377 = arith.constant 2.000000e-01 : f32
    %1197 = arith.mulf %cst_377, %1196 : f32
    %1198 = arith.subf %1180, %1197 : f32
    %1199 = vector.broadcast %1195 : f32 to vector<8x128xf32>
    %1200 = arith.subf %1140, %1199 : vector<8x128xf32>
    %cst_378 = arith.constant 0.166666672 : f32
    %1201 = vector.broadcast %cst_378 : f32 to vector<8x128xf32>
    %1202 = arith.mulf %1200, %1201 : vector<8x128xf32>
    %cst_379 = arith.constant 0.000000e+00 : f32
    %1203 = vector.broadcast %cst_379 : f32 to vector<8x128xf32>
    %1204 = arith.maximumf %1202, %1203 : vector<8x128xf32>
    %1205 = math.absf %1202 : vector<8x128xf32>
    %cst_380 = arith.constant 0.000000e+00 : f32
    %1206 = vector.broadcast %cst_380 : f32 to vector<8x128xf32>
    %1207 = arith.subf %1206, %1205 : vector<8x128xf32>
    %1208 = math.exp %1207 : vector<8x128xf32>
    %cst_381 = arith.constant 1.000000e+00 : f32
    %1209 = vector.broadcast %cst_381 : f32 to vector<8x128xf32>
    %1210 = arith.addf %1209, %1208 : vector<8x128xf32>
    %1211 = math.log %1210 : vector<8x128xf32>
    %1212 = arith.addf %1204, %1211 : vector<8x128xf32>
    %1213 = vector.broadcast %1195 : f32 to vector<8x128xf32>
    %1214 = arith.subf %1140, %1213 : vector<8x128xf32>
    %cst_382 = arith.constant 0.00999999977 : f32
    %1215 = vector.broadcast %cst_382 : f32 to vector<8x128xf32>
    %1216 = arith.mulf %1215, %1214 : vector<8x128xf32>
    %1217 = vector.broadcast %1198 : f32 to vector<8x128xf32>
    %1218 = arith.addf %1216, %1217 : vector<8x128xf32>
    %1219 = arith.addf %1218, %1212 : vector<8x128xf32>
    %1220 = arith.addf %922, %1154 : vector<8x128xf32>
    %c32 = arith.constant 32 : index
    %c0_383 = arith.constant 0 : index
    %1221 = vector.load %arg8[%c32, %c0_383] : memref<48x256xf32, #tpu.memory_space<vmem>>, vector<8x256xf32>
    %cst_384 = arith.constant 5.000000e-01 : f32
    %1222 = vector.broadcast %cst_384 : f32 to vector<8x256xf32>
    %1223 = arith.mulf %926, %1222 : vector<8x256xf32>
    %1224 = arith.addf %1223, %1221 : vector<8x256xf32>
    %cst_385 = arith.constant 7.500000e-01 : f32
    %1225 = vector.broadcast %cst_385 : f32 to vector<8x256xf32>
    %1226 = arith.mulf %932, %1225 : vector<8x256xf32>
    %cst_386 = arith.constant 1.000000e+00 : f32
    %1227 = vector.broadcast %cst_386 : f32 to vector<8x256xf32>
    %1228 = arith.subf %1227, %946 : vector<8x256xf32>
    %1229 = arith.mulf %1226, %1228 : vector<8x256xf32>
    %1230 = arith.addf %1229, %1224 : vector<8x256xf32>
    %1231 = arith.subf %932, %1230 : vector<8x256xf32>
    %cst_387 = arith.constant 0.333333343 : f32
    %1232 = vector.broadcast %cst_387 : f32 to vector<8x256xf32>
    %1233 = arith.mulf %1231, %1232 : vector<8x256xf32>
    %1234 = math.exp %1233 : vector<8x256xf32>
    %cst_388 = arith.constant 1.000000e+00 : f32
    %1235 = vector.broadcast %cst_388 : f32 to vector<8x256xf32>
    %1236 = arith.subf %1234, %1235 : vector<8x256xf32>
    %cst_389 = arith.constant 5.000000e-01 : f32
    %1237 = vector.broadcast %cst_389 : f32 to vector<8x256xf32>
    %1238 = arith.mulf %1237, %1023 : vector<8x256xf32>
    %cst_390 = arith.constant 5.000000e-01 : f32
    %1239 = vector.broadcast %cst_390 : f32 to vector<8x256xf32>
    %1240 = arith.mulf %1239, %1236 : vector<8x256xf32>
    %1241 = arith.addf %1238, %1240 : vector<8x256xf32>
    %1242 = arith.cmpf ogt, %1230, %1241 : vector<8x256xf32>
    %1243 = arith.extui %1242 : vector<8x256xi1> to vector<8x256xi32>
    %1244 = arith.sitofp %1243 : vector<8x256xi32> to vector<8x256xf32>
    %1245 = arith.truncf %1244 : vector<8x256xf32> to vector<8x256xbf16>
    %c0_391 = arith.constant 0 : index
    %c0_392 = arith.constant 0 : index
    %1246 = vector.load %arg3[%c0_391, %c0_392] : memref<256x256xbf16, #tpu.memory_space<vmem>>, vector<256x256xbf16>
    %cst_393 = arith.constant dense<0.000000e+00> : vector<8x256xf32>
    %1247 = tpu.matmul %1245, %1246, %cst_393 {dimension_numbers = #tpu.dot_dimension_numbers<[1], [0], [0], [1], [0, 0, 1, 1], [], []>} : vector<8x256xbf16>, vector<256x256xbf16>, vector<8x256xf32> -> vector<8x256xf32>
    %1248 = arith.addf %1247, %11 : vector<8x256xf32>
    %cst_394 = arith.constant 5.000000e-01 : f32
    %1249 = vector.broadcast %cst_394 : f32 to vector<8x256xf32>
    %1250 = arith.mulf %1030, %1249 : vector<8x256xf32>
    %1251 = arith.addf %1250, %1248 : vector<8x256xf32>
    %cst_395 = arith.constant 7.500000e-01 : f32
    %1252 = vector.broadcast %cst_395 : f32 to vector<8x256xf32>
    %1253 = arith.mulf %1036, %1252 : vector<8x256xf32>
    %cst_396 = arith.constant 1.000000e+00 : f32
    %1254 = vector.broadcast %cst_396 : f32 to vector<8x256xf32>
    %1255 = arith.subf %1254, %1050 : vector<8x256xf32>
    %1256 = arith.mulf %1253, %1255 : vector<8x256xf32>
    %1257 = arith.addf %1256, %1251 : vector<8x256xf32>
    %1258 = arith.subf %1036, %1257 : vector<8x256xf32>
    %cst_397 = arith.constant 0.333333343 : f32
    %1259 = vector.broadcast %cst_397 : f32 to vector<8x256xf32>
    %1260 = arith.mulf %1258, %1259 : vector<8x256xf32>
    %1261 = math.exp %1260 : vector<8x256xf32>
    %cst_398 = arith.constant 1.000000e+00 : f32
    %1262 = vector.broadcast %cst_398 : f32 to vector<8x256xf32>
    %1263 = arith.subf %1261, %1262 : vector<8x256xf32>
    %cst_399 = arith.constant 5.000000e-01 : f32
    %1264 = vector.broadcast %cst_399 : f32 to vector<8x256xf32>
    %1265 = arith.mulf %1264, %1127 : vector<8x256xf32>
    %cst_400 = arith.constant 5.000000e-01 : f32
    %1266 = vector.broadcast %cst_400 : f32 to vector<8x256xf32>
    %1267 = arith.mulf %1266, %1263 : vector<8x256xf32>
    %1268 = arith.addf %1265, %1267 : vector<8x256xf32>
    %1269 = arith.cmpf ogt, %1257, %1268 : vector<8x256xf32>
    %1270 = arith.extui %1269 : vector<8x256xi1> to vector<8x256xi32>
    %1271 = arith.sitofp %1270 : vector<8x256xi32> to vector<8x256xf32>
    %1272 = arith.truncf %1271 : vector<8x256xf32> to vector<8x256xbf16>
    %c0_401 = arith.constant 0 : index
    %c0_402 = arith.constant 0 : index
    %1273 = vector.load %arg5[%c0_401, %c0_402] : memref<256x128xbf16, #tpu.memory_space<vmem>>, vector<256x128xbf16>
    %cst_403 = arith.constant dense<0.000000e+00> : vector<8x128xf32>
    %1274 = tpu.matmul %1272, %1273, %cst_403 {dimension_numbers = #tpu.dot_dimension_numbers<[1], [0], [0], [1], [0, 0, 1, 1], [], []>} : vector<8x256xbf16>, vector<256x128xbf16>, vector<8x128xf32> -> vector<8x128xf32>
    %1275 = arith.addf %1274, %14 : vector<8x128xf32>
    %cst_404 = arith.constant 5.000000e-01 : f32
    %1276 = vector.broadcast %cst_404 : f32 to vector<8x128xf32>
    %1277 = arith.mulf %1134, %1276 : vector<8x128xf32>
    %1278 = arith.addf %1277, %1275 : vector<8x128xf32>
    %cst_405 = arith.constant 7.500000e-01 : f32
    %1279 = vector.broadcast %cst_405 : f32 to vector<8x128xf32>
    %1280 = arith.mulf %1140, %1279 : vector<8x128xf32>
    %cst_406 = arith.constant 1.000000e+00 : f32
    %1281 = vector.broadcast %cst_406 : f32 to vector<8x128xf32>
    %1282 = arith.subf %1281, %1154 : vector<8x128xf32>
    %1283 = arith.mulf %1280, %1282 : vector<8x128xf32>
    %1284 = arith.addf %1283, %1278 : vector<8x128xf32>
    %1285 = arith.subf %1140, %1284 : vector<8x128xf32>
    %cst_407 = arith.constant 0.333333343 : f32
    %1286 = vector.broadcast %cst_407 : f32 to vector<8x128xf32>
    %1287 = arith.mulf %1285, %1286 : vector<8x128xf32>
    %1288 = math.exp %1287 : vector<8x128xf32>
    %cst_408 = arith.constant 1.000000e+00 : f32
    %1289 = vector.broadcast %cst_408 : f32 to vector<8x128xf32>
    %1290 = arith.subf %1288, %1289 : vector<8x128xf32>
    %cst_409 = arith.constant 5.000000e-01 : f32
    %1291 = vector.broadcast %cst_409 : f32 to vector<8x128xf32>
    %1292 = arith.mulf %1291, %1219 : vector<8x128xf32>
    %cst_410 = arith.constant 5.000000e-01 : f32
    %1293 = vector.broadcast %cst_410 : f32 to vector<8x128xf32>
    %1294 = arith.mulf %1293, %1290 : vector<8x128xf32>
    %1295 = arith.addf %1292, %1294 : vector<8x128xf32>
    %1296 = arith.cmpf ogt, %1284, %1295 : vector<8x128xf32>
    %1297 = arith.extui %1296 : vector<8x128xi1> to vector<8x128xi32>
    %1298 = arith.sitofp %1297 : vector<8x128xi32> to vector<8x128xf32>
    %1299 = arith.addf %1220, %1298 : vector<8x128xf32>
    %cst_411 = arith.constant 2.000000e-01 : f32
    %1300 = vector.broadcast %cst_411 : f32 to vector<8x128xf32>
    %1301 = arith.mulf %1299, %1300 : vector<8x128xf32>
    %c0_412 = arith.constant 0 : index
    %c0_413 = arith.constant 0 : index
    %1302 = vector.load %arg7[%c0_412, %c0_413] : memref<8x128xf32, #tpu.memory_space<vmem>>, vector<8x128xf32>
    tpu.vector_store %arg7[%c0_412, %c0_413], %1301 {strides = array<i32>} : memref<8x128xf32, #tpu.memory_space<vmem>>, vector<8x128xf32>,
    return
  }
}

</mosaic_0001>

<bundles_post_ra>
// kernel: forward.1
= control target key start
LH: loop header
LB: loop body
LE: loop exit
PB: predicated region body
PF: predicated region fallthrough
CT: control target
= control target key end

     0   :  { %12 = vsyncpa [#allocation4], 0  ;;  %s5003_s0 = inlined_call_operand.vmem [shape: bf16[48,128], index: 0, kind: input, shape index: {}]   ;;  %s5004_s1 = inlined_call_operand.hbm [shape: bf16[128,256], index: 1, kind: input, shape index: {}]   ;;  %s5005_s2 = inlined_call_operand.vmem [shape: f32[1,256], index: 2, kind: input, shape index: {}]   ;;  %s5006_s3 = inlined_call_operand.hbm [shape: bf16[256,256], index: 3, kind: input, shape index: {}]   ;;  %s5007_s4 = inlined_call_operand.vmem [shape: f32[1,256], index: 4, kind: input, shape index: {}]   ;;  %s5008_s5 = inlined_call_operand.hbm [shape: bf16[256,128], index: 5, kind: input, shape index: {}]   ;;  %s5009_s6 = inlined_call_operand.vmem [shape: f32[1,128], index: 6, kind: input, shape index: {}]   ;;  %s5010_s7 = inlined_call_operand.vmem [shape: f32[8,128], index: 7, kind: output, shape index: {}]  }
   0x1   :  { %13 = vsyncpa [#allocation6], 0  ;;  %s3485_s24 = smov [#allocation5]   ;;  %s3486_s26 = smov [#allocation3]  }
   0x2   :  { %s35_s25 = sshll.u32 %s3485_s24, 4  ;;  %s21_s27 = sshll.u32 %s3486_s26, 4  ;;  %s36_s25 = int_to_ptr.vmem [resolvable:$true] %s35_s25  ;;  %s3535_s27 = int_to_ptr.vmem [resolvable:$true] %s21_s27 }
   0x3   :  { %s3415_s30 = scalar_lea.hbm %s5006_s3, 4096 }
   0x4   :  { %p3416_p0 = scmp.ne.s32.totalorder %s5006_s3, %s3415_s30  ;;  %p3419_p1 = scmp.lt.u32.totalorder %s3415_s30, %s5006_s3 }
   0x6   :  { %p3421_p2 = pnand %p3419_p1, %p3416_p0 }
   0x8   :  { %3424 = shalt.err (!%p3421_p2)
}
   0x9   :  { %s3425_s12 = scalar_lea.vmem %s36_s25, 4096  ;;  %p3430_p4 = scmp.lt.s32.totalorder %s36_s25, %s36_s25 }
   0xa   :  { %p3426_p3 = scmp.ne.s32.totalorder %s36_s25, %s3425_s12  ;;  %p3431_p5 = scmp.lt.s32.totalorder %s3425_s12, %s3425_s12 }
   0xc   :  { %p3432_p6 = por %p3431_p5, %p3430_p4 }
   0xe   :  { %p3433_p7 = pnand %p3432_p6, %p3426_p3 }
  0x10   :  { %3436 = shalt.err (!%p3433_p7)
}
  0x11   :  { %s3487_s13 = smov 128   ;;  %s3488_s14 = smov 8  }
  0x12   :  { %41 = dma.hbm_to_vmem [thread:$0]  %s5006_s3, 4096, %s36_s25, [#allocation6], %s3487_s13, %s3487_s13, %s3488_s14  }
  0x13   :  { %s3437_s19 = scalar_lea.hbm %s5004_s1, 2048 }
  0x14   :  { %p3438_p8 = scmp.ne.s32.totalorder %s5004_s1, %s3437_s19  ;;  %p3441_p9 = scmp.lt.u32.totalorder %s3437_s19, %s5004_s1 }
  0x16   :  { %p3443_p10 = pnand %p3441_p9, %p3438_p8 }
  0x18   :  { %3446 = shalt.err (!%p3443_p10)
}
  0x19   :  { %s3447_s24 = scalar_lea.vmem %s3535_s27, 2048  ;;  %p3452_p12 = scmp.lt.s32.totalorder %s3535_s27, %s3535_s27 }
  0x1a   :  { %p3448_p11 = scmp.ne.s32.totalorder %s3535_s27, %s3447_s24  ;;  %p3453_p13 = scmp.lt.s32.totalorder %s3447_s24, %s3447_s24 }
  0x1c   :  { %p3454_p0 = por %p3453_p13, %p3452_p12 }
  0x1e   :  { %p3455_p1 = pnand %p3454_p0, %p3448_p11 }
  0x20   :  { %3458 = shalt.err (!%p3455_p1)
}
  0x21   :  { %27 = dma.hbm_to_vmem [thread:$0]  %s5004_s1, 2048, %s3535_s27, [#allocation4], %s3487_s13, %s3487_s13, %s3488_s14  }
  0x22   :  { %s3489_s26 = smov [#allocation7]   ;;  %s3459_s8 = scalar_lea.hbm %s5008_s5, 2048 }
  0x23   :  { %s49_s28 = sshll.u32 %s3489_s26, 4  ;;  %p3460_p2 = scmp.ne.s32.totalorder %s5008_s5, %s3459_s8  ;;  %s50_s28 = int_to_ptr.vmem [resolvable:$true] %s49_s28 }
  0x24   :  { %p3463_p3 = scmp.lt.u32.totalorder %s3459_s8, %s5008_s5 }
  0x26   :  { %p3465_p4 = pnand %p3463_p3, %p3460_p2 }
  0x28   :  { %3468 = shalt.err (!%p3465_p4)
}
  0x29   :  { %s3469_s15 = scalar_lea.vmem %s50_s28, 2048  ;;  %p3474_p6 = scmp.lt.s32.totalorder %s50_s28, %s50_s28 }
  0x2a   :  { %p3470_p5 = scmp.ne.s32.totalorder %s50_s28, %s3469_s15  ;;  %p3475_p7 = scmp.lt.s32.totalorder %s3469_s15, %s3469_s15 }
  0x2c   :  { %p3476_p8 = por %p3475_p7, %p3474_p6 }
  0x2e   :  { %p3477_p9 = pnand %p3476_p8, %p3470_p5 }
  0x30   :  { %3480 = shalt.err (!%p3477_p9)
}
  0x31   :  { %s3490_s1 = smov 64   ;;  %s3491_s27 = smov 4  }
  0x32   :  { %55 = dma.hbm_to_vmem [thread:$0]  %s5008_s5, 2048, %s50_s28, [#allocation6], %s3490_s1, %s3490_s1, %s3491_s27  }
  0x33   :  { %3481 = dma.done.wait [#allocation4], 2048  }
  0x34   :  { %3482 = vsyncadd [#allocation4], 4294965248 }
  0x35   :  { %3483 = dma.done.wait [#allocation6], 6144  }
  0x36   :  { %3484 = vsyncadd [#allocation6], 4294961152  ;;  %v3492_v0 = vmov 0   ;;  %v3111_v1 = vld [vmem:[#allocation3 + $0x4] ss:$8 sps:$4 sm:$0xff]   ;;  %v3137_v37 = vld [vmem:[%s5003_s0 + $0x10] sm:$0xff]   ;;  %v5013_v52 = vlaneseq }
  0x37   :  { %262 = vmatprep.mubr.bf16.mxu0 %v3492_v0  ;;  %v3113_v2 = vld [vmem:[#allocation3] ss:$8 sps:$4 sm:$0xff]   ;;  %230 = vmatprep.subr.bf16.mxu0 %v3111_v1  ;;  %v3114_v3 = vld [vmem:[#allocation3 + $0x14] ss:$8 sps:$4 sm:$0xff]   ;;  %v3116_v4 = vld [vmem:[#allocation3 + $0x10] ss:$8 sps:$4 sm:$0xff]  }
  0x38   :  { %231 = vmatpush1.bf16.msra.mxu0 %v3113_v2  ;;  %v3117_v5 = vld [vmem:[#allocation3 + $0x24] ss:$8 sps:$4 sm:$0xff]   ;;  %v3119_v6 = vld [vmem:[#allocation3 + $0x20] ss:$8 sps:$4 sm:$0xff]   ;;  %v3120_v7 = vld [vmem:[#allocation3 + $0x34] ss:$8 sps:$4 sm:$0xff]  }
  0x39   :  { %232 = vmatprep.subr.bf16.mxu0 %v3114_v3  ;;  %v3122_v8 = vld [vmem:[#allocation3 + $0x30] ss:$8 sps:$4 sm:$0xff]   ;;  %v3123_v9 = vld [vmem:[#allocation3 + $0x44] ss:$8 sps:$4 sm:$0xff]   ;;  %v3125_v10 = vld [vmem:[#allocation3 + $0x40] ss:$8 sps:$4 sm:$0xff]  }
  0x3a   :  { %v3579_v11 = vld [vmem:[#allocation5 + $0x4] ss:$8 sps:$4 sm:$0xff]   ;;  %v3581_v12 = vld [vmem:[#allocation5] ss:$8 sps:$4 sm:$0xff]   ;;  %v3583_v13 = vld [vmem:[#allocation5 + $0x14] ss:$8 sps:$4 sm:$0xff]  }
  0x3b   :  { %v3126_v14 = vld [vmem:[#allocation3 + $0x54] ss:$8 sps:$4 sm:$0xff]   ;;  %635 = vmatprep.subr.bf16.mxu1 %v3579_v11  ;;  %v3587_v15 = vld [vmem:[#allocation5 + $0x10] ss:$8 sps:$4 sm:$0xff]   ;;  %v3590_v16 = vld [vmem:[#allocation5 + $0x24] ss:$8 sps:$4 sm:$0xff]  }
  0x3c   :  { %233 = vmatpush1.bf16.msra.mxu0 %v3116_v4  ;;  %636 = vmatpush1.bf16.msra.mxu1 %v3581_v12  ;;  %v3128_v17 = vld [vmem:[#allocation3 + $0x50] ss:$8 sps:$4 sm:$0xff]   ;;  %v3129_v18 = vld [vmem:[#allocation3 + $0x64] ss:$8 sps:$4 sm:$0xff]   ;;  %v3593_v19 = vld [vmem:[#allocation5 + $0x20] ss:$8 sps:$4 sm:$0xff]  }
  0x3d   :  { %234 = vmatprep.subr.bf16.mxu0 %v3117_v5  ;;  %637 = vmatprep.subr.bf16.mxu1 %v3583_v13  ;;  %v3596_v20 = vld [vmem:[#allocation5 + $0x34] ss:$8 sps:$4 sm:$0xff]   ;;  %v3131_v21 = vld [vmem:[#allocation3 + $0x60] ss:$8 sps:$4 sm:$0xff]   ;;  %v3134_v23 = vld [vmem:[#allocation3 + $0x70] ss:$8 sps:$4 sm:$0xff]  }
  0x3e   :  { %v3132_v22 = vld [vmem:[#allocation3 + $0x74] ss:$8 sps:$4 sm:$0xff]   ;;  %v3599_v24 = vld [vmem:[#allocation5 + $0x30] ss:$8 sps:$4 sm:$0xff]   ;;  %v3601_v25 = vld [vmem:[#allocation5 + $0x44] ss:$8 sps:$4 sm:$0xff]  }
  0x3f   :  { %v3604_v26 = vld [vmem:[#allocation5 + $0x40] ss:$8 sps:$4 sm:$0xff]   ;;  %v3609_v28 = vld [vmem:[#allocation5 + $0x54] ss:$8 sps:$4 sm:$0xff]   ;;  %v3613_v29 = vld [vmem:[#allocation5 + $0x50] ss:$8 sps:$4 sm:$0xff]  }
  0x40   :  { %235 = vmatpush1.bf16.msra.mxu0 %v3119_v6  ;;  %638 = vmatpush1.bf16.msra.mxu1 %v3587_v15  ;;  %v3135_v27 = vld [vmem:[%s5003_s0] sm:$0xff]   ;;  %v3136_v32 = vld [vmem:[%s5003_s0 + $0x8] sm:$0xff]   ;;  %v3625_v33 = vld [vmem:[#allocation5 + $0x74] ss:$8 sps:$4 sm:$0xff]   ;;  %v3687_v53 = vshrl.u32 %v5013_v52, 7 }
  0x41   :  { %236 = vmatprep.subr.bf16.mxu0 %v3120_v7  ;;  %639 = vmatprep.subr.bf16.mxu1 %v3590_v16  ;;  %v3615_v30 = vld [vmem:[#allocation5 + $0x64] ss:$8 sps:$4 sm:$0xff]   ;;  %v3620_v31 = vld [vmem:[#allocation5 + $0x60] ss:$8 sps:$4 sm:$0xff]   ;;  %v3630_v34 = vld [vmem:[#allocation5 + $0x70] ss:$8 sps:$4 sm:$0xff]  }
  0x42   :  { %v3633_v35 = vld [vmem:[#allocation5 + $0x84] ss:$8 sps:$4 sm:$0xff]   ;;  %v3637_v36 = vld [vmem:[#allocation5 + $0x80] ss:$8 sps:$4 sm:$0xff]   ;;  %v3644_v38 = vld [vmem:[#allocation5 + $0x94] ss:$8 sps:$4 sm:$0xff]  }
  0x43   :  { %v3646_v39 = vld [vmem:[#allocation5 + $0x90] ss:$8 sps:$4 sm:$0xff]   ;;  %v3650_v40 = vld [vmem:[#allocation5 + $0xa4] ss:$8 sps:$4 sm:$0xff]   ;;  %v3652_v41 = vld [vmem:[#allocation5 + $0xa0] ss:$8 sps:$4 sm:$0xff]  }
  0x44   :  { %237 = vmatpush1.bf16.msra.mxu0 %v3122_v8  ;;  %640 = vmatpush1.bf16.msra.mxu1 %v3593_v19  ;;  %v3656_v42 = vld [vmem:[#allocation5 + $0xb4] ss:$8 sps:$4 sm:$0xff]   ;;  %v3658_v43 = vld [vmem:[#allocation5 + $0xb0] ss:$8 sps:$4 sm:$0xff]   ;;  %v3662_v44 = vld [vmem:[#allocation5 + $0xc4] ss:$8 sps:$4 sm:$0xff]  }
  0x45   :  { %238 = vmatprep.subr.bf16.mxu0 %v3123_v9  ;;  %641 = vmatprep.subr.bf16.mxu1 %v3596_v20  ;;  %v3664_v45 = vld [vmem:[#allocation5 + $0xc0] ss:$8 sps:$4 sm:$0xff]   ;;  %v3668_v46 = vld [vmem:[#allocation5 + $0xd4] ss:$8 sps:$4 sm:$0xff]   ;;  %v3670_v47 = vld [vmem:[#allocation5 + $0xd0] ss:$8 sps:$4 sm:$0xff]  }
  0x46   :  { %v3674_v48 = vld [vmem:[#allocation5 + $0xe4] ss:$8 sps:$4 sm:$0xff]   ;;  %v3676_v49 = vld [vmem:[#allocation5 + $0xe0] ss:$8 sps:$4 sm:$0xff]   ;;  %v3680_v50 = vld [vmem:[#allocation5 + $0xf4] ss:$8 sps:$4 sm:$0xff]  }
  0x47   :  { %v3682_v51 = vld [vmem:[#allocation5 + $0xf0] ss:$8 sps:$4 sm:$0xff]   ;;  %v5017_v54 = vsub.s32 0, %v3687_v53  ;;  %v120_v55 = vld [vmem:[%s5005_s2] sm:$0x3]  ;;  %v5016_v56 = vsub.s32 1, %v3687_v53 }
  0x48   :  { %239 = vmatpush1.bf16.msra.mxu0 %v3125_v10  ;;  %642 = vmatpush1.bf16.msra.mxu1 %v3599_v24  ;;  %vm70_vm0 = vcmp.lt.s32.totalorder %v3687_v53, 2 }
  0x49   :  { %240 = vmatprep.subr.bf16.mxu0 %v3126_v14  ;;  %643 = vmatprep.subr.bf16.mxu1 %v3601_v25  ;;  %v125_v57 = vrot.slane %v120_v55, %v5017_v54  ;;  %v129_v58 = vrot.slane %v120_v55, %v5016_v56 }
  0x4c   :  { %241 = vmatpush1.bf16.msra.mxu0 %v3128_v17  ;;  %644 = vmatpush1.bf16.msra.mxu1 %v3604_v26 }
  0x4d   :  { %242 = vmatprep.subr.bf16.mxu0 %v3129_v18  ;;  %645 = vmatprep.subr.bf16.mxu1 %v3609_v28 }
  0x50   :  { %243 = vmatpush1.bf16.msra.mxu0 %v3131_v21  ;;  %646 = vmatpush1.bf16.msra.mxu1 %v3613_v29 }
  0x51   :  { %244 = vmatprep.subr.bf16.mxu0 %v3132_v22  ;;  %647 = vmatprep.subr.bf16.mxu1 %v3615_v30 }
  0x54   :  { %245 = vmatpush1.bf16.msra.mxu0 %v3134_v23  ;;  %648 = vmatpush1.bf16.msra.mxu1 %v3620_v31 }
  0x55   :  { %649 = vmatprep.subr.bf16.mxu1 %v3625_v33 }
  0x57   :  { %263 = vmatmul.mubr.bf16.vlgmr.msra.gmra.mrb[0].mxu0 %v3135_v27 }
  0x58   :  { %272 = vmatprep.mubr.bf16.mxu0 %v3492_v0  ;;  %650 = vmatpush1.bf16.msra.mxu1 %v3630_v34 }
  0x59   :  { %651 = vmatprep.subr.bf16.mxu1 %v3633_v35 }
  0x5c   :  { %652 = vmatpush1.bf16.msra.mxu1 %v3637_v36 }
  0x5d   :  { %653 = vmatprep.subr.bf16.mxu1 %v3644_v38 }
  0x5f   :  { %273 = vmatmul.mubr.bf16.gmra.mrb[4].mxu0 %v3136_v32 }
  0x60   :  { %282 = vmatprep.mubr.bf16.mxu0 %v3492_v0  ;;  %654 = vmatpush1.bf16.msra.mxu1 %v3646_v39 }
  0x61   :  { %655 = vmatprep.subr.bf16.mxu1 %v3650_v40 }
  0x64   :  { %656 = vmatpush1.bf16.msra.mxu1 %v3652_v41 }
  0x65   :  { %657 = vmatprep.subr.bf16.mxu1 %v3656_v42 }
  0x67   :  { %283 = vmatmul.mubr.bf16.gmra.mrb[8].mxu0 %v3137_v37 }
  0x68   :  { %658 = vmatpush1.bf16.msra.mxu1 %v3658_v43 }
  0x69   :  { %659 = vmatprep.subr.bf16.mxu1 %v3662_v44 }
  0x6c   :  { %660 = vmatpush1.bf16.msra.mxu1 %v3664_v45 }
  0x6d   :  { %661 = vmatprep.subr.bf16.mxu1 %v3668_v46 }
  0x70   :  { %662 = vmatpush1.bf16.msra.mxu1 %v3670_v47 }
  0x71   :  { %663 = vmatprep.subr.bf16.mxu1 %v3674_v48 }
  0x74   :  { %664 = vmatpush1.bf16.msra.mxu1 %v3676_v49 }
  0x75   :  { %665 = vmatprep.subr.bf16.mxu1 %v3680_v50 }
  0x78   :  { %666 = vmatpush1.bf16.msra.mxu1 %v3682_v51 }
 0x12a   :  { %v264_v59 = vpop.f32.mrb[0].mxu0 }
 0x12b   :  { %v3699_v60 = vadd.f32 %v264_v59, %v125_v57  ;;  %v266_v61 = vpop.f32.mrb[1].mxu0 }
 0x12c   :  { %v3701_v62 = vadd.f32 %v266_v61, %v129_v58  ;;  %v268_v63 = vpop.f32.mrb[2].mxu0 }
 0x12d   :  { %v269_v0 = vadd.f32 %v268_v63, %v125_v57  ;;  %v311_v1 = vsub.f32 0.0, %v3699_v60  ;;  %v1079_v2 = vmul.f32 0.5, %v3699_v60  ;;  %v270_v3 = vpop.f32.mrb[3].mxu0  ;;  %v356_v6 = vsel %vm70_vm0, %v3699_v60, inf }
 0x12e   :  { %v271_v4 = vadd.f32 %v270_v3, %v129_v58  ;;  %v1080_v5 = vmul.f32 0.5, %v3701_v62  ;;  %v357_v7 = vsel %vm70_vm0, %v3701_v62, inf  ;;  %v331_v14 = vsel %vm70_vm0, %v3699_v60, 0.0 }
 0x12f   :  { %v313_v8 = vmul.f32 0.33333334, %v311_v1  ;;  %v1081_v9 = vadd.f32 %v1079_v2, %v269_v0  ;;  %v358_v10 = vmin.f32 %v356_v6, %v357_v7  ;;  %v332_v18 = vsel %vm70_vm0, %v3701_v62, 0.0 }
 0x130   :  { %v3715_v17 = vadd.f32 %v1080_v5, %v271_v4  ;;  %v333_v22 = vadd.f32 %v332_v18, %v331_v14  ;;  %v344_v27 = vsel %vm70_vm0, %v3699_v60, -inf  ;;  %v345_v32 = vsel %vm70_vm0, %v3701_v62, -inf }
 0x131   :  { %v315_v21 = vmul.f32 1.442695, %v313_v8  ;;  %359 = vmin.xlane.f32.xlu1 %v358_v10  ;;  %v312_v37 = vsub.f32 0.0, %v3701_v62  ;;  %v1556_v59 = vmul.f32 0.5, %v1081_v9  ;;  %v346_v4 = vmax.f32 %v344_v27, %v345_v32 }
 0x132   :  { %v274_v23 = vpop.f32.mrb[4].mxu0  ;;  %334 = vadd.xlane.f32.xlu0 %v333_v22  ;;  %v1557_v0 = vmul.f32 0.5, %v3715_v17 }
 0x133   :  { %3202 = vpow2.f32 %v315_v21  ;;  %v275_v55 = vadd.f32 %v274_v23, %v125_v57  ;;  %v276_v61 = vpop.f32.mrb[5].mxu0  ;;  %v314_v2 = vmul.f32 0.33333334, %v312_v37 }
 0x134   :  { %v277_v63 = vadd.f32 %v276_v61, %v129_v58  ;;  %v278_v1 = vpop.f32.mrb[6].mxu0 }
 0x135   :  { %v3728_v3 = vadd.f32 %v1556_v59, %v275_v55  ;;  %v3730_v5 = vadd.f32 %v278_v1, %v125_v57  ;;  %v280_v6 = vpop.f32.mrb[7].mxu0  ;;  %v317_v10 = vmul.f32 1.442695, %v314_v2  ;;  %v1083_v2 = vmul.f32 0.75, %v3699_v60 }
 0x136   :  { %v3732_v7 = vadd.f32 %v1557_v0, %v277_v63  ;;  %v3734_v8 = vadd.f32 %v280_v6, %v129_v58  ;;  %347 = vmax.xlane.f32.xlu0 %v346_v4  ;;  %v5011_v0 = vmov 0.0  }
 0x137   :  { %5063 = vst [vmem:[#allocation10_spill] sm:$0xff] %v3728_v3  ;;  %5064 = vst [vmem:[#allocation11_spill] sm:$0xff] %v3730_v5  ;;  %3204 = vpow2.f32 %v317_v10 }
 0x138   :  { %5065 = vst [vmem:[#allocation12_spill] sm:$0xff] %v3732_v7  ;;  %5066 = vst [vmem:[#allocation13_spill] sm:$0xff] %v3734_v8 }
 0x13a   :  { %v284_v14 = vpop.f32.mrb[8].mxu0 }
 0x13b   :  { %v3736_v18 = vadd.f32 %v284_v14, %v125_v57  ;;  %v286_v21 = vpop.f32.mrb[9].mxu0 }
 0x13c   :  { %v3738_v22 = vadd.f32 %v286_v21, %v129_v58  ;;  %v288_v23 = vpop.f32.mrb[10].mxu0 }
 0x13d   :  { %5067 = vst [vmem:[#allocation14_spill] sm:$0xff] %v3736_v18  ;;  %v3203_v37 = vpop.eup %3202  ;;  %v290_v55 = vpop.f32.mrb[11].mxu0 }
 0x13e   :  { %5068 = vst [vmem:[#allocation15_spill] sm:$0xff] %v3738_v22  ;;  %v2709_v27 = vadd.f32 -1.0, %v3203_v37 }
 0x140   :  { %v321_v32 = vmul.f32 0.5, %v2709_v27 }
 0x141   :  { %v3205_v59 = vpop.eup %3204 }
 0x142   :  { %v323_v61 = vadd.f32 0.25, %v321_v32  ;;  %v2710_v63 = vadd.f32 -1.0, %v3205_v59  ;;  %v5014_v59 = vmov 1.0|1.0  }
 0x144   :  { %vm325_vm1 = vcmp.gt.f32.partialorder %v3699_v60, %v323_v61  ;;  %v322_v57 = vmul.f32 0.5, %v2710_v63  ;;  %v381_v6 = vsel %vm70_vm0, %v323_v61, -inf  ;;  %v368_v10 = vsel %vm70_vm0, %v323_v61, 0.0 }
 0x145   :  { %v2711_v1 = vsel %vm325_vm1, 1.0, %v5011_v0  ;;  %v1084_v63 = vmul.f32 0.75, %v3701_v62  ;;  %vm2747_vm4 = vmpackc.low %vm325_vm1, %vm325_vm1 }
 0x146   :  { %v1085_v58 = vsub.f32 1.0, %v2711_v1  ;;  %v324_v4 = vadd.f32 0.25, %v322_v57  ;;  %v393_v57 = vsel %vm70_vm0, %v323_v61, inf  ;;  %v3778_v61 = vld [vmem:[#allocation7 + $0x48] sm:$0xff]  }
 0x147   :  { %5070 = vst [vmem:[#allocation17_spill] sm:$0xff] %v3778_v61 }
 0x148   :  { %v1087_v14 = vmul.f32 %v1085_v58, %v1083_v2  ;;  %vm326_vm2 = vcmp.gt.f32.partialorder %v3701_v62, %v324_v4  ;;  %v382_v21 = vsel %vm70_vm0, %v324_v4, -inf  ;;  %v369_v23 = vsel %vm70_vm0, %v324_v4, 0.0 }
 0x149   :  { %v2712_v55 = vsel %vm326_vm2, 1.0, %v5011_v0  ;;  %vm2745_vm3 = vmpackc.low %vm326_vm2, %vm326_vm2  ;;  %v383_v27 = vmax.f32 %v381_v6, %v382_v21  ;;  %v370_v32 = vadd.f32 %v369_v23, %v368_v10  ;;  %v394_v2 = vsel %vm70_vm0, %v324_v4, inf  ;;  %v3770_v10 = vld [vmem:[#allocation7 + $0x40] sm:$0xff]   ;;  %v3780_v4 = vld [vmem:[#allocation7 + $0x8] sm:$0xff]  }
 0x14a   :  { %v3754_v37 = vadd.f32 %v1087_v14, %v1081_v9  ;;  %2746 = vmatprep.mubr.msk.bf16.mxu1 %vm2745_vm3, %v5014_v59  ;;  %v1086_v1 = vsub.f32 1.0, %v2712_v55  ;;  %v395_v58 = vmin.f32 %v393_v57, %v394_v2  ;;  %v3772_v14 = vld [vmem:[#allocation7] sm:$0xff]   ;;  %2847 = vmatprep.subr.bf16.mxu0 %v3770_v10  ;;  %5071 = vst [vmem:[#allocation18_spill] sm:$0xff] %v3780_v4  ;;  %v3788_v21 = vld [vmem:[#allocation7 + $0x10] sm:$0xff]   ;;  %v3794_v23 = vld [vmem:[#allocation7 + $0x58] sm:$0xff]  }
 0x14b   :  { %384 = vmax.xlane.f32.xlu0 %v383_v27  ;;  %371 = vadd.xlane.f32.xlu1 %v370_v32  ;;  %5069 = vst [vmem:[#allocation16_spill] sm:$0xff] %v3772_v14  ;;  %5073 = vst [vmem:[#allocation20_spill] sm:$0xff] %v3788_v21  ;;  %v3796_v55 = vld [vmem:[#allocation7 + $0x18] sm:$0xff]   ;;  %v3802_v27 = vld [vmem:[#allocation7 + $0x60] sm:$0xff]  }
 0x14c   :  { %v1088_v9 = vmul.f32 %v1086_v1, %v1084_v63  ;;  %2748 = vmatmul.mubr.msk.bf16.vlgmr.msra.gmra.mrb[0].mxu1 %vm2747_vm4, %v5014_v59  ;;  %2869 = vmatprep.subr.bf16.mxu1 %v3770_v10  ;;  %5074 = vst [vmem:[#allocation21_spill] sm:$0xff] %v3794_v23  ;;  %5075 = vst [vmem:[#allocation22_spill] sm:$0xff] %v3796_v55  ;;  %v3804_v32 = vld [vmem:[#allocation7 + $0x20] sm:$0xff]   ;;  %v3810_v63 = vld [vmem:[#allocation7 + $0x68] sm:$0xff]  }
 0x14d   :  { %2848 = vmatpush3.bf16.msra.mxu0 %v3772_v14  ;;  %2870 = vmatpush3.bf16.msra.mxu1 %v3772_v14  ;;  %5076 = vst [vmem:[#allocation23_spill] sm:$0xff] %v3802_v27  ;;  %5077 = vst [vmem:[#allocation24_spill] sm:$0xff] %v3804_v32  ;;  %v3812_v1 = vld [vmem:[#allocation7 + $0x28] sm:$0xff]   ;;  %v3818_v57 = vld [vmem:[#allocation7 + $0x70] sm:$0xff]  }
 0x14e   :  { %v3768_v6 = vadd.f32 %v1088_v9, %v3715_v17  ;;  %2849 = vmatprep.subr.bf16.mxu0 %v3778_v61  ;;  %2871 = vmatprep.subr.bf16.mxu1 %v3778_v61  ;;  %v3786_v17 = vld [vmem:[#allocation7 + $0x50] sm:$0xff]   ;;  %5078 = vst [vmem:[#allocation25_spill] sm:$0xff] %v3810_v63  ;;  %5079 = vst [vmem:[#allocation26_spill] sm:$0xff] %v3812_v1  ;;  %v3823_v9 = vld [vmem:[#allocation7 + $0x78] sm:$0xff]  }
 0x14f   :  { %396 = vmin.xlane.f32.xlu1 %v395_v58  ;;  %5072 = vst [vmem:[#allocation19_spill] sm:$0xff] %v3786_v17  ;;  %5080 = vst [vmem:[#allocation27_spill] sm:$0xff] %v3818_v57  ;;  %v3820_v2 = vld [vmem:[#allocation7 + $0x30] sm:$0xff]   ;;  %v3827_v58 = vld [vmem:[#allocation7 + $0x38] sm:$0xff]  }
 0x150   :  { %5081 = vst [vmem:[#allocation28_spill] sm:$0xff] %v3820_v2  ;;  %5082 = vst [vmem:[#allocation29_spill] sm:$0xff] %v3823_v9 }
 0x151   :  { %2850 = vmatpush3.bf16.msra.mxu0 %v3780_v4  ;;  %2872 = vmatpush3.bf16.msra.mxu1 %v3780_v4  ;;  %5083 = vst [vmem:[#allocation30_spill] sm:$0xff] %v3827_v58 }
 0x152   :  { %2851 = vmatprep.subr.bf16.mxu0 %v3786_v17  ;;  %2873 = vmatprep.subr.bf16.mxu1 %v3786_v17 }
 0x155   :  { %2852 = vmatpush3.bf16.msra.mxu0 %v3788_v21  ;;  %2874 = vmatpush3.bf16.msra.mxu1 %v3788_v21 }
 0x156   :  { %2853 = vmatprep.subr.bf16.mxu0 %v3794_v23  ;;  %2875 = vmatprep.subr.bf16.mxu1 %v3794_v23 }
 0x159   :  { %2854 = vmatpush3.bf16.msra.mxu0 %v3796_v55  ;;  %2876 = vmatpush3.bf16.msra.mxu1 %v3796_v55 }
 0x15a   :  { %2855 = vmatprep.subr.bf16.mxu0 %v3802_v27  ;;  %2877 = vmatprep.subr.bf16.mxu1 %v3802_v27 }
 0x15d   :  { %2856 = vmatpush3.bf16.msra.mxu0 %v3804_v32  ;;  %2878 = vmatpush3.bf16.msra.mxu1 %v3804_v32 }
 0x15e   :  { %2857 = vmatprep.subr.bf16.mxu0 %v3810_v63  ;;  %2879 = vmatprep.subr.bf16.mxu1 %v3810_v63 }
 0x161   :  { %2858 = vmatpush3.bf16.msra.mxu0 %v3812_v1  ;;  %2880 = vmatpush3.bf16.msra.mxu1 %v3812_v1 }
 0x162   :  { %2859 = vmatprep.subr.bf16.mxu0 %v3818_v57  ;;  %2881 = vmatprep.subr.bf16.mxu1 %v3818_v57 }
 0x165   :  { %2860 = vmatpush3.bf16.msra.mxu0 %v3820_v2  ;;  %2882 = vmatpush3.bf16.msra.mxu1 %v3820_v2 }
 0x166   :  { %2861 = vmatprep.subr.bf16.mxu0 %v3823_v9  ;;  %2883 = vmatprep.subr.bf16.mxu1 %v3823_v9 }
 0x169   :  { %2862 = vmatpush3.bf16.msra.mxu0 %v3827_v58  ;;  %2884 = vmatpush3.bf16.msra.mxu1 %v3827_v58 }
 0x16a   :  { %1225 = vmatprep.subr.bf16.mxu0 %v3579_v11  ;;  %1702 = vmatprep.subr.bf16.mxu1 %v3579_v11 }
 0x1be   :  { %v360_v0 = vpop.xlane.xlu1 %359 }
 0x1bf   :  { %v361_v52 = vrot.slane %v360_v0, 4  ;;  %v335_v59 = vpop.xlane.xlu0 %334 }
 0x1c0   :  { %v336_v54 = vrot.slane %v335_v59, 4 }
 0x1c1   :  { %v362_v56 = vmin.f32 %v360_v0, %v361_v52 }
 0x1c2   :  { %v337_v22 = vadd.f32 %v336_v54, %v335_v59 }
 0x1c3   :  { %v363_v18 = vrot.slane %v362_v56, 2  ;;  %v348_v8 = vpop.xlane.xlu0 %347 }
 0x1c4   :  { %v338_v5 = vrot.slane %v337_v22, 2  ;;  %v349_v3 = vrot.slane %v348_v8, 4 }
 0x1c5   :  { %v364_v2 = vmin.f32 %v362_v56, %v363_v18 }
 0x1c6   :  { %v350_v7 = vmax.f32 %v348_v8, %v349_v3  ;;  %v339_v9 = vadd.f32 %v338_v5, %v337_v22 }
 0x1c7   :  { %v365_v32 = vrot.slane %v364_v2, 1 }
 0x1c8   :  { %v351_v57 = vrot.slane %v350_v7, 2  ;;  %v340_v1 = vrot.slane %v339_v9, 1 }
 0x1c9   :  { %v366_v55 = vmin.f32 %v364_v2, %v365_v32 }
 0x1ca   :  { %v341_v58 = vadd.f32 %v340_v1, %v339_v9  ;;  %v352_v63 = vmax.f32 %v350_v7, %v351_v57 }
 0x1cc   :  { %2957 = vpush %v341_v58  ;;  %v353_v11 = vrot.slane %v352_v63, 1 }
 0x1ce   :  { %v354_v27 = vmax.f32 %v352_v63, %v353_v11 }
 0x1d0   :  { %2959 = vpush %v354_v27 }
 0x1d1   :  { %2961 = vpush %v366_v55 }
 0x1d8   :  { %v385_v52 = vpop.xlane.xlu0 %384  ;;  %v372_v54 = vpop.xlane.xlu1 %371 }
 0x1d9   :  { %v386_v0 = vrot.slane %v385_v52, 4  ;;  %v373_v59 = vrot.slane %v372_v54, 4 }
 0x1db   :  { %v387_v23 = vmax.f32 %v385_v52, %v386_v0  ;;  %v374_v21 = vadd.f32 %v373_v59, %v372_v54 }
 0x1dc   :  { %v397_v3 = vpop.xlane.xlu1 %396 }
 0x1dd   :  { %v388_v5 = vrot.slane %v387_v23, 2  ;;  %v375_v56 = vrot.slane %v374_v21, 2  ;;  %v398_v8 = vrot.slane %v397_v3, 4 }
 0x1df   :  { %v399_v18 = vmin.f32 %v397_v3, %v398_v8  ;;  %v376_v22 = vadd.f32 %v375_v56, %v374_v21  ;;  %v389_v7 = vmax.f32 %v387_v23, %v388_v5  ;;  %v1091_v8 = vsub.f32 %v3699_v60, %v3754_v37 }
 0x1e1   :  { %v400_v1 = vrot.slane %v399_v18, 2  ;;  %v377_v57 = vrot.slane %v376_v22, 1  ;;  %v390_v9 = vrot.slane %v389_v7, 1 }
 0x1e3   :  { %v378_v63 = vadd.f32 %v377_v57, %v376_v22  ;;  %v391_v32 = vmax.f32 %v389_v7, %v390_v9  ;;  %v401_v27 = vmin.f32 %v399_v18, %v400_v1  ;;  %v1092_v18 = vsub.f32 %v3701_v62, %v3768_v6  ;;  %v79_v1 = vld [vmem:[%s5007_s4] sm:$0x3] }
 0x1e4   :  { %v1093_v22 = vmul.f32 0.33333334, %v1091_v8 }
 0x1e5   :  { %2963 = vpush %v378_v63  ;;  %v402_v55 = vrot.slane %v401_v27, 1  ;;  %v1094_v7 = vmul.f32 0.33333334, %v1092_v18  ;;  %v5084_v63 = vsub.s32 0, %v3687_v53 }
 0x1e6   :  { %2965 = vpush %v391_v32  ;;  %v1095_v57 = vmul.f32 1.442695, %v1093_v22  ;;  %v5086_v32 = vsub.s32 1, %v3687_v53 }
 0x1e7   :  { %v403_v2 = vmin.f32 %v401_v27, %v402_v55  ;;  %v1097_v9 = vmul.f32 1.442695, %v1094_v7 }
 0x1e9   :  { %2967 = vpush %v403_v2 }
 0x1fd   :  { %s2958_s2 = spop %2957 }
 0x1fe   :  { %s343_s3 = smul.f32 0.001953125, %s2958_s2 }
 0x201   :  { %s2960_s22 = spop %2959 }
 0x202   :  { %s2962_s23 = spop %2961 }
 0x203   :  { %s405_s24 = ssub.f32 %s2960_s22, %s2962_s23 }
 0x205   :  { %s406_s25 = smul.f32 0.2, %s405_s24 }
 0x207   :  { %s407_s26 = ssub.f32 %s343_s3, %s406_s25 }
 0x209   :  { %v411_v21 = vstv %s407_s26 }
 0x20a   :  { %v3837_v23 = vsub.f32 %v3699_v60, %v411_v21  ;;  %v3840_v58 = vsub.f32 %v3701_v62, %v411_v21  ;;  %v3861_v60 = vrot.slane %v79_v1, %v5084_v63  ;;  %v3865_v62 = vrot.slane %v79_v1, %v5086_v32 }
 0x20c   :  { %v3843_v11 = vmul.f32 0.16666667, %v3837_v23  ;;  %v3846_v52 = vmul.f32 0.16666667, %v3840_v58  ;;  %5085 = vst [vmem:[#allocation31_spill] sm:$0xff] %v3861_v60  ;;  %5087 = vst [vmem:[#allocation32_spill] sm:$0xff] %v3865_v62 }
 0x20e   :  { %v418_v54 = vand.u32 2147483647, %v3843_v11  ;;  %v419_v0 = vand.u32 2147483647, %v3846_v52 }
 0x210   :  { %v420_v59 = vsub.f32 0.0, %v418_v54  ;;  %v421_v3 = vsub.f32 0.0, %v419_v0 }
 0x212   :  { %v422_v5 = vmul.f32 1.442695, %v420_v59  ;;  %v424_v56 = vmul.f32 1.442695, %v421_v3 }
 0x214   :  { %3206 = vpow2.f32 %v422_v5 }
 0x215   :  { %3208 = vpow2.f32 %v424_v56 }
 0x216   :  { %s3854_s28 = spop %2963  ;;  %3210 = vpow2.f32 %v1095_v57 }
 0x217   :  { %s2966_s8 = spop %2965  ;;  %3212 = vpow2.f32 %v1097_v9  ;;  %s380_s11 = smul.f32 0.001953125, %s3854_s28 }
 0x21a   :  { %s2968_s9 = spop %2967 }
 0x21b   :  { %s408_s10 = ssub.f32 %s2966_s8, %s2968_s9 }
 0x21d   :  { %s409_s4 = smul.f32 0.2, %s408_s10 }
 0x21e   :  { %v3207_v27 = vpop.eup %3206 }
 0x21f   :  { %v3209_v55 = vpop.eup %3208  ;;  %v426_v2 = vadd.f32 1.0, %v3207_v27  ;;  %v669_v21 = vpop.f32.mrb[0].mxu1  ;;  %s410_s12 = ssub.f32 %s380_s11, %s409_s4 }
 0x220   :  { %v427_v54 = vadd.f32 1.0, %v3209_v55  ;;  %v3868_v0 = vadd.f32 %v669_v21, %v3861_v60  ;;  %v671_v59 = vpop.f32.mrb[1].mxu1 }
 0x221   :  { %3214 = vlog2.f32 %v426_v2  ;;  %v3871_v3 = vadd.f32 %v671_v59, %v3865_v62  ;;  %v673_v5 = vpop.f32.mrb[2].mxu1  ;;  %v3211_v59 = vpop.eup %3210 }
 0x222   :  { %3216 = vlog2.f32 %v427_v54  ;;  %v674_v56 = vpop.f32.mrb[3].mxu1  ;;  %v713_v8 = vsel %vm70_vm0, %v3868_v0, -inf  ;;  %v700_v22 = vsel %vm70_vm0, %v3868_v0, 0.0  ;;  %v725_v63 = vsel %vm70_vm0, %v3868_v0, inf }
 0x223   :  { %v714_v18 = vsel %vm70_vm0, %v3871_v3, -inf  ;;  %v701_v7 = vsel %vm70_vm0, %v3871_v3, 0.0  ;;  %v681_v9 = vsub.f32 0.0, %v3871_v3  ;;  %v726_v32 = vsel %vm70_vm0, %v3871_v3, inf  ;;  %v3213_v56 = vpop.eup %3212 }
 0x224   :  { %v715_v1 = vmax.f32 %v713_v8, %v714_v18  ;;  %v702_v57 = vadd.f32 %v701_v7, %v700_v22  ;;  %v680_v27 = vsub.f32 0.0, %v3868_v0  ;;  %v727_v21 = vmin.f32 %v725_v63, %v726_v32 }
 0x225   :  { %v683_v55 = vmul.f32 0.33333334, %v681_v9  ;;  %v436_v18 = vstv %s410_s12  ;;  %v416_v7 = vmax.f32 %v3843_v11, 0.0  ;;  %v435_v63 = vmul.f32 0.01, %v3840_v58 }
 0x226   :  { %716 = vmax.xlane.f32.xlu1 %v715_v1  ;;  %703 = vadd.xlane.f32.xlu0 %v702_v57  ;;  %v682_v2 = vmul.f32 0.33333334, %v680_v27  ;;  %v434_v1 = vmul.f32 0.01, %v3837_v23  ;;  %v417_v57 = vmax.f32 %v3846_v52, 0.0 }
 0x227   :  { %v686_v54 = vmul.f32 1.442695, %v683_v55  ;;  %v2775_v55 = vadd.f32 -1.0, %v3211_v59 }
 0x228   :  { %v684_v5 = vmul.f32 1.442695, %v682_v2  ;;  %v437_v27 = vadd.f32 %v436_v18, %v434_v1 }
 0x229   :  { %3218 = vpow2.f32 %v686_v54  ;;  %v2776_v54 = vadd.f32 -1.0, %v3213_v56  ;;  %v1103_v4 = vmul.f32 0.5, %v2775_v55 }
 0x22a   :  { %728 = vmin.xlane.f32.xlu0 %v727_v21  ;;  %3220 = vpow2.f32 %v684_v5  ;;  %v438_v21 = vadd.f32 %v436_v18, %v435_v63 }
 0x22b   :  { %v3215_v8 = vpop.eup %3214  ;;  %v1104_v11 = vmul.f32 0.5, %v2776_v54 }
 0x22c   :  { %v3217_v22 = vpop.eup %3216  ;;  %v429_v62 = vmul.f32 0.6931472, %v3215_v8 }
 0x22d   :  { %v431_v9 = vmul.f32 0.6931472, %v3217_v22 }
 0x22e   :  { %v432_v32 = vadd.f32 %v429_v62, %v416_v7 }
 0x22f   :  { %v433_v2 = vadd.f32 %v431_v9, %v417_v57 }
 0x230   :  { %v439_v60 = vadd.f32 %v437_v27, %v432_v32 }
 0x231   :  { %v440_v17 = vadd.f32 %v438_v21, %v433_v2  ;;  %v5088_v2 = vmov 1.0|1.0  }
 0x232   :  { %v1101_v5 = vmul.f32 0.5, %v439_v60 }
 0x233   :  { %v1102_v61 = vmul.f32 0.5, %v440_v17  ;;  %v3219_v8 = vpop.eup %3218 }
 0x234   :  { %v3898_v14 = vadd.f32 %v1103_v4, %v1101_v5  ;;  %v3221_v23 = vpop.eup %3220  ;;  %v2750_v22 = vadd.f32 -1.0, %v3219_v8  ;;  %v1113_v5 = vsel %vm70_vm0, %v3754_v37, 0.0 }
 0x235   :  { %v3900_v52 = vadd.f32 %v1104_v11, %v1102_v61  ;;  %v2749_v58 = vadd.f32 -1.0, %v3221_v23  ;;  %v1114_v11 = vsel %vm70_vm0, %v3768_v6, 0.0 }
 0x236   :  { %v3905_v62 = vsel %vm70_vm0, %v3898_v14, -inf  ;;  %v691_v59 = vmul.f32 0.5, %v2750_v22  ;;  %v1150_v4 = vsel %vm70_vm0, %v3898_v14, 0.0  ;;  %v3929_v57 = vsel %vm70_vm0, %v3898_v14, inf }
 0x237   :  { %v3910_v60 = vsel %vm70_vm0, %v3900_v52, -inf  ;;  %v690_v17 = vmul.f32 0.5, %v2749_v58  ;;  %v1151_v18 = vsel %vm70_vm0, %v3900_v52, 0.0  ;;  %v3942_v32 = vsel %vm70_vm0, %v3900_v52, inf }
 0x238   :  { %v1165_v61 = vmax.f32 %v3905_v62, %v3910_v60  ;;  %v3917_v56 = vadd.f32 0.25, %v691_v59  ;;  %v3924_v1 = vadd.f32 %v1151_v18, %v1150_v4  ;;  %vm1108_vm8 = vcmp.gt.f32.partialorder %v3768_v6, %v3900_v52 }
 0x239   :  { %v3922_v7 = vadd.f32 0.25, %v690_v17  ;;  %v1177_v22 = vmin.f32 %v3929_v57, %v3942_v32  ;;  %vm2779_vm10 = vmpackc.low %vm1108_vm8, %vm1108_vm8  ;;  %v1115_v58 = vadd.f32 %v1114_v11, %v1113_v5  ;;  %vm1107_vm11 = vcmp.gt.f32.partialorder %v3754_v37, %v3898_v14 }
 0x23a   :  { %vm695_vm5 = vcmp.gt.f32.partialorder %v3871_v3, %v3917_v56  ;;  %v751_v9 = vsel %vm70_vm0, %v3917_v56, -inf  ;;  %v738_v63 = vsel %vm70_vm0, %v3917_v56, 0.0  ;;  %v763_v23 = vsel %vm70_vm0, %v3917_v56, inf  ;;  %vm2781_vm12 = vmpackc.low %vm1107_vm11, %vm1107_vm11  ;;  %v5110_v56 = vld [vmem:[#allocation32_spill] sm:$0xff] }
 0x23b   :  { %vm2769_vm6 = vmpackc.low %vm695_vm5, %vm695_vm5  ;;  %v750_v27 = vsel %vm70_vm0, %v3922_v7, -inf  ;;  %v737_v55 = vsel %vm70_vm0, %v3922_v7, 0.0  ;;  %vm694_vm7 = vcmp.gt.f32.partialorder %v3868_v0, %v3922_v7  ;;  %v762_v8 = vsel %vm70_vm0, %v3922_v7, inf }
 0x23c   :  { %2770 = vmatprep.mubr.msk.bf16.mxu0 %vm2769_vm6, %v5088_v2  ;;  %v752_v21 = vmax.f32 %v750_v27, %v751_v9  ;;  %v739_v54 = vadd.f32 %v738_v63, %v737_v55  ;;  %vm2771_vm9 = vmpackc.low %vm694_vm7, %vm694_vm7  ;;  %v764_v59 = vmin.f32 %v762_v8, %v763_v23  ;;  %v1270_v7 = vmul.f32 0.75, %v3868_v0 }
 0x23d   :  { %2772 = vmatmul.mubr.msk.bf16.vlgmr.msra.gmra.mrb[12].mxu0 %vm2771_vm9, %v5088_v2  ;;  %v1561_v52 = vmul.f32 0.75, %v3768_v6 }
 0x23e   :  { %753 = vmax.xlane.f32.xlu0 %v752_v21  ;;  %740 = vadd.xlane.f32.xlu1 %v739_v54 }
 0x23f   :  { %1226 = vmatpush1.bf16.msra.mxu0 %v3581_v12  ;;  %2780 = vmatprep.mubr.msk.bf16.mxu0 %vm2779_vm10, %v5088_v2  ;;  %v5089_v12 = vld [vmem:[#allocation16_spill] sm:$0xff] }
 0x240   :  { %1227 = vmatprep.subr.bf16.mxu0 %v3583_v13  ;;  %v5090_v13 = vld [vmem:[#allocation17_spill] sm:$0xff] }
 0x242   :  { %1116 = vadd.xlane.f32.xlu0 %v1115_v58  ;;  %765 = vmin.xlane.f32.xlu1 %v764_v59 }
 0x243   :  { %1228 = vmatpush1.bf16.msra.mxu0 %v3587_v15  ;;  %v5091_v15 = vld [vmem:[#allocation18_spill] sm:$0xff] }
 0x244   :  { %1229 = vmatprep.subr.bf16.mxu0 %v3590_v16  ;;  %v5092_v16 = vld [vmem:[#allocation19_spill] sm:$0xff] }
 0x247   :  { %1230 = vmatpush1.bf16.msra.mxu0 %v3593_v19  ;;  %v5093_v19 = vld [vmem:[#allocation20_spill] sm:$0xff] }
 0x248   :  { %1231 = vmatprep.subr.bf16.mxu0 %v3596_v20  ;;  %v5094_v20 = vld [vmem:[#allocation21_spill] sm:$0xff] }
 0x24b   :  { %1232 = vmatpush1.bf16.msra.mxu0 %v3599_v24  ;;  %v5095_v24 = vld [vmem:[#allocation22_spill] sm:$0xff] }
 0x24c   :  { %1233 = vmatprep.subr.bf16.mxu0 %v3601_v25  ;;  %v5096_v25 = vld [vmem:[#allocation23_spill] sm:$0xff] }
 0x24f   :  { %1234 = vmatpush1.bf16.msra.mxu0 %v3604_v26  ;;  %v5097_v26 = vld [vmem:[#allocation24_spill] sm:$0xff] }
 0x250   :  { %1235 = vmatprep.subr.bf16.mxu0 %v3609_v28  ;;  %v5098_v28 = vld [vmem:[#allocation25_spill] sm:$0xff] }
 0x253   :  { %1236 = vmatpush1.bf16.msra.mxu0 %v3613_v29  ;;  %v5099_v29 = vld [vmem:[#allocation26_spill] sm:$0xff] }
 0x254   :  { %1237 = vmatprep.subr.bf16.mxu0 %v3615_v30  ;;  %v5100_v30 = vld [vmem:[#allocation27_spill] sm:$0xff] }
 0x257   :  { %1238 = vmatpush1.bf16.msra.mxu0 %v3620_v31  ;;  %v5101_v31 = vld [vmem:[#allocation28_spill] sm:$0xff] }
 0x258   :  { %1239 = vmatprep.subr.bf16.mxu0 %v3625_v33  ;;  %v5102_v33 = vld [vmem:[#allocation29_spill] sm:$0xff] }
 0x25b   :  { %1240 = vmatpush1.bf16.msra.mxu0 %v3630_v34  ;;  %v5103_v34 = vld [vmem:[#allocation30_spill] sm:$0xff] }
 0x25c   :  { %1241 = vmatprep.subr.bf16.mxu0 %v3633_v35  ;;  %v3332_v35 = vld [vmem:[#allocation5 + $0x4] ss:$8 sps:$4 sm:$0xff]  }
 0x25f   :  { %1242 = vmatpush1.bf16.msra.mxu0 %v3637_v36 }
 0x260   :  { %1243 = vmatprep.subr.bf16.mxu0 %v3644_v38 }
 0x263   :  { %1244 = vmatpush1.bf16.msra.mxu0 %v3646_v39 }
 0x264   :  { %1245 = vmatprep.subr.bf16.mxu0 %v3650_v40 }
 0x267   :  { %1246 = vmatpush1.bf16.msra.mxu0 %v3652_v41 }
 0x268   :  { %1247 = vmatprep.subr.bf16.mxu0 %v3656_v42 }
 0x26b   :  { %1248 = vmatpush1.bf16.msra.mxu0 %v3658_v43 }
 0x26c   :  { %1249 = vmatprep.subr.bf16.mxu0 %v3662_v44 }
 0x26f   :  { %1250 = vmatpush1.bf16.msra.mxu0 %v3664_v45 }
 0x270   :  { %1251 = vmatprep.subr.bf16.mxu0 %v3668_v46 }
 0x273   :  { %1252 = vmatpush1.bf16.msra.mxu0 %v3670_v47 }
 0x274   :  { %1253 = vmatprep.subr.bf16.mxu0 %v3674_v48 }
 0x277   :  { %1254 = vmatpush1.bf16.msra.mxu0 %v3676_v49 }
 0x278   :  { %1255 = vmatprep.subr.bf16.mxu0 %v3680_v50 }
 0x27b   :  { %1256 = vmatpush1.bf16.msra.mxu0 %v3682_v51 }
 0x27c   :  { %2891 = vmatprep.subr.bf16.mxu0 %v3770_v10 }
 0x27e   :  { %2782 = vmatmul.mubr.msk.bf16.vlgmr.msra.gmra.mrb[16].mxu0 %vm2781_vm12, %v5088_v2 }
 0x27f   :  { %2892 = vmatpush3.bf16.msra.mxu0 %v5089_v12 }
 0x280   :  { %2893 = vmatprep.subr.bf16.mxu0 %v5090_v13 }
 0x283   :  { %2894 = vmatpush3.bf16.msra.mxu0 %v5091_v15 }
 0x284   :  { %2895 = vmatprep.subr.bf16.mxu0 %v5092_v16 }
 0x287   :  { %2896 = vmatpush3.bf16.msra.mxu0 %v5093_v19 }
 0x288   :  { %2897 = vmatprep.subr.bf16.mxu0 %v5094_v20 }
 0x28b   :  { %2898 = vmatpush3.bf16.msra.mxu0 %v5095_v24 }
 0x28c   :  { %2899 = vmatprep.subr.bf16.mxu0 %v5096_v25 }
 0x28f   :  { %2900 = vmatpush3.bf16.msra.mxu0 %v5097_v26 }
 0x290   :  { %2901 = vmatprep.subr.bf16.mxu0 %v5098_v28 }
 0x293   :  { %2902 = vmatpush3.bf16.msra.mxu0 %v5099_v29 }
 0x294   :  { %2903 = vmatprep.subr.bf16.mxu0 %v5100_v30  ;;  %v5104_v30 = vlaneseq }
 0x297   :  { %2904 = vmatpush3.bf16.msra.mxu0 %v5101_v31  ;;  %v72_v31 = vand.u32 127, %v5104_v30 }
 0x298   :  { %2905 = vmatprep.subr.bf16.mxu0 %v5102_v33 }
 0x299   :  { %vm73_vm13 = vcmp.lt.s32.totalorder %v72_v31, 80  ;;  %v1267_v31 = vmul.f32 0.5, %v3871_v3 }
 0x29a   :  { %vm4045_vm14 = vmand %vm70_vm0, %vm73_vm13 }
 0x29b   :  { %2906 = vmatpush3.bf16.msra.mxu0 %v5103_v34  ;;  %v4041_v34 = vld [vmem:[%s5009_s6] ss:$0 sm:$0xff] }
 0x29c   :  { %2179 = vmatprep.subr.bf16.mxu0 %v3332_v35 }
 0x2b3   :  { %v717_v36 = vpop.xlane.xlu1 %716  ;;  %v704_v38 = vpop.xlane.xlu0 %703 }
 0x2b4   :  { %v718_v39 = vrot.slane %v717_v36, 4  ;;  %v705_v40 = vrot.slane %v704_v38, 4 }
 0x2b6   :  { %v719_v41 = vmax.f32 %v717_v36, %v718_v39  ;;  %v706_v42 = vadd.f32 %v705_v40, %v704_v38  ;;  %v5105_v39 = vmov 0 }
 0x2b7   :  { %v729_v43 = vpop.xlane.xlu0 %728  ;;  %v5106_v39 = vsel %vm4045_vm14, 4294967295, %v5105_v39 }
 0x2b8   :  { %v720_v44 = vrot.slane %v719_v41, 2  ;;  %v707_v45 = vrot.slane %v706_v42, 2  ;;  %v730_v46 = vrot.slane %v729_v43, 4  ;;  %5107 = vst [vmem:[#allocation16_spill] sm:$0xff] %v5106_v39 }
 0x2ba   :  { %v731_v47 = vmin.f32 %v729_v43, %v730_v46  ;;  %v708_v48 = vadd.f32 %v707_v45, %v706_v42  ;;  %v721_v49 = vmax.f32 %v719_v41, %v720_v44 }
 0x2bc   :  { %v732_v50 = vrot.slane %v731_v47, 2  ;;  %v709_v51 = vrot.slane %v708_v48, 1  ;;  %v722_v10 = vrot.slane %v721_v49, 1 }
 0x2be   :  { %v710_v4 = vadd.f32 %v709_v51, %v708_v48  ;;  %v723_v17 = vmax.f32 %v721_v49, %v722_v10  ;;  %v733_v18 = vmin.f32 %v731_v47, %v732_v50 }
 0x2c0   :  { %2969 = vpush %v710_v4  ;;  %v734_v9 = vrot.slane %v733_v18, 1  ;;  %v1138_v4 = vsel %vm70_vm0, %v3754_v37, inf }
 0x2c1   :  { %2971 = vpush %v723_v17 }
 0x2c2   :  { %v735_v63 = vmin.f32 %v733_v18, %v734_v9 }
 0x2c4   :  { %2973 = vpush %v735_v63  ;;  %v1139_v63 = vsel %vm70_vm0, %v3768_v6, inf }
 0x2cb   :  { %v754_v27 = vpop.xlane.xlu0 %753  ;;  %v741_v55 = vpop.xlane.xlu1 %740 }
 0x2cc   :  { %v755_v21 = vrot.slane %v754_v27, 4  ;;  %v742_v54 = vrot.slane %v741_v55, 4 }
 0x2ce   :  { %v756_v5 = vmax.f32 %v754_v27, %v755_v21  ;;  %v743_v11 = vadd.f32 %v742_v54, %v741_v55  ;;  %v1140_v55 = vmin.f32 %v1138_v4, %v1139_v63 }
 0x2cf   :  { %v766_v8 = vpop.xlane.xlu1 %765 }
 0x2d0   :  { %v757_v23 = vrot.slane %v756_v5, 2  ;;  %v744_v58 = vrot.slane %v743_v11, 2  ;;  %v767_v59 = vrot.slane %v766_v8, 4 }
 0x2d2   :  { %v768_v12 = vmin.f32 %v766_v8, %v767_v59  ;;  %v745_v13 = vadd.f32 %v744_v58, %v743_v11  ;;  %v758_v15 = vmax.f32 %v756_v5, %v757_v23  ;;  %v1126_v5 = vsel %vm70_vm0, %v3754_v37, -inf }
 0x2d3   :  { %v1127_v11 = vsel %vm70_vm0, %v3768_v6, -inf }
 0x2d4   :  { %v769_v16 = vrot.slane %v768_v12, 2  ;;  %v746_v19 = vrot.slane %v745_v13, 1  ;;  %v759_v20 = vrot.slane %v758_v15, 1  ;;  %v1128_v23 = vmax.f32 %v1126_v5, %v1127_v11 }
 0x2d6   :  { %v747_v24 = vadd.f32 %v746_v19, %v745_v13  ;;  %v760_v25 = vmax.f32 %v758_v15, %v759_v20  ;;  %v770_v26 = vmin.f32 %v768_v12, %v769_v16 }
 0x2d8   :  { %2975 = vpush %v747_v24  ;;  %v771_v28 = vrot.slane %v770_v26, 1  ;;  %v5108_v24 = vmov 0.0  }
 0x2d9   :  { %2977 = vpush %v760_v25  ;;  %v2751_v62 = vsel %vm694_vm7, 1.0, %v5108_v24  ;;  %v2752_v60 = vsel %vm695_vm5, 1.0, %v5108_v24  ;;  %v5109_v25 = vld [vmem:[#allocation31_spill] sm:$0xff] }
 0x2da   :  { %v772_v29 = vmin.f32 %v770_v26, %v771_v28  ;;  %v1272_v57 = vsub.f32 1.0, %v2751_v62  ;;  %v1273_v32 = vsub.f32 1.0, %v2752_v60  ;;  %v1266_v28 = vmul.f32 0.5, %v3868_v0 }
 0x2dc   :  { %2979 = vpush %v772_v29 }
 0x2f1   :  { %s2970_s27 = spop %2969 }
 0x2f2   :  { %s2972_s13 = spop %2971  ;;  %s712_s17 = smul.f32 0.001953125, %s2970_s27 }
 0x2f5   :  { %s2974_s14 = spop %2973 }
 0x2f6   :  { %s774_s5 = ssub.f32 %s2972_s13, %s2974_s14 }
 0x2f8   :  { %s775_s16 = smul.f32 0.2, %s774_s5 }
 0x2fa   :  { %s776_s18 = ssub.f32 %s712_s17, %s775_s16 }
 0x2fc   :  { %v780_v51 = vstv %s776_s18 }
 0x2fd   :  { %v4068_v17 = vsub.f32 %v3868_v0, %v780_v51  ;;  %v4080_v27 = vsub.f32 %v3871_v3, %v780_v51 }
 0x2ff   :  { %v4083_v21 = vmul.f32 0.16666667, %v4068_v17  ;;  %v4095_v8 = vmul.f32 0.16666667, %v4080_v27  ;;  %v803_v62 = vmul.f32 0.01, %v4068_v17 }
 0x301   :  { %v787_v58 = vand.u32 2147483647, %v4083_v21  ;;  %v788_v59 = vand.u32 2147483647, %v4095_v8 }
 0x303   :  { %v789_v12 = vsub.f32 0.0, %v787_v58  ;;  %v790_v13 = vsub.f32 0.0, %v788_v59 }
 0x305   :  { %v791_v15 = vmul.f32 1.442695, %v789_v12  ;;  %v793_v16 = vmul.f32 1.442695, %v790_v13  ;;  %v785_v12 = vmax.f32 %v4083_v21, 0.0  ;;  %v786_v13 = vmax.f32 %v4095_v8, 0.0 }
 0x309   :  { %s4114_s19 = spop %2975 }
 0x30a   :  { %s2978_s20 = spop %2977  ;;  %s749_s22 = smul.f32 0.001953125, %s4114_s19 }
 0x30d   :  { %s2980_s0 = spop %2979 }
 0x30e   :  { %s777_s21 = ssub.f32 %s2978_s20, %s2980_s0 }
 0x310   :  { %v2863_v33 = vpop.f32.mrb[12].mxu0  ;;  %s778_s2 = smul.f32 0.2, %s777_s21 }
 0x311   :  { %v2864_v35 = vpop.f32.mrb[13].mxu0 }
 0x312   :  { %v2865_v36 = vadd.f32 %v2864_v35, %v2863_v33  ;;  %v2866_v38 = vpop.f32.mrb[14].mxu0  ;;  %v1271_v33 = vmul.f32 0.75, %v3871_v3  ;;  %s779_s23 = ssub.f32 %s749_s22, %s778_s2 }
 0x313   :  { %v2867_v40 = vpop.f32.mrb[15].mxu0  ;;  %v1274_v38 = vmul.f32 %v1272_v57, %v1270_v7 }
 0x314   :  { %v4050_v41 = vadd.f32 %v2865_v36, %v4041_v34 }
 0x316   :  { %v1003_v42 = vsel %vm4045_vm14, %v4050_v41, -inf  ;;  %v992_v43 = vsel %vm4045_vm14, %v4050_v41, 0.0  ;;  %v982_v44 = vsub.f32 0.0, %v4050_v41  ;;  %v1013_v46 = vsel %vm4045_vm14, %v4050_v41, inf }
 0x317   :  { %1004 = vmax.xlane.f32.xlu1 %v1003_v42  ;;  %993 = vadd.xlane.f32.xlu0 %v992_v43  ;;  %v1275_v43 = vmul.f32 %v1273_v32, %v1271_v33 }
 0x318   :  { %v983_v45 = vmul.f32 0.33333334, %v982_v44 }
 0x31a   :  { %v984_v47 = vmul.f32 1.442695, %v983_v45 }
 0x31b   :  { %1014 = vmin.xlane.f32.xlu0 %v1013_v46 }
 0x31c   :  { %3222 = vpow2.f32 %v984_v47 }
 0x31d   :  { %3224 = vpow2.f32 %v791_v15  ;;  %v805_v15 = vstv %s779_s23 }
 0x31e   :  { %3226 = vpow2.f32 %v793_v16  ;;  %v2778_v16 = vsel %vm1108_vm8, 1.0, %v5108_v24  ;;  %v806_v21 = vadd.f32 %v805_v15, %v803_v62  ;;  %v3343_v62 = vld [vmem:[#allocation5 + $0x50] ss:$8 sps:$4 sm:$0xff]  }
 0x326   :  { %v3223_v48 = vpop.eup %3222 }
 0x327   :  { %v2773_v49 = vadd.f32 -1.0, %v3223_v48  ;;  %v3225_v19 = vpop.eup %3224 }
 0x328   :  { %v3227_v20 = vpop.eup %3226 }
 0x329   :  { %v987_v50 = vmul.f32 0.5, %v2773_v49 }
 0x32b   :  { %v4062_v10 = vadd.f32 0.25, %v987_v50 }
 0x32d   :  { %v1034_v18 = vsel %vm4045_vm14, %v4062_v10, -inf  ;;  %v1023_v9 = vsel %vm4045_vm14, %v4062_v10, 0.0  ;;  %v1044_v54 = vsel %vm4045_vm14, %v4062_v10, inf  ;;  %vm989_vm8 = vcmp.gt.f32.partialorder %v4050_v41, %v4062_v10 }
 0x32e   :  { %1035 = vmax.xlane.f32.xlu0 %v1034_v18  ;;  %1024 = vadd.xlane.f32.xlu1 %v1023_v9 }
 0x332   :  { %1141 = vmin.xlane.f32.xlu0 %v1140_v55  ;;  %1045 = vmin.xlane.f32.xlu1 %v1044_v54 }
 0x336   :  { %1166 = vmax.xlane.f32.xlu0 %v1165_v61  ;;  %1129 = vmax.xlane.f32.xlu1 %v1128_v23  ;;  %v795_v61 = vadd.f32 1.0, %v3225_v19  ;;  %v2777_v19 = vsel %vm1107_vm11, 1.0, %v5108_v24 }
 0x337   :  { %v1562_v8 = vsub.f32 1.0, %v2777_v19  ;;  %v3341_v19 = vld [vmem:[#allocation5 + $0x40] ss:$8 sps:$4 sm:$0xff]  }
 0x338   :  { %3228 = vlog2.f32 %v795_v61  ;;  %v804_v61 = vmul.f32 0.01, %v4080_v27 }
 0x33a   :  { %1153 = vadd.xlane.f32.xlu1 %v3924_v1  ;;  %v796_v1 = vadd.f32 1.0, %v3227_v20  ;;  %v807_v57 = vadd.f32 %v805_v15, %v804_v61  ;;  %v3339_v15 = vld [vmem:[#allocation5 + $0x30] ss:$8 sps:$4 sm:$0xff]   ;;  %v3345_v61 = vld [vmem:[#allocation5 + $0x60] ss:$8 sps:$4 sm:$0xff]  }
 0x33c   :  { %3230 = vlog2.f32 %v796_v1  ;;  %v1563_v1 = vsub.f32 1.0, %v2778_v16  ;;  %v3340_v16 = vld [vmem:[#allocation5 + $0x44] ss:$8 sps:$4 sm:$0xff]  }
 0x33e   :  { %1178 = vmin.xlane.f32.xlu1 %v1177_v22 }
 0x342   :  { %v3229_v54 = vpop.eup %3228 }
 0x343   :  { %v798_v58 = vmul.f32 0.6931472, %v3229_v54 }
 0x345   :  { %v801_v20 = vadd.f32 %v798_v58, %v785_v12  ;;  %v3335_v58 = vld [vmem:[#allocation5 + $0x10] ss:$8 sps:$4 sm:$0xff]   ;;  %v3337_v12 = vld [vmem:[#allocation5 + $0x20] ss:$8 sps:$4 sm:$0xff]  }
 0x346   :  { %v3231_v11 = vpop.eup %3230 }
 0x347   :  { %v800_v59 = vmul.f32 0.6931472, %v3231_v11  ;;  %v808_v32 = vadd.f32 %v806_v21, %v801_v20  ;;  %v3342_v20 = vld [vmem:[#allocation5 + $0x54] ss:$8 sps:$4 sm:$0xff]  }
 0x348   :  { %v3346_v21 = vld [vmem:[#allocation5 + $0x74] ss:$8 sps:$4 sm:$0xff]  }
 0x349   :  { %v802_v60 = vadd.f32 %v800_v59, %v786_v13  ;;  %v1288_v17 = vmul.f32 0.5, %v808_v32  ;;  %v3336_v59 = vld [vmem:[#allocation5 + $0x24] ss:$8 sps:$4 sm:$0xff]   ;;  %v3338_v13 = vld [vmem:[#allocation5 + $0x34] ss:$8 sps:$4 sm:$0xff]  }
 0x34a   :  { %v3350_v32 = vld [vmem:[#allocation5 + $0x94] ss:$8 sps:$4 sm:$0xff]  }
 0x351   :  { %v1259_v22 = vpop.f32.mrb[16].mxu0 }
 0x352   :  { %v1260_v26 = vadd.f32 %v1259_v22, %v5109_v25  ;;  %v1261_v29 = vpop.f32.mrb[17].mxu0 }
 0x353   :  { %v1262_v30 = vadd.f32 %v1261_v29, %v5110_v56  ;;  %v1263_v35 = vpop.f32.mrb[18].mxu0  ;;  %v1565_v29 = vmul.f32 %v1563_v1, %v1561_v52  ;;  %v3347_v1 = vld [vmem:[#allocation5 + $0x70] ss:$8 sps:$4 sm:$0xff]   ;;  %v3352_v52 = vld [vmem:[#allocation5 + $0xa4] ss:$8 sps:$4 sm:$0xff]  }
 0x354   :  { %v4122_v36 = vadd.f32 %v1266_v28, %v1260_v26  ;;  %v1264_v40 = vpop.f32.mrb[19].mxu0  ;;  %v1560_v26 = vmul.f32 0.75, %v3754_v37  ;;  %v809_v28 = vadd.f32 %v807_v57, %v802_v60  ;;  %v3344_v60 = vld [vmem:[#allocation5 + $0x64] ss:$8 sps:$4 sm:$0xff]   ;;  %v3349_v57 = vld [vmem:[#allocation5 + $0x80] ss:$8 sps:$4 sm:$0xff]  }
 0x355   :  { %v4124_v42 = vadd.f32 %v1267_v31, %v1262_v30  ;;  %v5111_v40 = vld [vmem:[#allocation12_spill] sm:$0xff] }
 0x356   :  { %v4127_v44 = vadd.f32 %v1274_v38, %v4122_v36  ;;  %v1564_v30 = vmul.f32 %v1562_v8, %v1560_v26  ;;  %v1289_v35 = vmul.f32 0.5, %v809_v28  ;;  %v3348_v8 = vld [vmem:[#allocation5 + $0x84] ss:$8 sps:$4 sm:$0xff]   ;;  %v3353_v26 = vld [vmem:[#allocation5 + $0xa0] ss:$8 sps:$4 sm:$0xff]  }
 0x357   :  { %v4130_v45 = vadd.f32 %v1275_v43, %v4124_v42  ;;  %v4172_v43 = vadd.f32 %v1565_v29, %v5111_v40  ;;  %v3354_v28 = vld [vmem:[#allocation5 + $0xb4] ss:$8 sps:$4 sm:$0xff]   ;;  %v3356_v29 = vld [vmem:[#allocation5 + $0xc4] ss:$8 sps:$4 sm:$0xff]  }
 0x358   :  { %v1313_v46 = vsel %vm70_vm0, %v4127_v44, -inf  ;;  %v1300_v47 = vsel %vm70_vm0, %v4127_v44, 0.0  ;;  %v1278_v48 = vsub.f32 %v3868_v0, %v4127_v44  ;;  %v1325_v63 = vsel %vm70_vm0, %v4127_v44, inf }
 0x359   :  { %v1314_v49 = vsel %vm70_vm0, %v4130_v45, -inf  ;;  %v1301_v50 = vsel %vm70_vm0, %v4130_v45, 0.0  ;;  %v1279_v51 = vsub.f32 %v3871_v3, %v4130_v45  ;;  %v1326_v0 = vsel %vm70_vm0, %v4130_v45, inf }
 0x35a   :  { %v1315_v4 = vmax.f32 %v1313_v46, %v1314_v49  ;;  %v1302_v18 = vadd.f32 %v1301_v50, %v1300_v47  ;;  %v1280_v9 = vmul.f32 0.33333334, %v1278_v48  ;;  %v1327_v23 = vmin.f32 %v1325_v63, %v1326_v0  ;;  %v5112_v46 = vld [vmem:[#allocation10_spill] sm:$0xff] }
 0x35b   :  { %v1281_v55 = vmul.f32 0.33333334, %v1279_v51  ;;  %v4175_v47 = vadd.f32 %v1564_v30, %v5112_v46  ;;  %v1591_v0 = vsel %vm70_vm0, %v4172_v43, 0.0 }
 0x35c   :  { %1316 = vmax.xlane.f32.xlu1 %v1315_v4  ;;  %1303 = vadd.xlane.f32.xlu0 %v1302_v18  ;;  %v1282_v5 = vmul.f32 1.442695, %v1280_v9 }
 0x35d   :  { %v1284_v3 = vmul.f32 1.442695, %v1281_v55  ;;  %v1590_v63 = vsel %vm70_vm0, %v4175_v47, 0.0 }
 0x35e   :  { %3232 = vpow2.f32 %v1282_v5  ;;  %v1592_v5 = vadd.f32 %v1591_v0, %v1590_v63  ;;  %v3359_v63 = vld [vmem:[#allocation5 + $0xd0] ss:$8 sps:$4 sm:$0xff]   ;;  %v3360_v0 = vld [vmem:[#allocation5 + $0xe4] ss:$8 sps:$4 sm:$0xff]  }
 0x35f   :  { %3234 = vpow2.f32 %v1284_v3  ;;  %v3333_v3 = vld [vmem:[#allocation5] ss:$8 sps:$4 sm:$0xff]  }
 0x360   :  { %1328 = vmin.xlane.f32.xlu0 %v1327_v23  ;;  %v3334_v23 = vld [vmem:[#allocation5 + $0x14] ss:$8 sps:$4 sm:$0xff]  }
 0x368   :  { %v3233_v22 = vpop.eup %3232 }
 0x369   :  { %v3235_v7 = vpop.eup %3234  ;;  %v2783_v14 = vadd.f32 -1.0, %v3233_v22  ;;  %v3351_v22 = vld [vmem:[#allocation5 + $0x90] ss:$8 sps:$4 sm:$0xff]  }
 0x36a   :  { %v2784_v31 = vadd.f32 -1.0, %v3235_v7  ;;  %v1117_v7 = vpop.xlane.xlu0 %1116 }
 0x36b   :  { %v1290_v33 = vmul.f32 0.5, %v2783_v14  ;;  %v3355_v14 = vld [vmem:[#allocation5 + $0xb0] ss:$8 sps:$4 sm:$0xff]  }
 0x36c   :  { %v1291_v27 = vmul.f32 0.5, %v2784_v31 }
 0x36d   :  { %v4169_v38 = vadd.f32 %v1290_v33, %v1288_v17 }
 0x36e   :  { %v4177_v48 = vadd.f32 %v1291_v27, %v1289_v35  ;;  %v3357_v35 = vld [vmem:[#allocation5 + $0xc0] ss:$8 sps:$4 sm:$0xff]   ;;  %v3358_v27 = vld [vmem:[#allocation5 + $0xd4] ss:$8 sps:$4 sm:$0xff]  }
 0x36f   :  { %v1350_v49 = vsel %vm70_vm0, %v4169_v38, -inf  ;;  %v1337_v50 = vsel %vm70_vm0, %v4169_v38, 0.0  ;;  %vm1294_vm1 = vcmp.gt.f32.partialorder %v4127_v44, %v4169_v38  ;;  %v1362_v55 = vsel %vm70_vm0, %v4169_v38, inf }
 0x370   :  { %vm1295_vm15 = vcmp.gt.f32.partialorder %v4130_v45, %v4177_v48  ;;  %v1351_v51 = vsel %vm70_vm0, %v4177_v48, -inf  ;;  %v1338_v4 = vsel %vm70_vm0, %v4177_v48, 0.0  ;;  %v1363_v54 = vsel %vm70_vm0, %v4177_v48, inf  ;;  %vm2789_vm3 = vmpackc.low %vm1294_vm1, %vm1294_vm1 }
 0x371   :  { %vm2787_vm2 = vmpackc.low %vm1295_vm15, %vm1295_vm15  ;;  %v1352_v18 = vmax.f32 %v1350_v49, %v1351_v51  ;;  %v1339_v9 = vadd.f32 %v1338_v4, %v1337_v50  ;;  %v1364_v11 = vmin.f32 %v1362_v55, %v1363_v54 }
 0x372   :  { %2788 = vmatprep.mubr.msk.bf16.mxu1 %vm2787_vm2, %v5088_v2 }
 0x373   :  { %1353 = vmax.xlane.f32.xlu0 %v1352_v18  ;;  %1340 = vadd.xlane.f32.xlu1 %v1339_v9 }
 0x374   :  { %2790 = vmatmul.mubr.msk.bf16.vlgmr.msra.gmra.mrb[4].mxu1 %vm2789_vm3, %v5088_v2 }
 0x375   :  { %1703 = vmatpush1.bf16.msra.mxu1 %v3333_v3 }
 0x376   :  { %1704 = vmatprep.subr.bf16.mxu1 %v3334_v23 }
 0x377   :  { %1593 = vadd.xlane.f32.xlu0 %v1592_v5  ;;  %1365 = vmin.xlane.f32.xlu1 %v1364_v11 }
 0x379   :  { %1705 = vmatpush1.bf16.msra.mxu1 %v3335_v58  ;;  %v3361_v58 = vld [vmem:[#allocation5 + $0xe0] ss:$8 sps:$4 sm:$0xff]  }
 0x37a   :  { %1706 = vmatprep.subr.bf16.mxu1 %v3336_v59  ;;  %v3362_v59 = vld [vmem:[#allocation5 + $0xf4] ss:$8 sps:$4 sm:$0xff]  }
 0x37d   :  { %1707 = vmatpush1.bf16.msra.mxu1 %v3337_v12 }
 0x37e   :  { %1708 = vmatprep.subr.bf16.mxu1 %v3338_v13 }
 0x381   :  { %1709 = vmatpush1.bf16.msra.mxu1 %v3339_v15 }
 0x382   :  { %1710 = vmatprep.subr.bf16.mxu1 %v3340_v16 }
 0x385   :  { %1711 = vmatpush1.bf16.msra.mxu1 %v3341_v19  ;;  %v3363_v19 = vld [vmem:[#allocation5 + $0xf0] ss:$8 sps:$4 sm:$0xff]  }
 0x386   :  { %1712 = vmatprep.subr.bf16.mxu1 %v3342_v20  ;;  %v3364_v20 = vld [vmem:[#allocation7 + $0x40] sm:$0xff]  }
 0x389   :  { %1713 = vmatpush1.bf16.msra.mxu1 %v3343_v62 }
 0x38a   :  { %1714 = vmatprep.subr.bf16.mxu1 %v3344_v60  ;;  %v1118_v60 = vrot.slane %v1117_v7, 4 }
 0x38d   :  { %1715 = vmatpush1.bf16.msra.mxu1 %v3345_v61  ;;  %v1119_v61 = vadd.f32 %v1118_v60, %v1117_v7 }
 0x38e   :  { %1716 = vmatprep.subr.bf16.mxu1 %v3346_v21 }
 0x391   :  { %1717 = vmatpush1.bf16.msra.mxu1 %v3347_v1 }
 0x392   :  { %1718 = vmatprep.subr.bf16.mxu1 %v3348_v8 }
 0x395   :  { %1719 = vmatpush1.bf16.msra.mxu1 %v3349_v57 }
 0x396   :  { %1720 = vmatprep.subr.bf16.mxu1 %v3350_v32 }
 0x399   :  { %1721 = vmatpush1.bf16.msra.mxu1 %v3351_v22 }
 0x39a   :  { %1722 = vmatprep.subr.bf16.mxu1 %v3352_v52  ;;  %v1120_v52 = vrot.slane %v1119_v61, 2 }
 0x39c   :  { %v1121_v7 = vadd.f32 %v1120_v52, %v1119_v61 }
 0x39d   :  { %1723 = vmatpush1.bf16.msra.mxu1 %v3353_v26 }
 0x39e   :  { %1724 = vmatprep.subr.bf16.mxu1 %v3354_v28 }
 0x3a1   :  { %1725 = vmatpush1.bf16.msra.mxu1 %v3355_v14 }
 0x3a2   :  { %1726 = vmatprep.subr.bf16.mxu1 %v3356_v29 }
 0x3a4   :  { %v1005_v30 = vpop.xlane.xlu1 %1004  ;;  %v994_v31 = vpop.xlane.xlu0 %993 }
 0x3a5   :  { %v1006_v17 = vrot.slane %v1005_v30, 4  ;;  %v995_v33 = vrot.slane %v994_v31, 4  ;;  %1727 = vmatpush1.bf16.msra.mxu1 %v3357_v35 }
 0x3a6   :  { %1728 = vmatprep.subr.bf16.mxu1 %v3358_v27 }
 0x3a7   :  { %v1007_v49 = vmax.f32 %v1005_v30, %v1006_v17  ;;  %v996_v50 = vadd.f32 %v995_v33, %v994_v31 }
 0x3a8   :  { %v1015_v51 = vpop.xlane.xlu0 %1014 }
 0x3a9   :  { %v1008_v4 = vrot.slane %v1007_v49, 2  ;;  %v997_v18 = vrot.slane %v996_v50, 2  ;;  %v1016_v9 = vrot.slane %v1015_v51, 4  ;;  %1729 = vmatpush1.bf16.msra.mxu1 %v3359_v63 }
 0x3aa   :  { %1730 = vmatprep.subr.bf16.mxu1 %v3360_v0 }
 0x3ab   :  { %v1017_v55 = vmin.f32 %v1015_v51, %v1016_v9  ;;  %v998_v54 = vadd.f32 %v997_v18, %v996_v50  ;;  %v1009_v5 = vmax.f32 %v1007_v49, %v1008_v4 }
 0x3ad   :  { %v1018_v11 = vrot.slane %v1017_v55, 2  ;;  %v999_v3 = vrot.slane %v998_v54, 1  ;;  %v1010_v23 = vrot.slane %v1009_v5, 1  ;;  %1731 = vmatpush1.bf16.msra.mxu1 %v3361_v58  ;;  %v1122_v58 = vrot.slane %v1121_v7, 1 }
 0x3ae   :  { %1732 = vmatprep.subr.bf16.mxu1 %v3362_v59 }
 0x3af   :  { %v1000_v12 = vadd.f32 %v999_v3, %v998_v54  ;;  %v1011_v13 = vmax.f32 %v1009_v5, %v1010_v23  ;;  %v1019_v15 = vmin.f32 %v1017_v55, %v1018_v11  ;;  %v1123_v61 = vadd.f32 %v1122_v58, %v1121_v7 }
 0x3b1   :  { %2981 = vpush %v1000_v12  ;;  %v1020_v16 = vrot.slane %v1019_v15, 1  ;;  %1733 = vmatpush1.bf16.msra.mxu1 %v3363_v19 }
 0x3b2   :  { %2983 = vpush %v1011_v13  ;;  %2913 = vmatprep.subr.bf16.mxu1 %v3364_v20 }
 0x3b3   :  { %v1021_v62 = vmin.f32 %v1019_v15, %v1020_v16 }
 0x3b5   :  { %2985 = vpush %v1021_v62 }
 0x3bb   :  { %v1036_v21 = vpop.xlane.xlu0 %1035  ;;  %v1025_v1 = vpop.xlane.xlu1 %1024 }
 0x3bc   :  { %v1037_v8 = vrot.slane %v1036_v21, 4  ;;  %v1026_v57 = vrot.slane %v1025_v1, 4 }
 0x3be   :  { %v1038_v32 = vmax.f32 %v1036_v21, %v1037_v8  ;;  %v1027_v22 = vadd.f32 %v1026_v57, %v1025_v1 }
 0x3bf   :  { %v1142_v26 = vpop.xlane.xlu0 %1141  ;;  %v1046_v28 = vpop.xlane.xlu1 %1045 }
 0x3c0   :  { %v1039_v14 = vrot.slane %v1038_v32, 2  ;;  %v1028_v29 = vrot.slane %v1027_v22, 2  ;;  %v1143_v30 = vrot.slane %v1142_v26, 4  ;;  %v1047_v31 = vrot.slane %v1046_v28, 4 }
 0x3c2   :  { %v1144_v17 = vmin.f32 %v1142_v26, %v1143_v30  ;;  %v1048_v33 = vmin.f32 %v1046_v28, %v1047_v31  ;;  %v1029_v35 = vadd.f32 %v1028_v29, %v1027_v22  ;;  %v1040_v27 = vmax.f32 %v1038_v32, %v1039_v14 }
 0x3c3   :  { %v1167_v49 = vpop.xlane.xlu0 %1166  ;;  %v1130_v50 = vpop.xlane.xlu1 %1129 }
 0x3c4   :  { %v1145_v51 = vrot.slane %v1144_v17, 2  ;;  %v1049_v4 = vrot.slane %v1048_v33, 2  ;;  %v1168_v18 = vrot.slane %v1167_v49, 4  ;;  %v1131_v9 = vrot.slane %v1130_v50, 4 }
 0x3c5   :  { %v1030_v63 = vrot.slane %v1029_v35, 1  ;;  %v1041_v0 = vrot.slane %v1040_v27, 1 }
 0x3c6   :  { %v1169_v55 = vmax.f32 %v1167_v49, %v1168_v18  ;;  %v1132_v54 = vmax.f32 %v1130_v50, %v1131_v9  ;;  %v1050_v5 = vmin.f32 %v1048_v33, %v1049_v4  ;;  %v1146_v59 = vmin.f32 %v1144_v17, %v1145_v51 }
 0x3c7   :  { %v1154_v11 = vpop.xlane.xlu1 %1153  ;;  %v1031_v3 = vadd.f32 %v1030_v63, %v1029_v35  ;;  %v1042_v23 = vmax.f32 %v1040_v27, %v1041_v0 }
 0x3c8   :  { %v1170_v12 = vrot.slane %v1169_v55, 2  ;;  %v1133_v13 = vrot.slane %v1132_v54, 2  ;;  %v1155_v15 = vrot.slane %v1154_v11, 4  ;;  %v1051_v16 = vrot.slane %v1050_v5, 1 }
 0x3c9   :  { %2987 = vpush %v1031_v3  ;;  %v1147_v21 = vrot.slane %v1146_v59, 1 }
 0x3ca   :  { %v1156_v19 = vadd.f32 %v1155_v15, %v1154_v11  ;;  %2989 = vpush %v1042_v23  ;;  %v1052_v20 = vmin.f32 %v1050_v5, %v1051_v16  ;;  %v1134_v62 = vmax.f32 %v1132_v54, %v1133_v13  ;;  %v1171_v1 = vmax.f32 %v1169_v55, %v1170_v12 }
 0x3cb   :  { %v1179_v60 = vpop.xlane.xlu1 %1178  ;;  %v1148_v28 = vmin.f32 %v1146_v59, %v1147_v21 }
 0x3cc   :  { %v1157_v8 = vrot.slane %v1156_v19, 2  ;;  %v1180_v57 = vrot.slane %v1179_v60, 4  ;;  %2991 = vpush %v1052_v20  ;;  %v1135_v32 = vrot.slane %v1134_v62, 1  ;;  %v1172_v14 = vrot.slane %v1171_v1, 1 }
 0x3cd   :  { %2993 = vpush %v1123_v61 }
 0x3ce   :  { %v1181_v22 = vmin.f32 %v1179_v60, %v1180_v57  ;;  %v1136_v52 = vmax.f32 %v1134_v62, %v1135_v32  ;;  %v1158_v26 = vadd.f32 %v1157_v8, %v1156_v19  ;;  %v1173_v33 = vmax.f32 %v1171_v1, %v1172_v14 }
 0x3d0   :  { %v1182_v29 = vrot.slane %v1181_v22, 2  ;;  %2995 = vpush %v1136_v52  ;;  %v1159_v30 = vrot.slane %v1158_v26, 1 }
 0x3d1   :  { %2997 = vpush %v1148_v28 }
 0x3d2   :  { %v1160_v31 = vadd.f32 %v1159_v30, %v1158_v26  ;;  %v1183_v17 = vmin.f32 %v1181_v22, %v1182_v29 }
 0x3d4   :  { %2999 = vpush %v1160_v31  ;;  %v1184_v35 = vrot.slane %v1183_v17, 1 }
 0x3d5   :  { %3001 = vpush %v1173_v33 }
 0x3d6   :  { %v1185_v27 = vmin.f32 %v1183_v17, %v1184_v35 }
 0x3d8   :  { %3003 = vpush %v1185_v27 }
 0x3e2   :  { %s4217_s24 = spop %2981 }
 0x3e3   :  { %s4219_s3 = spop %2983  ;;  %s1002_s18 = smul.f32 0.00625, %s4217_s24 }
 0x3e6   :  { %s4221_s25 = spop %2985 }
 0x3e7   :  { %s1054_s14 = ssub.f32 %s4219_s3, %s4221_s25 }
 0x3e9   :  { %v1317_v49 = vpop.xlane.xlu1 %1316  ;;  %v1304_v50 = vpop.xlane.xlu0 %1303  ;;  %s1055_s16 = smul.f32 0.2, %s1054_s14 }
 0x3ea   :  { %v1318_v7 = vrot.slane %v1317_v49, 4  ;;  %v1305_v51 = vrot.slane %v1304_v50, 4 }
 0x3eb   :  { %s1056_s20 = ssub.f32 %s1002_s18, %s1055_s16 }
 0x3ec   :  { %v1319_v4 = vmax.f32 %v1317_v49, %v1318_v7  ;;  %v1306_v18 = vadd.f32 %v1305_v51, %v1304_v50 }
 0x3ed   :  { %v1329_v9 = vpop.xlane.xlu0 %1328 }
 0x3ee   :  { %v1320_v63 = vrot.slane %v1319_v4, 2  ;;  %v1307_v0 = vrot.slane %v1306_v18, 2  ;;  %v1330_v55 = vrot.slane %v1329_v9, 4 }
 0x3f0   :  { %v1331_v54 = vmin.f32 %v1329_v9, %v1330_v55  ;;  %v1308_v5 = vadd.f32 %v1307_v0, %v1306_v18  ;;  %v1321_v11 = vmax.f32 %v1319_v4, %v1320_v63 }
 0x3f2   :  { %v1332_v3 = vrot.slane %v1331_v54, 2  ;;  %v1309_v23 = vrot.slane %v1308_v5, 1  ;;  %v1322_v58 = vrot.slane %v1321_v11, 1 }
 0x3f4   :  { %v1310_v59 = vadd.f32 %v1309_v23, %v1308_v5  ;;  %v1333_v12 = vmin.f32 %v1331_v54, %v1332_v3  ;;  %v1323_v13 = vmax.f32 %v1321_v11, %v1322_v58  ;;  %v1568_v54 = vsub.f32 %v3754_v37, %v4175_v47 }
 0x3f5   :  { %v1569_v5 = vsub.f32 %v3768_v6, %v4172_v43 }
 0x3f6   :  { %3005 = vpush %v1310_v59  ;;  %v1334_v15 = vrot.slane %v1333_v12, 1  ;;  %v1570_v11 = vmul.f32 0.33333334, %v1568_v54 }
 0x3f7   :  { %3007 = vpush %v1323_v13  ;;  %v1571_v3 = vmul.f32 0.33333334, %v1569_v5  ;;  %v4273_v5 = vld [vmem:[#allocation7 + $0x10] sm:$0xff]  }
 0x3f8   :  { %v1335_v16 = vmin.f32 %v1333_v12, %v1334_v15  ;;  %v1572_v23 = vmul.f32 1.442695, %v1570_v11  ;;  %v4276_v11 = vld [vmem:[#allocation7 + $0x58] sm:$0xff]  }
 0x3f9   :  { %v1574_v58 = vmul.f32 1.442695, %v1571_v3  ;;  %v4280_v3 = vsel %vm989_vm8, 1.0, %v5108_v24 }
 0x3fa   :  { %3009 = vpush %v1335_v16  ;;  %s2988_s26 = spop %2987  ;;  %5113 = vst [vmem:[#allocation17_spill] sm:$0xff] %v4280_v3 }
 0x3fb   :  { %s2990_s28 = spop %2989  ;;  %s1033_s8 = smul.f32 0.00625, %s2988_s26 }
 0x3fd   :  { %s2992_s29 = spop %2991 }
 0x3fe   :  { %s1057_s30 = ssub.f32 %s2990_s28, %s2992_s29  ;;  %s2994_s10 = spop %2993 }
 0x3ff   :  { %s1125_s1 = smul.f32 0.001953125, %s2994_s10 }
 0x400   :  { %s1058_s9 = smul.f32 0.2, %s1057_s30  ;;  %v1354_v19 = vpop.xlane.xlu0 %1353  ;;  %v1341_v20 = vpop.xlane.xlu1 %1340 }
 0x401   :  { %v1355_v62 = vrot.slane %v1354_v19, 4  ;;  %v1342_v60 = vrot.slane %v1341_v20, 4  ;;  %s2996_s4 = spop %2995 }
 0x402   :  { %s4223_s11 = ssub.f32 %s1033_s8, %s1058_s9  ;;  %s2998_s12 = spop %2997 }
 0x403   :  { %v1356_v61 = vmax.f32 %v1354_v19, %v1355_v62  ;;  %v1343_v21 = vadd.f32 %v1342_v60, %v1341_v20  ;;  %s1187_s15 = ssub.f32 %s2996_s4, %s2998_s12 }
 0x404   :  { %v1366_v1 = vpop.xlane.xlu1 %1365 }
 0x405   :  { %v1357_v8 = vrot.slane %v1356_v61, 2  ;;  %v1344_v57 = vrot.slane %v1343_v21, 2  ;;  %s1188_s27 = smul.f32 0.2, %s1187_s15  ;;  %v1367_v32 = vrot.slane %v1366_v1, 4  ;;  %s3000_s5 = spop %2999 }
 0x406   :  { %s3002_s17 = spop %3001  ;;  %s1162_s2 = smul.f32 0.001953125, %s3000_s5 }
 0x407   :  { %s1189_s13 = ssub.f32 %s1125_s1, %s1188_s27  ;;  %v1345_v22 = vadd.f32 %v1344_v57, %v1343_v21  ;;  %v1358_v52 = vmax.f32 %v1356_v61, %v1357_v8  ;;  %v1368_v26 = vmin.f32 %v1366_v1, %v1367_v32 }
 0x409   :  { %v1193_v28 = vstv %s1189_s13  ;;  %v1346_v14 = vrot.slane %v1345_v22, 1  ;;  %v1359_v29 = vrot.slane %v1358_v52, 1  ;;  %v1369_v17 = vrot.slane %v1368_v26, 2  ;;  %s3004_s19 = spop %3003 }
 0x40a   :  { %v1194_v30 = vsub.f32 %v3754_v37, %v1193_v28  ;;  %v1195_v31 = vsub.f32 %v3768_v6, %v1193_v28  ;;  %s1190_s0 = ssub.f32 %s3002_s17, %s3004_s19  ;;  %v1060_v6 = vstv %s1056_s20 }
 0x40b   :  { %v1347_v33 = vadd.f32 %v1346_v14, %v1345_v22  ;;  %v1360_v35 = vmax.f32 %v1358_v52, %v1359_v29  ;;  %v1370_v50 = vmin.f32 %v1368_v26, %v1369_v17  ;;  %v4235_v15 = vsub.f32 %v4050_v41, %v1060_v6  ;;  %v4286_v6 = vld [vmem:[#allocation7 + $0x60] sm:$0xff]  }
 0x40c   :  { %v1196_v27 = vmul.f32 0.16666667, %v1194_v30  ;;  %v1197_v49 = vmul.f32 0.16666667, %v1195_v31  ;;  %s1191_s21 = smul.f32 0.2, %s1190_s0 }
 0x40d   :  { %3011 = vpush %v1347_v33  ;;  %v1371_v4 = vrot.slane %v1370_v50, 1  ;;  %v4238_v20 = vmul.f32 0.16666667, %v4235_v15  ;;  %v1216_v8 = vmul.f32 0.01, %v1194_v30 }
 0x40e   :  { %v1200_v7 = vand.u32 2147483647, %v1196_v27  ;;  %v1201_v51 = vand.u32 2147483647, %v1197_v49  ;;  %3013 = vpush %v1360_v35  ;;  %s1192_s22 = ssub.f32 %s1162_s2, %s1191_s21  ;;  %v1198_v21 = vmax.f32 %v1196_v27, 0.0  ;;  %v1199_v57 = vmax.f32 %v1197_v49, 0.0 }
 0x40f   :  { %v1372_v63 = vmin.f32 %v1370_v50, %v1371_v4  ;;  %v1217_v22 = vmul.f32 0.01, %v1195_v31  ;;  %v1064_v52 = vand.u32 2147483647, %v4238_v20  ;;  %v4259_v49 = vld [vmem:[#allocation7] sm:$0xff]  }
 0x410   :  { %v1202_v18 = vsub.f32 0.0, %v1200_v7  ;;  %v1203_v9 = vsub.f32 0.0, %v1201_v51  ;;  %v1218_v60 = vstv %s1192_s22 }
 0x411   :  { %3015 = vpush %v1372_v63  ;;  %v1219_v28 = vadd.f32 %v1218_v60, %v1216_v8  ;;  %v1220_v17 = vadd.f32 %v1218_v60, %v1217_v22  ;;  %v1065_v7 = vsub.f32 0.0, %v1064_v52  ;;  %v4262_v63 = vld [vmem:[#allocation7 + $0x48] sm:$0xff]   ;;  %v1454_v60 = vmul.f32 0.75, %v4050_v41 }
 0x412   :  { %v1204_v0 = vmul.f32 1.442695, %v1202_v18  ;;  %v1206_v55 = vmul.f32 1.442695, %v1203_v9  ;;  %v4297_v8 = vld [vmem:[#allocation7 + $0x68] sm:$0xff]  }
 0x413   :  { %v1066_v31 = vmul.f32 1.442695, %v1065_v7  ;;  %v3380_v7 = vld [vmem:[#allocation5 + $0x4] ss:$8 sps:$4 sm:$0xff]  }
 0x414   :  { %3236 = vpow2.f32 %v1204_v0  ;;  %v4265_v0 = vld [vmem:[#allocation7 + $0x8] sm:$0xff]  }
 0x415   :  { %3238 = vpow2.f32 %v1206_v55  ;;  %v4268_v55 = vld [vmem:[#allocation7 + $0x50] sm:$0xff]  }
 0x416   :  { %3240 = vpow2.f32 %v1572_v23 }
 0x417   :  { %3242 = vpow2.f32 %v1574_v58 }
 0x41e   :  { %v3237_v59 = vpop.eup %3236 }
 0x41f   :  { %v3239_v12 = vpop.eup %3238  ;;  %v1208_v37 = vadd.f32 1.0, %v3237_v59 }
 0x420   :  { %v1209_v13 = vadd.f32 1.0, %v3239_v12  ;;  %v3241_v16 = vpop.eup %3240  ;;  %v4282_v12 = vld [vmem:[#allocation7 + $0x18] sm:$0xff]  }
 0x421   :  { %3244 = vlog2.f32 %v1208_v37  ;;  %v3243_v19 = vpop.eup %3242  ;;  %v2793_v14 = vadd.f32 -1.0, %v3241_v16  ;;  %v1455_v37 = vsub.f32 1.0, %v4280_v3 }
 0x422   :  { %3246 = vlog2.f32 %v1209_v13  ;;  %v2794_v33 = vadd.f32 -1.0, %v3243_v19 }
 0x423   :  { %v1580_v4 = vmul.f32 0.5, %v2793_v14  ;;  %3248 = vpow2.f32 %v1066_v31  ;;  %v4317_v14 = vld [vmem:[#allocation7 + $0x30] sm:$0xff]  }
 0x424   :  { %v1581_v27 = vmul.f32 0.5, %v2794_v33  ;;  %5116 = vst [vmem:[#allocation20_spill] sm:$0xff] %v4317_v14 }
 0x427   :  { %s3006_s23 = spop %3005 }
 0x428   :  { %s3008_s24 = spop %3007  ;;  %s1312_s28 = smul.f32 0.001953125, %s3006_s23 }
 0x42b   :  { %v3245_v62 = vpop.eup %3244  ;;  %s3010_s3 = spop %3009 }
 0x42c   :  { %v3247_v61 = vpop.eup %3246  ;;  %v1211_v1 = vmul.f32 0.6931472, %v3245_v62  ;;  %v1452_v62 = vmul.f32 0.5, %v4050_v41  ;;  %s1374_s25 = ssub.f32 %s3008_s24, %s3010_s3 }
 0x42d   :  { %v1213_v32 = vmul.f32 0.6931472, %v3247_v61  ;;  %v3249_v54 = vpop.eup %3248  ;;  %v4292_v61 = vld [vmem:[#allocation7 + $0x20] sm:$0xff]  }
 0x42e   :  { %v1214_v26 = vadd.f32 %v1211_v1, %v1198_v21  ;;  %v1068_v23 = vadd.f32 1.0, %v3249_v54  ;;  %v1456_v1 = vmul.f32 %v1455_v37, %v1454_v60  ;;  %s1375_s26 = smul.f32 0.2, %s1374_s25 }
 0x42f   :  { %v1215_v29 = vadd.f32 %v1213_v32, %v1199_v57  ;;  %v4303_v32 = vld [vmem:[#allocation7 + $0x28] sm:$0xff]  }
 0x430   :  { %v1221_v35 = vadd.f32 %v1219_v28, %v1214_v26  ;;  %3250 = vlog2.f32 %v1068_v23  ;;  %v4314_v26 = vld [vmem:[#allocation7 + $0x70] sm:$0xff]   ;;  %s1376_s29 = ssub.f32 %s1312_s28, %s1375_s26 }
 0x431   :  { %v1222_v50 = vadd.f32 %v1220_v17, %v1215_v29  ;;  %5115 = vst [vmem:[#allocation19_spill] sm:$0xff] %v4314_v26 }
 0x432   :  { %v1578_v51 = vmul.f32 0.5, %v1221_v35  ;;  %v4323_v35 = vld [vmem:[#allocation7 + $0x78] sm:$0xff]  }
 0x433   :  { %v1579_v18 = vmul.f32 0.5, %v1222_v50  ;;  %5117 = vst [vmem:[#allocation21_spill] sm:$0xff] %v4323_v35  ;;  %v4326_v50 = vld [vmem:[#allocation7 + $0x38] sm:$0xff]  }
 0x434   :  { %v4241_v9 = vadd.f32 %v1580_v4, %v1578_v51  ;;  %5118 = vst [vmem:[#allocation22_spill] sm:$0xff] %v4326_v50  ;;  %v1063_v51 = vmax.f32 %v4238_v20, 0.0  ;;  %v1073_v4 = vstv %s4223_s11 }
 0x435   :  { %v4243_v30 = vadd.f32 %v1581_v27, %v1579_v18  ;;  %v1072_v27 = vmul.f32 0.01, %v4235_v15  ;;  %v1615_v15 = vsel %vm70_vm0, %v4175_v47, inf }
 0x436   :  { %vm1584_vm4 = vcmp.gt.f32.partialorder %v4175_v47, %v4241_v9 }
 0x437   :  { %vm1585_vm5 = vcmp.gt.f32.partialorder %v4172_v43, %v4243_v30  ;;  %vm2799_vm6 = vmpackc.low %vm1584_vm4, %vm1584_vm4  ;;  %v1074_v31 = vadd.f32 %v1073_v4, %v1072_v27  ;;  %v1594_v4 = vpop.xlane.xlu0 %1593 }
 0x438   :  { %vm2797_vm7 = vmpackc.low %vm1585_vm5, %vm1585_vm5 }
 0x439   :  { %2798 = vmatprep.mubr.msk.bf16.mxu1 %vm2797_vm7, %v5088_v2 }
 0x43a   :  { %2800 = vmatmul.mubr.msk.bf16.vlgmr.msra.gmra.mrb[8].mxu1 %vm2799_vm6, %v5088_v2  ;;  %v3251_v29 = vpop.eup %3250 }
 0x43b   :  { %2914 = vmatpush3.bf16.msra.mxu1 %v4259_v49 }
 0x43c   :  { %2915 = vmatprep.subr.bf16.mxu1 %v4262_v63 }
 0x43e   :  { %s4395_s30 = spop %3011 }
 0x43f   :  { %2916 = vmatpush3.bf16.msra.mxu1 %v4265_v0  ;;  %s4398_s8 = spop %3013  ;;  %s1349_s11 = smul.f32 0.001953125, %s4395_s30 }
 0x440   :  { %2917 = vmatprep.subr.bf16.mxu1 %v4268_v55 }
 0x442   :  { %s3016_s9 = spop %3015 }
 0x443   :  { %2918 = vmatpush3.bf16.msra.mxu1 %v4273_v5  ;;  %s1377_s10 = ssub.f32 %s4398_s8, %s3016_s9 }
 0x444   :  { %2919 = vmatprep.subr.bf16.mxu1 %v4276_v11 }
 0x445   :  { %s1378_s4 = smul.f32 0.2, %s1377_s10 }
 0x447   :  { %v2885_v58 = vpop.f32.mrb[4].mxu1  ;;  %2920 = vmatpush3.bf16.msra.mxu1 %v4282_v12  ;;  %s1379_s12 = ssub.f32 %s1349_s11, %s1378_s4 }
 0x448   :  { %v2886_v59 = vpop.f32.mrb[5].mxu1  ;;  %2921 = vmatprep.subr.bf16.mxu1 %v4286_v6 }
 0x449   :  { %v2887_v10 = vadd.f32 %v2886_v59, %v2885_v58  ;;  %v2888_v13 = vpop.f32.mrb[6].mxu1 }
 0x44a   :  { %v2889_v16 = vpop.f32.mrb[7].mxu1 }
 0x44b   :  { %v1447_v19 = vadd.f32 %v2887_v10, %v4041_v34  ;;  %2922 = vmatpush3.bf16.msra.mxu1 %v4292_v61  ;;  %v1616_v16 = vsel %vm70_vm0, %v4172_v43, inf }
 0x44c   :  { %2923 = vmatprep.subr.bf16.mxu1 %v4297_v8 }
 0x44d   :  { %v4295_v21 = vadd.f32 %v1452_v62, %v1447_v19  ;;  %v1617_v19 = vmin.f32 %v1615_v15, %v1616_v16  ;;  %v1603_v62 = vsel %vm70_vm0, %v4175_v47, -inf  ;;  %v1380_v15 = vstv %s1376_s29 }
 0x44f   :  { %5114 = vst [vmem:[#allocation18_spill] sm:$0xff] %v4295_v21  ;;  %v4301_v57 = vadd.f32 %v1456_v1, %v4295_v21  ;;  %2924 = vmatpush3.bf16.msra.mxu1 %v4303_v32  ;;  %v1640_v1 = vsel %vm70_vm0, %v4241_v9, -inf }
 0x450   :  { %2925 = vmatprep.subr.bf16.mxu1 %v4314_v26 }
 0x451   :  { %v1480_v34 = vsel %vm4045_vm14, %v4301_v57, -inf  ;;  %v1469_v22 = vsel %vm4045_vm14, %v4301_v57, 0.0  ;;  %v1458_v52 = vsub.f32 %v4050_v41, %v4301_v57  ;;  %v1490_v17 = vsel %vm4045_vm14, %v4301_v57, inf }
 0x452   :  { %1481 = vmax.xlane.f32.xlu1 %v1480_v34  ;;  %1470 = vadd.xlane.f32.xlu0 %v1469_v22  ;;  %v1070_v41 = vmul.f32 0.6931472, %v3251_v29  ;;  %v1641_v34 = vsel %vm70_vm0, %v4243_v30, -inf  ;;  %v1604_v22 = vsel %vm70_vm0, %v4172_v43, -inf  ;;  %v1627_v29 = vsel %vm70_vm0, %v4241_v9, 0.0 }
 0x453   :  { %v1459_v28 = vmul.f32 0.33333334, %v1458_v52  ;;  %2926 = vmatpush3.bf16.msra.mxu1 %v4317_v14  ;;  %v1642_v52 = vmax.f32 %v1640_v1, %v1641_v34 }
 0x454   :  { %2927 = vmatprep.subr.bf16.mxu1 %v4323_v35  ;;  %v1071_v18 = vadd.f32 %v1070_v41, %v1063_v51  ;;  %v1652_v41 = vsel %vm70_vm0, %v4241_v9, inf }
 0x455   :  { %v1460_v33 = vmul.f32 1.442695, %v1459_v28  ;;  %v1605_v28 = vmax.f32 %v1603_v62, %v1604_v22 }
 0x456   :  { %1491 = vmin.xlane.f32.xlu0 %v1490_v17  ;;  %v1075_v54 = vadd.f32 %v1074_v31, %v1071_v18  ;;  %v1628_v17 = vsel %vm70_vm0, %v4243_v30, 0.0 }
 0x457   :  { %3252 = vpow2.f32 %v1460_v33  ;;  %2928 = vmatpush3.bf16.msra.mxu1 %v4326_v50  ;;  %v1629_v33 = vadd.f32 %v1628_v17, %v1627_v29 }
 0x458   :  { %2546 = vmatprep.subr.bf16.mxu1 %v3380_v7  ;;  %v1463_v59 = vmul.f32 0.5, %v1075_v54  ;;  %v1653_v7 = vsel %vm70_vm0, %v4243_v30, inf  ;;  %v2033_v30 = vmul.f32 0.5, %v5112_v46 }
 0x459   :  { %v1654_v51 = vmin.f32 %v1652_v41, %v1653_v7 }
 0x461   :  { %v3253_v23 = vpop.eup %3252 }
 0x462   :  { %v2791_v58 = vadd.f32 -1.0, %v3253_v23 }
 0x464   :  { %v1464_v10 = vmul.f32 0.5, %v2791_v58 }
 0x466   :  { %v4332_v37 = vadd.f32 %v1464_v10, %v1463_v59 }
 0x468   :  { %5119 = vst [vmem:[#allocation23_spill] sm:$0xff] %v4332_v37  ;;  %v1511_v13 = vsel %vm4045_vm14, %v4332_v37, -inf  ;;  %v1500_v20 = vsel %vm4045_vm14, %v4332_v37, 0.0  ;;  %v1521_v60 = vsel %vm4045_vm14, %v4332_v37, inf }
 0x469   :  { %1512 = vmax.xlane.f32.xlu0 %v1511_v13  ;;  %1501 = vadd.xlane.f32.xlu1 %v1500_v20 }
 0x46d   :  { %1618 = vmin.xlane.f32.xlu0 %v1617_v19  ;;  %1522 = vmin.xlane.f32.xlu1 %v1521_v60  ;;  %v4374_v60 = vsub.f32 %v4127_v44, %v1380_v15 }
 0x471   :  { %1643 = vmax.xlane.f32.xlu0 %v1642_v52  ;;  %1606 = vmax.xlane.f32.xlu1 %v1605_v28  ;;  %v4377_v52 = vsub.f32 %v4130_v45, %v1380_v15 }
 0x473   :  { %v4383_v7 = vmul.f32 0.16666667, %v4377_v52 }
 0x475   :  { %1630 = vadd.xlane.f32.xlu1 %v1629_v33  ;;  %v4380_v33 = vmul.f32 0.16666667, %v4374_v60 }
 0x479   :  { %1655 = vmin.xlane.f32.xlu1 %v1654_v51 }
 0x4df   :  { %v1482_v18 = vpop.xlane.xlu1 %1481  ;;  %v1471_v27 = vpop.xlane.xlu0 %1470 }
 0x4e0   :  { %v1483_v31 = vrot.slane %v1482_v18, 4  ;;  %v1472_v54 = vrot.slane %v1471_v27, 4 }
 0x4e2   :  { %v1484_v23 = vmax.f32 %v1482_v18, %v1483_v31  ;;  %v1473_v58 = vadd.f32 %v1472_v54, %v1471_v27  ;;  %v1387_v18 = vand.u32 2147483647, %v4380_v33  ;;  %v1595_v27 = vrot.slane %v1594_v4, 4 }
 0x4e3   :  { %v1492_v59 = vpop.xlane.xlu0 %1491  ;;  %v1388_v31 = vand.u32 2147483647, %v4383_v7 }
 0x4e4   :  { %v1485_v10 = vrot.slane %v1484_v23, 2  ;;  %v1474_v13 = vrot.slane %v1473_v58, 2  ;;  %v1493_v20 = vrot.slane %v1492_v59, 4  ;;  %v1389_v54 = vsub.f32 0.0, %v1387_v18 }
 0x4e6   :  { %v1494_v16 = vmin.f32 %v1492_v59, %v1493_v20  ;;  %v1475_v19 = vadd.f32 %v1474_v13, %v1473_v58  ;;  %v1486_v62 = vmax.f32 %v1484_v23, %v1485_v10  ;;  %v1596_v23 = vadd.f32 %v1595_v27, %v1594_v4 }
 0x4e7   :  { %v1390_v58 = vsub.f32 0.0, %v1388_v31  ;;  %v1391_v15 = vmul.f32 1.442695, %v1389_v54 }
 0x4e8   :  { %v1495_v1 = vrot.slane %v1494_v16, 2  ;;  %v1476_v34 = vrot.slane %v1475_v19, 1  ;;  %v1487_v22 = vrot.slane %v1486_v62, 1 }
 0x4e9   :  { %3254 = vpow2.f32 %v1391_v15 }
 0x4ea   :  { %v1477_v28 = vadd.f32 %v1476_v34, %v1475_v19  ;;  %v1488_v29 = vmax.f32 %v1486_v62, %v1487_v22  ;;  %v1496_v17 = vmin.f32 %v1494_v16, %v1495_v1  ;;  %v1597_v62 = vrot.slane %v1596_v23, 2 }
 0x4eb   :  { %v1393_v1 = vmul.f32 1.442695, %v1390_v58 }
 0x4ec   :  { %3017 = vpush %v1477_v28  ;;  %v1497_v41 = vrot.slane %v1496_v17, 1  ;;  %v1598_v39 = vadd.f32 %v1597_v62, %v1596_v23 }
 0x4ed   :  { %3019 = vpush %v1488_v29  ;;  %3256 = vpow2.f32 %v1393_v1 }
 0x4ee   :  { %v1498_v51 = vmin.f32 %v1496_v17, %v1497_v41 }
 0x4f0   :  { %3021 = vpush %v1498_v51 }
 0x4f6   :  { %v1513_v59 = vpop.xlane.xlu0 %1512  ;;  %v1502_v10 = vpop.xlane.xlu1 %1501 }
 0x4f7   :  { %v1514_v13 = vrot.slane %v1513_v59, 4  ;;  %v1503_v20 = vrot.slane %v1502_v10, 4 }
 0x4f9   :  { %v1515_v16 = vmax.f32 %v1513_v59, %v1514_v13  ;;  %v1504_v19 = vadd.f32 %v1503_v20, %v1502_v10 }
 0x4fa   :  { %v1619_v34 = vpop.xlane.xlu0 %1618  ;;  %v1523_v22 = vpop.xlane.xlu1 %1522 }
 0x4fb   :  { %v1516_v28 = vrot.slane %v1515_v16, 2  ;;  %v1505_v29 = vrot.slane %v1504_v19, 2  ;;  %v1620_v17 = vrot.slane %v1619_v34, 4  ;;  %v1524_v41 = vrot.slane %v1523_v22, 4 }
 0x4fd   :  { %v1621_v51 = vmin.f32 %v1619_v34, %v1620_v17  ;;  %v1525_v18 = vmin.f32 %v1523_v22, %v1524_v41  ;;  %v1506_v4 = vadd.f32 %v1505_v29, %v1504_v19  ;;  %v1517_v27 = vmax.f32 %v1515_v16, %v1516_v28  ;;  %v3255_v17 = vpop.eup %3254 }
 0x4fe   :  { %v1644_v31 = vpop.xlane.xlu0 %1643  ;;  %v1607_v3 = vpop.xlane.xlu1 %1606  ;;  %v1599_v34 = vrot.slane %v1598_v39, 1 }
 0x4ff   :  { %v1622_v54 = vrot.slane %v1621_v51, 2  ;;  %v1526_v59 = vrot.slane %v1525_v18, 2  ;;  %v1645_v10 = vrot.slane %v1644_v31, 4  ;;  %v1608_v13 = vrot.slane %v1607_v3, 4 }
 0x500   :  { %v1507_v58 = vrot.slane %v1506_v4, 1  ;;  %v1518_v20 = vrot.slane %v1517_v27, 1  ;;  %v1600_v26 = vadd.f32 %v1599_v34, %v1598_v39  ;;  %v2786_v39 = vsel %vm1295_vm15, 1.0, %v5108_v24 }
 0x501   :  { %v1646_v21 = vmax.f32 %v1644_v31, %v1645_v10  ;;  %v1609_v37 = vmax.f32 %v1607_v3, %v1608_v13  ;;  %v1527_v50 = vmin.f32 %v1525_v18, %v1526_v59  ;;  %v1623_v22 = vmin.f32 %v1621_v51, %v1622_v54 }
 0x502   :  { %v1631_v35 = vpop.xlane.xlu1 %1630  ;;  %v1508_v14 = vadd.f32 %v1507_v58, %v1506_v4  ;;  %v1519_v15 = vmax.f32 %v1517_v27, %v1518_v20  ;;  %v3257_v27 = vpop.eup %3256  ;;  %v1750_v38 = vsub.f32 1.0, %v2786_v39 }
 0x503   :  { %v1647_v19 = vrot.slane %v1646_v21, 2  ;;  %v1610_v16 = vrot.slane %v1609_v37, 2  ;;  %v1632_v1 = vrot.slane %v1631_v35, 4  ;;  %v1528_v28 = vrot.slane %v1527_v50, 1 }
 0x504   :  { %3023 = vpush %v1508_v14  ;;  %v1624_v31 = vrot.slane %v1623_v22, 1  ;;  %v2785_v14 = vsel %vm1294_vm1, 1.0, %v5108_v24 }
 0x505   :  { %v1633_v23 = vadd.f32 %v1632_v1, %v1631_v35  ;;  %3025 = vpush %v1519_v15  ;;  %v1529_v62 = vmin.f32 %v1527_v50, %v1528_v28  ;;  %v1611_v29 = vmax.f32 %v1609_v37, %v1610_v16  ;;  %v1648_v3 = vmax.f32 %v1646_v21, %v1647_v19 }
 0x506   :  { %v1656_v41 = vpop.xlane.xlu1 %1655  ;;  %v1625_v35 = vmin.f32 %v1623_v22, %v1624_v31  ;;  %v1395_v21 = vadd.f32 1.0, %v3255_v17  ;;  %v1749_v58 = vsub.f32 1.0, %v2785_v14  ;;  %v1743_v22 = vmul.f32 0.5, %v4122_v36 }
 0x507   :  { %v1634_v18 = vrot.slane %v1633_v23, 2  ;;  %v1657_v59 = vrot.slane %v1656_v41, 4  ;;  %3027 = vpush %v1529_v62  ;;  %v1612_v4 = vrot.slane %v1611_v29, 1  ;;  %v1649_v50 = vrot.slane %v1648_v3, 1 }
 0x508   :  { %3029 = vpush %v1600_v26  ;;  %v1396_v26 = vadd.f32 1.0, %v3257_v27  ;;  %3258 = vlog2.f32 %v1395_v21  ;;  %v1747_v16 = vmul.f32 0.75, %v4127_v44  ;;  %v1744_v62 = vmul.f32 0.5, %v4124_v42 }
 0x509   :  { %v1658_v51 = vmin.f32 %v1656_v41, %v1657_v59  ;;  %v1613_v54 = vmax.f32 %v1611_v29, %v1612_v4  ;;  %v1635_v10 = vadd.f32 %v1634_v18, %v1633_v23  ;;  %v1650_v19 = vmax.f32 %v1648_v3, %v1649_v50 }
 0x50a   :  { %3260 = vlog2.f32 %v1396_v26  ;;  %v1748_v36 = vmul.f32 0.75, %v4130_v45  ;;  %v1751_v41 = vmul.f32 %v1749_v58, %v1747_v16  ;;  %v2796_v16 = vsel %vm1585_vm5, 1.0, %v5108_v24 }
 0x50b   :  { %v1659_v37 = vrot.slane %v1658_v51, 2  ;;  %3031 = vpush %v1613_v54  ;;  %v1636_v13 = vrot.slane %v1635_v10, 1 }
 0x50c   :  { %3033 = vpush %v1625_v35  ;;  %v1752_v59 = vmul.f32 %v1750_v38, %v1748_v36  ;;  %v2040_v36 = vsub.f32 1.0, %v2796_v16 }
 0x50d   :  { %v1637_v20 = vadd.f32 %v1636_v13, %v1635_v10  ;;  %v1660_v15 = vmin.f32 %v1658_v51, %v1659_v37  ;;  %v1736_v34 = vpop.f32.mrb[8].mxu1 }
 0x50e   :  { %v1737_v48 = vadd.f32 %v1736_v34, %v5109_v25  ;;  %v1738_v1 = vpop.f32.mrb[9].mxu1 }
 0x50f   :  { %3035 = vpush %v1637_v20  ;;  %v1661_v28 = vrot.slane %v1660_v15, 1  ;;  %v1739_v23 = vadd.f32 %v1738_v1, %v5110_v56  ;;  %v1740_v29 = vpop.f32.mrb[10].mxu1  ;;  %v2795_v1 = vsel %vm1584_vm4, 1.0, %v5108_v24 }
 0x510   :  { %3037 = vpush %v1650_v19  ;;  %v4405_v17 = vadd.f32 %v1743_v22, %v1737_v48  ;;  %v1741_v31 = vpop.f32.mrb[11].mxu1  ;;  %v1385_v22 = vmax.f32 %v4380_v33, 0.0  ;;  %v1386_v19 = vmax.f32 %v4383_v7, 0.0  ;;  %v1405_v48 = vstv %s1379_s12 }
 0x511   :  { %v1662_v3 = vmin.f32 %v1660_v15, %v1661_v28  ;;  %v4407_v18 = vadd.f32 %v1744_v62, %v1739_v23  ;;  %v1403_v23 = vmul.f32 0.01, %v4374_v60  ;;  %v1404_v33 = vmul.f32 0.01, %v4377_v52 }
 0x512   :  { %v4411_v4 = vadd.f32 %v1751_v41, %v4405_v17  ;;  %v3259_v26 = vpop.eup %3258  ;;  %v2039_v29 = vsub.f32 1.0, %v2795_v1  ;;  %v2038_v60 = vmul.f32 0.75, %v4172_v43 }
 0x513   :  { %3039 = vpush %v1662_v3  ;;  %v4414_v27 = vadd.f32 %v1752_v59, %v4407_v18  ;;  %v1398_v38 = vmul.f32 0.6931472, %v3259_v26  ;;  %v1406_v7 = vadd.f32 %v1405_v48, %v1403_v23  ;;  %v1407_v41 = vadd.f32 %v1405_v48, %v1404_v33 }
 0x514   :  { %v1790_v42 = vsel %vm70_vm0, %v4411_v4, -inf  ;;  %v1777_v51 = vsel %vm70_vm0, %v4411_v4, 0.0  ;;  %v1755_v54 = vsub.f32 %v4127_v44, %v4411_v4  ;;  %v1802_v37 = vsel %vm70_vm0, %v4411_v4, inf  ;;  %v3261_v20 = vpop.eup %3260 }
 0x515   :  { %v1791_v10 = vsel %vm70_vm0, %v4414_v27, -inf  ;;  %v1778_v14 = vsel %vm70_vm0, %v4414_v27, 0.0  ;;  %v1756_v35 = vsub.f32 %v4130_v45, %v4414_v27  ;;  %v1803_v44 = vsel %vm70_vm0, %v4414_v27, inf }
 0x516   :  { %v1792_v50 = vmax.f32 %v1790_v42, %v1791_v10  ;;  %v1779_v39 = vadd.f32 %v1778_v14, %v1777_v51  ;;  %v1757_v21 = vmul.f32 0.33333334, %v1755_v54  ;;  %v1804_v15 = vmin.f32 %v1802_v37, %v1803_v44  ;;  %v5121_v37 = vld [vmem:[#allocation13_spill] sm:$0xff] }
 0x517   :  { %v1758_v13 = vmul.f32 0.33333334, %v1756_v35  ;;  %v1400_v34 = vmul.f32 0.6931472, %v3261_v20  ;;  %v1401_v28 = vadd.f32 %v1398_v38, %v1385_v22  ;;  %v2034_v3 = vmul.f32 0.5, %v5111_v40  ;;  %v5120_v35 = vld [vmem:[#allocation11_spill] sm:$0xff] }
 0x518   :  { %1793 = vmax.xlane.f32.xlu1 %v1792_v50  ;;  %1780 = vadd.xlane.f32.xlu0 %v1779_v39  ;;  %v1759_v58 = vmul.f32 1.442695, %v1757_v21  ;;  %v2037_v59 = vmul.f32 0.75, %v4175_v47  ;;  %v2042_v54 = vmul.f32 %v2040_v36, %v2038_v60  ;;  %v4456_v50 = vadd.f32 %v2033_v30, %v5120_v35  ;;  %v4522_v60 = vld [vmem:[#allocation5 + $0x24] ss:$8 sps:$4 sm:$0xff]  }
 0x519   :  { %v1761_v45 = vmul.f32 1.442695, %v1758_v13  ;;  %v1402_v62 = vadd.f32 %v1400_v34, %v1386_v19  ;;  %v1408_v31 = vadd.f32 %v1406_v7, %v1401_v28  ;;  %v4459_v44 = vadd.f32 %v2034_v3, %v5121_v37  ;;  %v4519_v3 = vld [vmem:[#allocation5 + $0x10] ss:$8 sps:$4 sm:$0xff]  }
 0x51a   :  { %3262 = vpow2.f32 %v1759_v58  ;;  %v2041_v10 = vmul.f32 %v2039_v29, %v2037_v59  ;;  %v4525_v59 = vld [vmem:[#allocation5 + $0x20] ss:$8 sps:$4 sm:$0xff]  }
 0x51b   :  { %3264 = vpow2.f32 %v1761_v45  ;;  %v1409_v42 = vadd.f32 %v1407_v41, %v1402_v62  ;;  %v1765_v46 = vmul.f32 0.5, %v1408_v31  ;;  %v4465_v20 = vadd.f32 %v2042_v54, %v4459_v44  ;;  %v4513_v41 = vld [vmem:[#allocation5] ss:$8 sps:$4 sm:$0xff]   ;;  %v4516_v31 = vld [vmem:[#allocation5 + $0x14] ss:$8 sps:$4 sm:$0xff]  }
 0x51c   :  { %1805 = vmin.xlane.f32.xlu0 %v1804_v15  ;;  %v4468_v45 = vadd.f32 %v2041_v10, %v4456_v50 }
 0x51d   :  { %s3018_s15 = spop %3017  ;;  %v1766_v40 = vmul.f32 0.5, %v1409_v42  ;;  %v2068_v33 = vsel %vm70_vm0, %v4465_v20, 0.0  ;;  %v4528_v42 = vld [vmem:[#allocation5 + $0x34] ss:$8 sps:$4 sm:$0xff]  }
 0x51e   :  { %s3020_s1 = spop %3019  ;;  %s1479_s14 = smul.f32 0.00625, %s3018_s15  ;;  %v2067_v62 = vsel %vm70_vm0, %v4468_v45, 0.0 }
 0x51f   :  { %v2069_v30 = vadd.f32 %v2068_v33, %v2067_v62 }
 0x521   :  { %s3022_s27 = spop %3021 }
 0x522   :  { %s1531_s13 = ssub.f32 %s3020_s1, %s3022_s27 }
 0x524   :  { %s1532_s5 = smul.f32 0.2, %s1531_s13  ;;  %v3263_v9 = vpop.eup %3262 }
 0x525   :  { %v3265_v52 = vpop.eup %3264  ;;  %v2801_v51 = vadd.f32 -1.0, %v3263_v9 }
 0x526   :  { %s1533_s16 = ssub.f32 %s1479_s14, %s1532_s5  ;;  %v2802_v14 = vadd.f32 -1.0, %v3265_v52 }
 0x527   :  { %v1767_v21 = vmul.f32 0.5, %v2801_v51  ;;  %v4531_v51 = vld [vmem:[#allocation5 + $0x30] ss:$8 sps:$4 sm:$0xff]  }
 0x528   :  { %v1537_v39 = vstv %s1533_s16  ;;  %v1768_v26 = vmul.f32 0.5, %v2802_v14  ;;  %v4534_v14 = vld [vmem:[#allocation5 + $0x44] ss:$8 sps:$4 sm:$0xff]  }
 0x529   :  { %v1538_v13 = vsub.f32 %v4301_v57, %v1537_v39  ;;  %v4462_v58 = vadd.f32 %v1767_v21, %v1765_v46  ;;  %v4537_v39 = vld [vmem:[#allocation5 + $0x40] ss:$8 sps:$4 sm:$0xff]   ;;  %v4540_v21 = vld [vmem:[#allocation5 + $0x54] ss:$8 sps:$4 sm:$0xff]  }
 0x52a   :  { %v4472_v38 = vadd.f32 %v1768_v26, %v1766_v40  ;;  %v4549_v26 = vld [vmem:[#allocation5 + $0x50] ss:$8 sps:$4 sm:$0xff]  }
 0x52b   :  { %v4470_v15 = vmul.f32 0.16666667, %v1538_v13  ;;  %v1827_v34 = vsel %vm70_vm0, %v4462_v58, -inf  ;;  %v1814_v22 = vsel %vm70_vm0, %v4462_v58, 0.0  ;;  %vm1771_vm9 = vcmp.gt.f32.partialorder %v4411_v4, %v4462_v58 }
 0x52c   :  { %vm1772_vm10 = vcmp.gt.f32.partialorder %v4414_v27, %v4472_v38  ;;  %v1828_v48 = vsel %vm70_vm0, %v4472_v38, -inf  ;;  %v1815_v1 = vsel %vm70_vm0, %v4472_v38, 0.0  ;;  %vm2807_vm12 = vmpackc.low %vm1771_vm9, %vm1771_vm9  ;;  %v1839_v7 = vsel %vm70_vm0, %v4462_v58, inf }
 0x52d   :  { %v1541_v19 = vand.u32 2147483647, %v4470_v15  ;;  %vm2805_vm11 = vmpackc.low %vm1772_vm10, %vm1772_vm10  ;;  %v1829_v16 = vmax.f32 %v1827_v34, %v1828_v48  ;;  %v1816_v23 = vadd.f32 %v1815_v1, %v1814_v22  ;;  %v1840_v36 = vsel %vm70_vm0, %v4472_v38, inf  ;;  %v4552_v34 = vld [vmem:[#allocation5 + $0x64] ss:$8 sps:$4 sm:$0xff]  }
 0x52e   :  { %2806 = vmatprep.mubr.msk.bf16.mxu0 %vm2805_vm11, %v5088_v2  ;;  %v1841_v9 = vmin.f32 %v1839_v7, %v1840_v36  ;;  %v1549_v10 = vmul.f32 0.01, %v1538_v13  ;;  %v4563_v1 = vld [vmem:[#allocation5 + $0x60] ss:$8 sps:$4 sm:$0xff]   ;;  %v1540_v62 = vmax.f32 %v4470_v15, 0.0  ;;  %v2046_v15 = vsub.f32 %v4172_v43, %v4465_v20 }
 0x52f   :  { %v1542_v28 = vsub.f32 0.0, %v1541_v19  ;;  %1830 = vmax.xlane.f32.xlu0 %v1829_v16  ;;  %2808 = vmatmul.mubr.msk.bf16.vlgmr.msra.gmra.mrb[20].mxu0 %vm2807_vm12, %v5088_v2  ;;  %v2224_v58 = vmul.f32 0.75, %v4411_v4 }
 0x530   :  { %1817 = vadd.xlane.f32.xlu1 %v1816_v23  ;;  %2180 = vmatpush1.bf16.msra.mxu0 %v4513_v41  ;;  %v4566_v23 = vld [vmem:[#allocation5 + $0x74] ss:$8 sps:$4 sm:$0xff]  }
 0x531   :  { %v1543_v29 = vmul.f32 1.442695, %v1542_v28  ;;  %2181 = vmatprep.subr.bf16.mxu0 %v4516_v31  ;;  %5122 = vst [vmem:[#allocation24_spill] sm:$0xff] %v4566_v23 }
 0x533   :  { %3266 = vpow2.f32 %v1543_v29  ;;  %2070 = vadd.xlane.f32.xlu0 %v2069_v30 }
 0x534   :  { %1842 = vmin.xlane.f32.xlu1 %v1841_v9  ;;  %2182 = vmatpush1.bf16.msra.mxu0 %v4519_v3 }
 0x535   :  { %s3024_s17 = spop %3023  ;;  %2183 = vmatprep.subr.bf16.mxu0 %v4522_v60 }
 0x536   :  { %s3026_s18 = spop %3025  ;;  %s1510_s0 = smul.f32 0.00625, %s3024_s17 }
 0x538   :  { %s3028_s19 = spop %3027  ;;  %2184 = vmatpush1.bf16.msra.mxu0 %v4525_v59  ;;  %v5147_v53 = vld [vmem:[#allocation24_spill] sm:$0xff] }
 0x539   :  { %s1534_s20 = ssub.f32 %s3026_s18, %s3028_s19  ;;  %2185 = vmatprep.subr.bf16.mxu0 %v4528_v42  ;;  %s3030_s2 = spop %3029 }
 0x53a   :  { %s1602_s25 = smul.f32 0.001953125, %s3030_s2 }
 0x53b   :  { %s1535_s21 = smul.f32 0.2, %s1534_s20 }
 0x53c   :  { %s3032_s22 = spop %3031  ;;  %2186 = vmatpush1.bf16.msra.mxu0 %v4531_v51 }
 0x53d   :  { %v3267_v52 = vpop.eup %3266  ;;  %s1536_s23 = ssub.f32 %s1510_s0, %s1535_s21  ;;  %s3034_s24 = spop %3033  ;;  %2187 = vmatprep.subr.bf16.mxu0 %v4534_v14 }
 0x53e   :  { %v1545_v54 = vadd.f32 1.0, %v3267_v52  ;;  %s1664_s3 = ssub.f32 %s3032_s22, %s3034_s24  ;;  %v4570_v52 = vld [vmem:[#allocation5 + $0x70] ss:$8 sps:$4 sm:$0xff]  }
 0x53f   :  { %v1550_v35 = vstv %s1536_s23  ;;  %5123 = vst [vmem:[#allocation25_spill] sm:$0xff] %v4570_v52 }
 0x540   :  { %3268 = vlog2.f32 %v1545_v54  ;;  %v1551_v46 = vadd.f32 %v1550_v35, %v1549_v10  ;;  %s1665_s26 = smul.f32 0.2, %s1664_s3  ;;  %2188 = vmatpush1.bf16.msra.mxu0 %v4537_v39  ;;  %v2045_v54 = vsub.f32 %v4175_v47, %v4468_v45  ;;  %v4575_v10 = vld [vmem:[#allocation5 + $0x84] ss:$8 sps:$4 sm:$0xff]   ;;  %s4588_s29 = spop %3035 }
 0x541   :  { %2189 = vmatprep.subr.bf16.mxu0 %v4540_v21  ;;  %5124 = vst [vmem:[#allocation26_spill] sm:$0xff] %v4575_v10  ;;  %s3038_s30 = spop %3037  ;;  %s1639_s4 = smul.f32 0.001953125, %s4588_s29 }
 0x542   :  { %s1666_s28 = ssub.f32 %s1602_s25, %s1665_s26 }
 0x544   :  { %v1670_v37 = vstv %s1666_s28  ;;  %2190 = vmatpush1.bf16.msra.mxu0 %v4549_v26  ;;  %s3040_s8 = spop %3039 }
 0x545   :  { %v4544_v40 = vsub.f32 %v4175_v47, %v1670_v37  ;;  %v4547_v13 = vsub.f32 %v4172_v43, %v1670_v37  ;;  %2191 = vmatprep.subr.bf16.mxu0 %v4552_v34  ;;  %v4582_v37 = vld [vmem:[#allocation5 + $0x80] ss:$8 sps:$4 sm:$0xff]   ;;  %v2048_v47 = vmul.f32 0.33333334, %v2046_v15  ;;  %v4593_v43 = vld [vmem:[#allocation5 + $0xa4] ss:$8 sps:$4 sm:$0xff]   ;;  %s1667_s9 = ssub.f32 %s3038_s30, %s3040_s8 }
 0x546   :  { %5125 = vst [vmem:[#allocation27_spill] sm:$0xff] %v4582_v37  ;;  %5128 = vst [vmem:[#allocation30_spill] sm:$0xff] %v4593_v43  ;;  %v4605_v15 = vld [vmem:[#allocation5 + $0xc4] ss:$8 sps:$4 sm:$0xff]  }
 0x547   :  { %v4556_v22 = vmul.f32 0.16666667, %v4544_v40  ;;  %v4559_v19 = vmul.f32 0.16666667, %v4547_v13  ;;  %s1668_s10 = smul.f32 0.2, %s1667_s9 }
 0x548   :  { %2192 = vmatpush1.bf16.msra.mxu0 %v4563_v1  ;;  %5132 = vst [vmem:[#allocation10_spill] sm:$0xff] %v4605_v15 }
 0x549   :  { %v1677_v48 = vand.u32 2147483647, %v4556_v22  ;;  %v1678_v16 = vand.u32 2147483647, %v4559_v19  ;;  %2193 = vmatprep.subr.bf16.mxu0 %v4566_v23  ;;  %s1669_s11 = ssub.f32 %s1639_s4, %s1668_s10  ;;  %v4628_v23 = vld [vmem:[#allocation5 + $0xf4] ss:$8 sps:$4 sm:$0xff]  }
 0x54a   :  { %v3269_v28 = vpop.eup %3268 }
 0x54b   :  { %v1547_v33 = vmul.f32 0.6931472, %v3269_v28  ;;  %v1679_v7 = vsub.f32 0.0, %v1677_v48  ;;  %v1680_v36 = vsub.f32 0.0, %v1678_v16  ;;  %v2047_v48 = vmul.f32 0.33333334, %v2045_v54 }
 0x54c   :  { %2194 = vmatpush1.bf16.msra.mxu0 %v4570_v52  ;;  %v4585_v16 = vld [vmem:[#allocation5 + $0x94] ss:$8 sps:$4 sm:$0xff]   ;;  %v4590_v28 = vld [vmem:[#allocation5 + $0x90] ss:$8 sps:$4 sm:$0xff]  }
 0x54d   :  { %v1548_v29 = vadd.f32 %v1547_v33, %v1540_v62  ;;  %v1681_v30 = vmul.f32 1.442695, %v1679_v7  ;;  %v1683_v9 = vmul.f32 1.442695, %v1680_v36  ;;  %2195 = vmatprep.subr.bf16.mxu0 %v4575_v10  ;;  %5126 = vst [vmem:[#allocation28_spill] sm:$0xff] %v4585_v16  ;;  %5127 = vst [vmem:[#allocation29_spill] sm:$0xff] %v4590_v28 }
 0x54e   :  { %v2051_v62 = vmul.f32 1.442695, %v2048_v47  ;;  %v4596_v7 = vld [vmem:[#allocation5 + $0xa0] ss:$8 sps:$4 sm:$0xff]   ;;  %v4602_v54 = vld [vmem:[#allocation5 + $0xb0] ss:$8 sps:$4 sm:$0xff]  }
 0x54f   :  { %v4578_v35 = vadd.f32 %v1551_v46, %v1548_v29  ;;  %3270 = vpow2.f32 %v1681_v30  ;;  %v2049_v46 = vmul.f32 1.442695, %v2047_v48  ;;  %5129 = vst [vmem:[#allocation31_spill] sm:$0xff] %v4596_v7  ;;  %v4599_v30 = vld [vmem:[#allocation5 + $0xb4] ss:$8 sps:$4 sm:$0xff]   ;;  %5131 = vst [vmem:[#allocation12_spill] sm:$0xff] %v4602_v54 }
 0x550   :  { %3272 = vpow2.f32 %v1683_v9  ;;  %2196 = vmatpush1.bf16.msra.mxu0 %v4582_v37  ;;  %5130 = vst [vmem:[#allocation32_spill] sm:$0xff] %v4599_v30  ;;  %v4609_v48 = vld [vmem:[#allocation5 + $0xc0] ss:$8 sps:$4 sm:$0xff]   ;;  %v4612_v47 = vld [vmem:[#allocation5 + $0xd4] ss:$8 sps:$4 sm:$0xff]  }
 0x551   :  { %2197 = vmatprep.subr.bf16.mxu0 %v4585_v16  ;;  %3274 = vpow2.f32 %v2049_v46  ;;  %5133 = vst [vmem:[#allocation11_spill] sm:$0xff] %v4609_v48  ;;  %5134 = vst [vmem:[#allocation13_spill] sm:$0xff] %v4612_v47  ;;  %v4625_v37 = vld [vmem:[#allocation5 + $0xe0] ss:$8 sps:$4 sm:$0xff]  }
 0x552   :  { %3276 = vpow2.f32 %v2051_v62 }
 0x554   :  { %2198 = vmatpush1.bf16.msra.mxu0 %v4590_v28 }
 0x555   :  { %2199 = vmatprep.subr.bf16.mxu0 %v4593_v43  ;;  %v1694_v43 = vmul.f32 0.01, %v4547_v13 }
 0x558   :  { %2200 = vmatpush1.bf16.msra.mxu0 %v4596_v7 }
 0x559   :  { %v3271_v33 = vpop.eup %3270  ;;  %2201 = vmatprep.subr.bf16.mxu0 %v4599_v30  ;;  %v1693_v30 = vmul.f32 0.01, %v4544_v40 }
 0x55a   :  { %v3273_v36 = vpop.eup %3272  ;;  %v1685_v29 = vadd.f32 1.0, %v3271_v33  ;;  %v4615_v33 = vld [vmem:[#allocation5 + $0xd0] ss:$8 sps:$4 sm:$0xff]  }
 0x55b   :  { %v1686_v9 = vadd.f32 1.0, %v3273_v36  ;;  %v3275_v46 = vpop.eup %3274  ;;  %5135 = vst [vmem:[#allocation33_spill] sm:$0xff] %v4615_v33 }
 0x55c   :  { %3278 = vlog2.f32 %v1685_v29  ;;  %2202 = vmatpush1.bf16.msra.mxu0 %v4602_v54  ;;  %v3277_v62 = vpop.eup %3276  ;;  %v1695_v29 = vstv %s1669_s11 }
 0x55d   :  { %3280 = vlog2.f32 %v1686_v9  ;;  %2203 = vmatprep.subr.bf16.mxu0 %v4605_v15  ;;  %v4618_v9 = vld [vmem:[#allocation5 + $0xe4] ss:$8 sps:$4 sm:$0xff]   ;;  %v1696_v16 = vadd.f32 %v1695_v29, %v1693_v30  ;;  %v2812_v52 = vadd.f32 -1.0, %v3277_v62 }
 0x55e   :  { %5136 = vst [vmem:[#allocation34_spill] sm:$0xff] %v4618_v9 }
 0x55f   :  { %v2058_v30 = vmul.f32 0.5, %v2812_v52 }
 0x560   :  { %2204 = vmatpush1.bf16.msra.mxu0 %v4609_v48  ;;  %v1675_v48 = vmax.f32 %v4556_v22, 0.0 }
 0x561   :  { %2205 = vmatprep.subr.bf16.mxu0 %v4612_v47  ;;  %v1676_v47 = vmax.f32 %v4559_v19, 0.0 }
 0x564   :  { %2206 = vmatpush1.bf16.msra.mxu0 %v4615_v33  ;;  %v2811_v33 = vadd.f32 -1.0, %v3275_v46  ;;  %v2514_v46 = vmul.f32 0.75, %v4468_v45 }
 0x565   :  { %2207 = vmatprep.subr.bf16.mxu0 %v4618_v9  ;;  %v1697_v9 = vadd.f32 %v1695_v29, %v1694_v43  ;;  %v2510_v43 = vmul.f32 0.5, %v4456_v50 }
 0x566   :  { %v3279_v36 = vpop.eup %3278 }
 0x567   :  { %v3281_v15 = vpop.eup %3280  ;;  %v1688_v54 = vmul.f32 0.6931472, %v3279_v36  ;;  %v4631_v36 = vld [vmem:[#allocation5 + $0xf0] ss:$8 sps:$4 sm:$0xff]  }
 0x568   :  { %v1690_v7 = vmul.f32 0.6931472, %v3281_v15  ;;  %2208 = vmatpush1.bf16.msra.mxu0 %v4625_v37  ;;  %v2057_v15 = vmul.f32 0.5, %v2811_v33 }
 0x569   :  { %v1691_v28 = vadd.f32 %v1688_v54, %v1675_v48  ;;  %2209 = vmatprep.subr.bf16.mxu0 %v4628_v23  ;;  %v3412_v54 = vld [vmem:[#allocation7 + $0x40] sm:$0xff]  }
 0x56a   :  { %v1692_v10 = vadd.f32 %v1690_v7, %v1676_v47  ;;  %v2511_v7 = vmul.f32 0.5, %v4459_v44 }
 0x56b   :  { %v1698_v40 = vadd.f32 %v1696_v16, %v1691_v28 }
 0x56c   :  { %v1699_v22 = vadd.f32 %v1697_v9, %v1692_v10  ;;  %2210 = vmatpush1.bf16.msra.mxu0 %v4631_v36 }
 0x56d   :  { %v2055_v19 = vmul.f32 0.5, %v1698_v40  ;;  %2935 = vmatprep.subr.bf16.mxu0 %v3412_v54 }
 0x56e   :  { %v2056_v13 = vmul.f32 0.5, %v1699_v22 }
 0x56f   :  { %v2059_v48 = vadd.f32 %v2057_v15, %v2055_v19  ;;  %v2515_v19 = vmul.f32 0.75, %v4465_v20  ;;  %v5137_v15 = vld [vmem:[#allocation14_spill] sm:$0xff] }
 0x570   :  { %v2060_v47 = vadd.f32 %v2058_v30, %v2056_v13  ;;  %v2512_v13 = vadd.f32 %v2510_v43, %v5137_v15 }
 0x571   :  { %vm2061_vm13 = vcmp.gt.f32.partialorder %v4468_v45, %v2059_v48  ;;  %v4640_v10 = vsel %vm70_vm0, %v2059_v48, -inf  ;;  %v2104_v16 = vsel %vm70_vm0, %v2059_v48, 0.0  ;;  %v4646_v52 = vsel %vm70_vm0, %v2059_v48, inf  ;;  %v5138_v48 = vld [vmem:[#allocation15_spill] sm:$0xff] }
 0x572   :  { %vm2062_vm15 = vcmp.gt.f32.partialorder %v4465_v20, %v2060_v47  ;;  %v2813_v50 = vsel %vm2061_vm13, 1.0, %v5108_v24  ;;  %vm2817_vm1 = vmpackc.low %vm2061_vm13, %vm2061_vm13  ;;  %v4652_v44 = vsel %vm70_vm0, %v2060_v47, -inf  ;;  %v2105_v28 = vsel %vm70_vm0, %v2060_v47, 0.0 }
 0x573   :  { %v2814_v62 = vsel %vm2062_vm15, 1.0, %v5108_v24  ;;  %vm2815_vm2 = vmpackc.low %vm2062_vm15, %vm2062_vm15  ;;  %v2516_v33 = vsub.f32 1.0, %v2813_v50  ;;  %v2119_v29 = vmax.f32 %v4640_v10, %v4652_v44  ;;  %v4659_v9 = vadd.f32 %v2105_v28, %v2104_v16 }
 0x574   :  { %2816 = vmatprep.mubr.msk.bf16.mxu0 %vm2815_vm2, %v5088_v2  ;;  %v2517_v40 = vsub.f32 1.0, %v2814_v62  ;;  %v4664_v22 = vsel %vm70_vm0, %v2060_v47, inf  ;;  %v2513_v16 = vadd.f32 %v2511_v7, %v5138_v48  ;;  %v2803_v10 = vsel %vm1771_vm9, 1.0, %v5108_v24 }
 0x575   :  { %2818 = vmatmul.mubr.msk.bf16.vlgmr.msra.gmra.mrb[24].mxu0 %vm2817_vm1, %v5088_v2  ;;  %v2131_v30 = vmin.f32 %v4646_v52, %v4664_v22  ;;  %v2518_v54 = vmul.f32 %v2516_v33, %v2514_v46  ;;  %v2804_v44 = vsel %vm1772_vm10, 1.0, %v5108_v24 }
 0x576   :  { %v2519_v50 = vmul.f32 %v2517_v40, %v2515_v19  ;;  %2936 = vmatpush3.bf16.msra.mxu0 %v4259_v49  ;;  %v5139_v49 = vld [vmem:[#allocation19_spill] sm:$0xff]  ;;  %v2227_v52 = vsub.f32 1.0, %v2804_v44 }
 0x577   :  { %v4673_v28 = vadd.f32 %v2518_v54, %v2512_v13  ;;  %2937 = vmatprep.subr.bf16.mxu0 %v4262_v63  ;;  %v5140_v63 = vld [vmem:[#allocation20_spill] sm:$0xff] }
 0x578   :  { %v4676_v47 = vadd.f32 %v2519_v50, %v2513_v16 }
 0x57a   :  { %2938 = vmatpush3.bf16.msra.mxu0 %v4265_v0  ;;  %v5141_v0 = vld [vmem:[#allocation21_spill] sm:$0xff] }
 0x57b   :  { %2939 = vmatprep.subr.bf16.mxu0 %v4268_v55  ;;  %v5142_v55 = vld [vmem:[#allocation22_spill] sm:$0xff] }
 0x57e   :  { %2940 = vmatpush3.bf16.msra.mxu0 %v4273_v5 }
 0x57f   :  { %2941 = vmatprep.subr.bf16.mxu0 %v4276_v11 }
 0x582   :  { %2942 = vmatpush3.bf16.msra.mxu0 %v4282_v12 }
 0x583   :  { %2943 = vmatprep.subr.bf16.mxu0 %v4286_v6 }
 0x586   :  { %2944 = vmatpush3.bf16.msra.mxu0 %v4292_v61 }
 0x587   :  { %2945 = vmatprep.subr.bf16.mxu0 %v4297_v8 }
 0x58a   :  { %2946 = vmatpush3.bf16.msra.mxu0 %v4303_v32 }
 0x58b   :  { %2947 = vmatprep.subr.bf16.mxu0 %v5139_v49 }
 0x58e   :  { %2948 = vmatpush3.bf16.msra.mxu0 %v5140_v63 }
 0x58f   :  { %2949 = vmatprep.subr.bf16.mxu0 %v5141_v0 }
 0x592   :  { %2950 = vmatpush3.bf16.msra.mxu0 %v5142_v55 }
 0x5a5   :  { %v1794_v5 = vpop.xlane.xlu1 %1793  ;;  %v1781_v11 = vpop.xlane.xlu0 %1780 }
 0x5a6   :  { %v1795_v43 = vrot.slane %v1794_v5, 4  ;;  %v1782_v12 = vrot.slane %v1781_v11, 4 }
 0x5a8   :  { %v1796_v7 = vmax.f32 %v1794_v5, %v1795_v43  ;;  %v1783_v6 = vadd.f32 %v1782_v12, %v1781_v11 }
 0x5a9   :  { %v1806_v46 = vpop.xlane.xlu0 %1805 }
 0x5aa   :  { %v1797_v61 = vrot.slane %v1796_v7, 2  ;;  %v1784_v62 = vrot.slane %v1783_v6, 2  ;;  %v1807_v8 = vrot.slane %v1806_v46, 4 }
 0x5ac   :  { %v1808_v33 = vmin.f32 %v1806_v46, %v1807_v8  ;;  %v1785_v32 = vadd.f32 %v1784_v62, %v1783_v6  ;;  %v1798_v40 = vmax.f32 %v1796_v7, %v1797_v61 }
 0x5ae   :  { %v1809_v19 = vrot.slane %v1808_v33, 2  ;;  %v1786_v15 = vrot.slane %v1785_v32, 1  ;;  %v1799_v13 = vrot.slane %v1798_v40, 1 }
 0x5b0   :  { %v1787_v54 = vadd.f32 %v1786_v15, %v1785_v32  ;;  %v1800_v48 = vmax.f32 %v1798_v40, %v1799_v13  ;;  %v1810_v16 = vmin.f32 %v1808_v33, %v1809_v19 }
 0x5b2   :  { %3041 = vpush %v1787_v54  ;;  %v1811_v50 = vrot.slane %v1810_v16, 1 }
 0x5b3   :  { %3043 = vpush %v1800_v48 }
 0x5b4   :  { %v1812_v49 = vmin.f32 %v1810_v16, %v1811_v50  ;;  %v5143_v16 = vld [vmem:[#allocation23_spill] sm:$0xff] }
 0x5b5   :  { %vm1466_vm3 = vcmp.gt.f32.partialorder %v4301_v57, %v5143_v16 }
 0x5b6   :  { %3045 = vpush %v1812_v49  ;;  %v2792_v50 = vsel %vm1466_vm3, 1.0, %v5108_v24 }
 0x5bc   :  { %v1831_v63 = vpop.xlane.xlu0 %1830 }
 0x5bd   :  { %v1832_v0 = vrot.slane %v1831_v63, 4  ;;  %v1818_v55 = vpop.xlane.xlu1 %1817 }
 0x5be   :  { %v1819_v5 = vrot.slane %v1818_v55, 4 }
 0x5bf   :  { %v1833_v11 = vmax.f32 %v1831_v63, %v1832_v0 }
 0x5c0   :  { %v1820_v43 = vadd.f32 %v1819_v5, %v1818_v55  ;;  %v1932_v55 = vsub.f32 1.0, %v2792_v50 }
 0x5c1   :  { %v1834_v12 = vrot.slane %v1833_v11, 2  ;;  %v1843_v6 = vpop.xlane.xlu1 %1842 }
 0x5c2   :  { %v1821_v7 = vrot.slane %v1820_v43, 2  ;;  %v1844_v46 = vrot.slane %v1843_v6, 4 }
 0x5c3   :  { %v1835_v61 = vmax.f32 %v1833_v11, %v1834_v12 }
 0x5c4   :  { %v1845_v62 = vmin.f32 %v1843_v6, %v1844_v46  ;;  %v1822_v8 = vadd.f32 %v1821_v7, %v1820_v43  ;;  %v4697_v43 = vld [vmem:[%s5009_s6] ss:$0 sm:$0xff]  ;;  %v1931_v46 = vmul.f32 0.75, %v4301_v57 }
 0x5c5   :  { %v1836_v32 = vrot.slane %v1835_v61, 1  ;;  %v5144_v6 = vld [vmem:[#allocation18_spill] sm:$0xff] }
 0x5c6   :  { %v1846_v33 = vrot.slane %v1845_v62, 2  ;;  %v1823_v40 = vrot.slane %v1822_v8, 1  ;;  %v1929_v7 = vmul.f32 0.5, %v5144_v6 }
 0x5c7   :  { %v1837_v19 = vmax.f32 %v1835_v61, %v1836_v32 }
 0x5c8   :  { %v1824_v15 = vadd.f32 %v1823_v40, %v1822_v8  ;;  %v1847_v13 = vmin.f32 %v1845_v62, %v1846_v33  ;;  %v1933_v62 = vmul.f32 %v1932_v55, %v1931_v46  ;;  %v5146_v55 = vld [vmem:[#allocation17_spill] sm:$0xff] }
 0x5ca   :  { %3047 = vpush %v1824_v15  ;;  %v1848_v54 = vrot.slane %v1847_v13, 1 }
 0x5cb   :  { %3049 = vpush %v1837_v19 }
 0x5cc   :  { %v1849_v48 = vmin.f32 %v1847_v13, %v1848_v54 }
 0x5ce   :  { %3051 = vpush %v1849_v48 }
 0x5e3   :  { %s3042_s1 = spop %3041 }
 0x5e4   :  { %s3044_s27 = spop %3043  ;;  %s1789_s16 = smul.f32 0.001953125, %s3042_s1 }
 0x5e7   :  { %s3046_s13 = spop %3045 }
 0x5e8   :  { %s1851_s14 = ssub.f32 %s3044_s27, %s3046_s13 }
 0x5ea   :  { %s1852_s5 = smul.f32 0.2, %s1851_s14 }
 0x5ec   :  { %s1853_s17 = ssub.f32 %s1789_s16, %s1852_s5 }
 0x5fb   :  { %s4774_s18 = spop %3047 }
 0x5fc   :  { %s3050_s19 = spop %3049  ;;  %s1826_s2 = smul.f32 0.001953125, %s4774_s18 }
 0x5ff   :  { %s3052_s20 = spop %3051 }
 0x600   :  { %s1854_s0 = ssub.f32 %s3050_s19, %s3052_s20 }
 0x602   :  { %v2907_v49 = vpop.f32.mrb[20].mxu0  ;;  %s1855_s21 = smul.f32 0.2, %s1854_s0 }
 0x603   :  { %v2908_v63 = vpop.f32.mrb[21].mxu0 }
 0x604   :  { %v2909_v0 = vadd.f32 %v2908_v63, %v2907_v49  ;;  %v2910_v5 = vpop.f32.mrb[22].mxu0  ;;  %v1857_v63 = vstv %s1853_s17  ;;  %s1856_s22 = ssub.f32 %s1826_s2, %s1855_s21 }
 0x605   :  { %v2911_v11 = vpop.f32.mrb[23].mxu0  ;;  %v1553_v5 = vadd.f32 %v2792_v50, %v5146_v55  ;;  %v4727_v6 = vsub.f32 %v4411_v4, %v1857_v63  ;;  %v4735_v50 = vsub.f32 %v4414_v27, %v1857_v63 }
 0x606   :  { %v1924_v12 = vadd.f32 %v4697_v43, %v2909_v0  ;;  %v2092_v11 = vsel %vm70_vm0, %v4468_v45, inf }
 0x608   :  { %v4702_v61 = vadd.f32 %v1929_v7, %v1924_v12  ;;  %v2093_v12 = vsel %vm70_vm0, %v4465_v20, inf }
 0x60a   :  { %v4705_v8 = vadd.f32 %v1933_v62, %v4702_v61 }
 0x60c   :  { %v1957_v33 = vsel %vm4045_vm14, %v4705_v8, -inf  ;;  %v1946_v40 = vsel %vm4045_vm14, %v4705_v8, 0.0  ;;  %v1935_v19 = vsub.f32 %v4301_v57, %v4705_v8  ;;  %v1967_v13 = vsel %vm4045_vm14, %v4705_v8, inf }
 0x60d   :  { %1958 = vmax.xlane.f32.xlu1 %v1957_v33  ;;  %1947 = vadd.xlane.f32.xlu0 %v1946_v40  ;;  %v1940_v57 = vmul.f32 0.5, %v4578_v35  ;;  %v2094_v33 = vmin.f32 %v2092_v11, %v2093_v12  ;;  %v4744_v40 = vmul.f32 0.16666667, %v4727_v6  ;;  %v2226_v12 = vsub.f32 1.0, %v2803_v10 }
 0x60e   :  { %v1936_v15 = vmul.f32 0.33333334, %v1935_v19 }
 0x610   :  { %v1937_v54 = vmul.f32 1.442695, %v1936_v15  ;;  %v2080_v15 = vsel %vm70_vm0, %v4468_v45, -inf }
 0x611   :  { %1968 = vmin.xlane.f32.xlu0 %v1967_v13  ;;  %v2081_v13 = vsel %vm70_vm0, %v4465_v20, -inf }
 0x612   :  { %3282 = vpow2.f32 %v1937_v54  ;;  %v4755_v54 = vmul.f32 0.16666667, %v4735_v50 }
 0x61c   :  { %v3283_v48 = vpop.eup %3282 }
 0x61d   :  { %v2809_v16 = vadd.f32 -1.0, %v3283_v48  ;;  %v2082_v48 = vmax.f32 %v2080_v15, %v2081_v13 }
 0x61f   :  { %v1941_v49 = vmul.f32 0.5, %v2809_v16  ;;  %v1864_v16 = vand.u32 2147483647, %v4744_v40 }
 0x621   :  { %v1942_v0 = vadd.f32 %v1941_v49, %v1940_v57  ;;  %v1865_v57 = vand.u32 2147483647, %v4755_v54  ;;  %v1866_v49 = vsub.f32 0.0, %v1864_v16 }
 0x623   :  { %v1988_v7 = vsel %vm4045_vm14, %v1942_v0, -inf  ;;  %v1977_v35 = vsel %vm4045_vm14, %v1942_v0, 0.0  ;;  %vm1943_vm4 = vcmp.gt.f32.partialorder %v4705_v8, %v1942_v0  ;;  %v1998_v19 = vsel %vm4045_vm14, %v1942_v0, inf }
 0x624   :  { %1989 = vmax.xlane.f32.xlu0 %v1988_v7  ;;  %1978 = vadd.xlane.f32.xlu1 %v1977_v35  ;;  %v4738_v46 = vsel %vm1943_vm4, 1.0, %v5108_v24  ;;  %v1867_v63 = vsub.f32 0.0, %v1865_v57  ;;  %v1868_v0 = vmul.f32 1.442695, %v1866_v49  ;;  %v2220_v7 = vmul.f32 0.5, %v4405_v17 }
 0x625   :  { %v4741_v62 = vadd.f32 %v4738_v46, %v1553_v5 }
 0x626   :  { %v1870_v55 = vmul.f32 1.442695, %v1867_v63  ;;  %3284 = vpow2.f32 %v1868_v0 }
 0x628   :  { %2095 = vmin.xlane.f32.xlu0 %v2094_v33  ;;  %1999 = vmin.xlane.f32.xlu1 %v1998_v19  ;;  %3286 = vpow2.f32 %v1870_v55  ;;  %v2221_v33 = vmul.f32 0.5, %v4407_v18  ;;  %v2225_v19 = vmul.f32 0.75, %v4414_v27 }
 0x62a   :  { %v2229_v49 = vmul.f32 %v2227_v52, %v2225_v19  ;;  %v1863_v19 = vmax.f32 %v4755_v54, 0.0 }
 0x62c   :  { %2120 = vmax.xlane.f32.xlu0 %v2119_v29  ;;  %2083 = vmax.xlane.f32.xlu1 %v2082_v48  ;;  %v2228_v48 = vmul.f32 %v2226_v12, %v2224_v58 }
 0x630   :  { %2107 = vadd.xlane.f32.xlu1 %v4659_v9  ;;  %v3285_v5 = vpop.eup %3284 }
 0x631   :  { %v1872_v29 = vadd.f32 1.0, %v3285_v5 }
 0x632   :  { %v3287_v11 = vpop.eup %3286 }
 0x633   :  { %v1873_v9 = vadd.f32 1.0, %v3287_v11  ;;  %3288 = vlog2.f32 %v1872_v29 }
 0x634   :  { %2132 = vmin.xlane.f32.xlu1 %v2131_v30 }
 0x635   :  { %3290 = vlog2.f32 %v1873_v9 }
 0x648   :  { %v2213_v22 = vpop.f32.mrb[24].mxu0 }
 0x649   :  { %v2214_v30 = vadd.f32 %v2213_v22, %v5109_v25  ;;  %v2215_v35 = vpop.f32.mrb[25].mxu0  ;;  %v3289_v22 = vpop.eup %3288 }
 0x64a   :  { %v2216_v38 = vadd.f32 %v2215_v35, %v5110_v56  ;;  %v2217_v15 = vpop.f32.mrb[26].mxu0  ;;  %v1875_v35 = vmul.f32 0.6931472, %v3289_v22 }
 0x64b   :  { %v4782_v13 = vadd.f32 %v2220_v7, %v2214_v30  ;;  %v2218_v16 = vpop.f32.mrb[27].mxu0  ;;  %v3291_v7 = vpop.eup %3290  ;;  %v1882_v15 = vstv %s1856_s22 }
 0x64c   :  { %v4784_v57 = vadd.f32 %v2221_v33, %v2216_v38  ;;  %v1877_v38 = vmul.f32 0.6931472, %v3291_v7  ;;  %v1862_v33 = vmax.f32 %v4744_v40, 0.0  ;;  %v1880_v16 = vmul.f32 0.01, %v4727_v6 }
 0x64d   :  { %v4787_v17 = vadd.f32 %v2228_v48, %v4782_v13 }
 0x64e   :  { %v4790_v63 = vadd.f32 %v2229_v49, %v4784_v57  ;;  %v1878_v48 = vadd.f32 %v1875_v35, %v1862_v33  ;;  %v1879_v49 = vadd.f32 %v1877_v38, %v1863_v19 }
 0x64f   :  { %v2267_v18 = vsel %vm70_vm0, %v4787_v17, -inf  ;;  %v2254_v0 = vsel %vm70_vm0, %v4787_v17, 0.0  ;;  %v2232_v55 = vsub.f32 %v4411_v4, %v4787_v17  ;;  %v2279_v12 = vsel %vm70_vm0, %v4787_v17, inf }
 0x650   :  { %v2268_v5 = vsel %vm70_vm0, %v4790_v63, -inf  ;;  %v2255_v11 = vsel %vm70_vm0, %v4790_v63, 0.0  ;;  %v2233_v10 = vsub.f32 %v4414_v27, %v4790_v63  ;;  %v2280_v4 = vsel %vm70_vm0, %v4790_v63, inf }
 0x651   :  { %v2269_v44 = vmax.f32 %v2267_v18, %v2268_v5  ;;  %v2256_v29 = vadd.f32 %v2255_v11, %v2254_v0  ;;  %v2234_v9 = vmul.f32 0.33333334, %v2232_v55  ;;  %v2281_v58 = vmin.f32 %v2279_v12, %v2280_v4 }
 0x652   :  { %v2235_v52 = vmul.f32 0.33333334, %v2233_v10  ;;  %v1881_v18 = vmul.f32 0.01, %v4735_v50  ;;  %v1883_v0 = vadd.f32 %v1882_v15, %v1880_v16  ;;  %v5159_v16 = vld [vmem:[#allocation13_spill] sm:$0xff] }
 0x653   :  { %2270 = vmax.xlane.f32.xlu1 %v2269_v44  ;;  %2257 = vadd.xlane.f32.xlu0 %v2256_v29  ;;  %v2236_v30 = vmul.f32 1.442695, %v2234_v9 }
 0x654   :  { %v2238_v27 = vmul.f32 1.442695, %v2235_v52  ;;  %v1884_v55 = vadd.f32 %v1882_v15, %v1881_v18  ;;  %v1885_v5 = vadd.f32 %v1883_v0, %v1878_v48  ;;  %v5158_v48 = vld [vmem:[#allocation11_spill] sm:$0xff] }
 0x655   :  { %3292 = vpow2.f32 %v2236_v30 }
 0x656   :  { %3294 = vpow2.f32 %v2238_v27  ;;  %v1886_v10 = vadd.f32 %v1884_v55, %v1879_v49  ;;  %v2242_v12 = vmul.f32 0.5, %v1885_v5 }
 0x657   :  { %2282 = vmin.xlane.f32.xlu0 %v2281_v58 }
 0x658   :  { %v2243_v40 = vmul.f32 0.5, %v1886_v10  ;;  %v5160_v10 = vld [vmem:[#allocation33_spill] sm:$0xff] }
 0x65f   :  { %v3293_v11 = vpop.eup %3292 }
 0x660   :  { %v3295_v44 = vpop.eup %3294  ;;  %v2819_v29 = vadd.f32 -1.0, %v3293_v11 }
 0x661   :  { %v2820_v9 = vadd.f32 -1.0, %v3295_v44  ;;  %v5161_v44 = vld [vmem:[#allocation34_spill] sm:$0xff] }
 0x662   :  { %v2244_v4 = vmul.f32 0.5, %v2819_v29 }
 0x663   :  { %v2245_v52 = vmul.f32 0.5, %v2820_v9 }
 0x664   :  { %v4819_v54 = vadd.f32 %v2244_v4, %v2242_v12 }
 0x665   :  { %v4821_v22 = vadd.f32 %v2245_v52, %v2243_v40 }
 0x666   :  { %v2304_v6 = vsel %vm70_vm0, %v4819_v54, -inf  ;;  %v2291_v50 = vsel %vm70_vm0, %v4819_v54, 0.0  ;;  %vm2248_vm6 = vcmp.gt.f32.partialorder %v4787_v17, %v4819_v54  ;;  %v2316_v35 = vsel %vm70_vm0, %v4819_v54, inf }
 0x667   :  { %vm2249_vm5 = vcmp.gt.f32.partialorder %v4790_v63, %v4821_v22  ;;  %v2305_v30 = vsel %vm70_vm0, %v4821_v22, -inf  ;;  %v2292_v7 = vsel %vm70_vm0, %v4821_v22, 0.0  ;;  %v2317_v38 = vsel %vm70_vm0, %v4821_v22, inf  ;;  %vm2825_vm8 = vmpackc.low %vm2248_vm6, %vm2248_vm6 }
 0x668   :  { %vm2823_vm7 = vmpackc.low %vm2249_vm5, %vm2249_vm5  ;;  %v2306_v27 = vmax.f32 %v2304_v6, %v2305_v30  ;;  %v2293_v58 = vadd.f32 %v2292_v7, %v2291_v50  ;;  %v2318_v33 = vmin.f32 %v2316_v35, %v2317_v38  ;;  %v2591_v54 = vmul.f32 0.75, %v4787_v17 }
 0x669   :  { %2824 = vmatprep.mubr.msk.bf16.mxu1 %vm2823_vm7, %v5088_v2 }
 0x66a   :  { %2307 = vmax.xlane.f32.xlu0 %v2306_v27  ;;  %2294 = vadd.xlane.f32.xlu1 %v2293_v58 }
 0x66b   :  { %2826 = vmatmul.mubr.msk.bf16.vlgmr.msra.gmra.mrb[12].mxu1 %vm2825_vm8, %v5088_v2 }
 0x66c   :  { %2547 = vmatpush1.bf16.msra.mxu1 %v4513_v41  ;;  %v5148_v41 = vld [vmem:[#allocation25_spill] sm:$0xff] }
 0x66d   :  { %2548 = vmatprep.subr.bf16.mxu1 %v4516_v31  ;;  %v5149_v31 = vld [vmem:[#allocation26_spill] sm:$0xff] }
 0x66e   :  { %2319 = vmin.xlane.f32.xlu1 %v2318_v33 }
 0x670   :  { %2549 = vmatpush1.bf16.msra.mxu1 %v4519_v3  ;;  %v5150_v3 = vld [vmem:[#allocation27_spill] sm:$0xff] }
 0x671   :  { %2550 = vmatprep.subr.bf16.mxu1 %v4522_v60  ;;  %v5151_v60 = vld [vmem:[#allocation28_spill] sm:$0xff] }
 0x674   :  { %2551 = vmatpush1.bf16.msra.mxu1 %v4525_v59  ;;  %v5152_v59 = vld [vmem:[#allocation29_spill] sm:$0xff] }
 0x675   :  { %2552 = vmatprep.subr.bf16.mxu1 %v4528_v42  ;;  %v5153_v42 = vld [vmem:[#allocation30_spill] sm:$0xff] }
 0x678   :  { %2553 = vmatpush1.bf16.msra.mxu1 %v4531_v51  ;;  %v5154_v51 = vld [vmem:[#allocation31_spill] sm:$0xff] }
 0x679   :  { %2554 = vmatprep.subr.bf16.mxu1 %v4534_v14  ;;  %v5155_v14 = vld [vmem:[#allocation32_spill] sm:$0xff] }
 0x67c   :  { %2555 = vmatpush1.bf16.msra.mxu1 %v4537_v39  ;;  %v2071_v39 = vpop.xlane.xlu0 %2070 }
 0x67d   :  { %2556 = vmatprep.subr.bf16.mxu1 %v4540_v21  ;;  %v5156_v21 = vld [vmem:[#allocation12_spill] sm:$0xff]  ;;  %v2072_v58 = vrot.slane %v2071_v39, 4 }
 0x67f   :  { %v2073_v35 = vadd.f32 %v2072_v58, %v2071_v39 }
 0x680   :  { %2557 = vmatpush1.bf16.msra.mxu1 %v4549_v26  ;;  %v5157_v26 = vld [vmem:[#allocation10_spill] sm:$0xff] }
 0x681   :  { %2558 = vmatprep.subr.bf16.mxu1 %v4552_v34 }
 0x684   :  { %2559 = vmatpush1.bf16.msra.mxu1 %v4563_v1 }
 0x685   :  { %2560 = vmatprep.subr.bf16.mxu1 %v5147_v53 }
 0x688   :  { %2561 = vmatpush1.bf16.msra.mxu1 %v5148_v41 }
 0x689   :  { %2562 = vmatprep.subr.bf16.mxu1 %v5149_v31 }
 0x68c   :  { %2563 = vmatpush1.bf16.msra.mxu1 %v5150_v3  ;;  %v2074_v3 = vrot.slane %v2073_v35, 2 }
 0x68d   :  { %2564 = vmatprep.subr.bf16.mxu1 %v5151_v60 }
 0x68e   :  { %v2075_v39 = vadd.f32 %v2074_v3, %v2073_v35 }
 0x690   :  { %2565 = vmatpush1.bf16.msra.mxu1 %v5152_v59 }
 0x691   :  { %2566 = vmatprep.subr.bf16.mxu1 %v5153_v42 }
 0x694   :  { %2567 = vmatpush1.bf16.msra.mxu1 %v5154_v51 }
 0x695   :  { %2568 = vmatprep.subr.bf16.mxu1 %v5155_v14 }
 0x698   :  { %2569 = vmatpush1.bf16.msra.mxu1 %v5156_v21 }
 0x699   :  { %2570 = vmatprep.subr.bf16.mxu1 %v5157_v26 }
 0x69a   :  { %v1959_v34 = vpop.xlane.xlu1 %1958  ;;  %v1948_v1 = vpop.xlane.xlu0 %1947 }
 0x69b   :  { %v1960_v19 = vrot.slane %v1959_v34, 4  ;;  %v1949_v15 = vrot.slane %v1948_v1, 4 }
 0x69c   :  { %2571 = vmatpush1.bf16.msra.mxu1 %v5158_v48 }
 0x69d   :  { %2572 = vmatprep.subr.bf16.mxu1 %v5159_v16  ;;  %v1961_v49 = vmax.f32 %v1959_v34, %v1960_v19  ;;  %v1950_v18 = vadd.f32 %v1949_v15, %v1948_v1 }
 0x69e   :  { %v1969_v0 = vpop.xlane.xlu0 %1968 }
 0x69f   :  { %v1962_v55 = vrot.slane %v1961_v49, 2  ;;  %v1951_v5 = vrot.slane %v1950_v18, 2  ;;  %v1970_v11 = vrot.slane %v1969_v0, 4 }
 0x6a0   :  { %2573 = vmatpush1.bf16.msra.mxu1 %v5160_v10 }
 0x6a1   :  { %2574 = vmatprep.subr.bf16.mxu1 %v5161_v44  ;;  %v1971_v29 = vmin.f32 %v1969_v0, %v1970_v11  ;;  %v1952_v9 = vadd.f32 %v1951_v5, %v1950_v18  ;;  %v1963_v12 = vmax.f32 %v1961_v49, %v1962_v55 }
 0x6a3   :  { %v1972_v4 = vrot.slane %v1971_v29, 2  ;;  %v1953_v40 = vrot.slane %v1952_v9, 1  ;;  %v1964_v52 = vrot.slane %v1963_v12, 1 }
 0x6a4   :  { %2575 = vmatpush1.bf16.msra.mxu1 %v4625_v37 }
 0x6a5   :  { %2576 = vmatprep.subr.bf16.mxu1 %v4628_v23  ;;  %v1954_v6 = vadd.f32 %v1953_v40, %v1952_v9  ;;  %v1965_v50 = vmax.f32 %v1963_v12, %v1964_v52  ;;  %v1973_v30 = vmin.f32 %v1971_v29, %v1972_v4  ;;  %v2076_v9 = vrot.slane %v2075_v39, 1 }
 0x6a7   :  { %3053 = vpush %v1954_v6  ;;  %v1974_v7 = vrot.slane %v1973_v30, 1  ;;  %v2077_v58 = vadd.f32 %v2076_v9, %v2075_v39 }
 0x6a8   :  { %2577 = vmatpush1.bf16.msra.mxu1 %v4631_v36  ;;  %3055 = vpush %v1965_v50 }
 0x6a9   :  { %v1975_v27 = vmin.f32 %v1973_v30, %v1974_v7 }
 0x6ab   :  { %3057 = vpush %v1975_v27 }
 0x6b1   :  { %v1990_v38 = vpop.xlane.xlu0 %1989  ;;  %v1979_v33 = vpop.xlane.xlu1 %1978 }
 0x6b2   :  { %v1991_v53 = vrot.slane %v1990_v38, 4  ;;  %v1980_v41 = vrot.slane %v1979_v33, 4 }
 0x6b4   :  { %v1992_v31 = vmax.f32 %v1990_v38, %v1991_v53  ;;  %v1981_v37 = vadd.f32 %v1980_v41, %v1979_v33 }
 0x6b5   :  { %v2096_v23 = vpop.xlane.xlu0 %2095  ;;  %v2000_v60 = vpop.xlane.xlu1 %1999 }
 0x6b6   :  { %v1993_v59 = vrot.slane %v1992_v31, 2  ;;  %v1982_v42 = vrot.slane %v1981_v37, 2  ;;  %v2097_v51 = vrot.slane %v2096_v23, 4  ;;  %v2001_v14 = vrot.slane %v2000_v60, 4 }
 0x6b8   :  { %v2098_v21 = vmin.f32 %v2096_v23, %v2097_v51  ;;  %v2002_v36 = vmin.f32 %v2000_v60, %v2001_v14  ;;  %v1983_v26 = vadd.f32 %v1982_v42, %v1981_v37  ;;  %v1994_v34 = vmax.f32 %v1992_v31, %v1993_v59 }
 0x6b9   :  { %v2121_v1 = vpop.xlane.xlu0 %2120  ;;  %v2084_v19 = vpop.xlane.xlu1 %2083 }
 0x6ba   :  { %v2099_v15 = vrot.slane %v2098_v21, 2  ;;  %v2003_v48 = vrot.slane %v2002_v36, 2  ;;  %v2122_v16 = vrot.slane %v2121_v1, 4  ;;  %v2085_v49 = vrot.slane %v2084_v19, 4 }
 0x6bb   :  { %v1984_v18 = vrot.slane %v1983_v26, 1  ;;  %v1995_v0 = vrot.slane %v1994_v34, 1 }
 0x6bc   :  { %v2123_v55 = vmax.f32 %v2121_v1, %v2122_v16  ;;  %v2086_v5 = vmax.f32 %v2084_v19, %v2085_v49  ;;  %v2004_v11 = vmin.f32 %v2002_v36, %v2003_v48  ;;  %v2100_v12 = vmin.f32 %v2098_v21, %v2099_v15 }
 0x6bd   :  { %v2108_v10 = vpop.xlane.xlu1 %2107  ;;  %v1985_v44 = vadd.f32 %v1984_v18, %v1983_v26  ;;  %v1996_v29 = vmax.f32 %v1994_v34, %v1995_v0 }
 0x6be   :  { %v2124_v4 = vrot.slane %v2123_v55, 2  ;;  %v2087_v40 = vrot.slane %v2086_v5, 2  ;;  %v2109_v52 = vrot.slane %v2108_v10, 4  ;;  %v2005_v6 = vrot.slane %v2004_v11, 1 }
 0x6bf   :  { %3059 = vpush %v1985_v44  ;;  %v2101_v35 = vrot.slane %v2100_v12, 1 }
 0x6c0   :  { %v2110_v50 = vadd.f32 %v2109_v52, %v2108_v10  ;;  %3061 = vpush %v1996_v29  ;;  %v2006_v30 = vmin.f32 %v2004_v11, %v2005_v6  ;;  %v2088_v7 = vmax.f32 %v2086_v5, %v2087_v40  ;;  %v2125_v38 = vmax.f32 %v2123_v55, %v2124_v4 }
 0x6c1   :  { %v2133_v27 = vpop.xlane.xlu1 %2132  ;;  %v2102_v23 = vmin.f32 %v2100_v12, %v2101_v35 }
 0x6c2   :  { %v2111_v33 = vrot.slane %v2110_v50, 2  ;;  %v2134_v53 = vrot.slane %v2133_v27, 4  ;;  %3063 = vpush %v2006_v30  ;;  %v2089_v41 = vrot.slane %v2088_v7, 1  ;;  %v2126_v60 = vrot.slane %v2125_v38, 1 }
 0x6c3   :  { %3065 = vpush %v2077_v58 }
 0x6c4   :  { %v2135_v31 = vmin.f32 %v2133_v27, %v2134_v53  ;;  %v2090_v37 = vmax.f32 %v2088_v7, %v2089_v41  ;;  %v2112_v3 = vadd.f32 %v2111_v33, %v2110_v50  ;;  %v2127_v21 = vmax.f32 %v2125_v38, %v2126_v60 }
 0x6c6   :  { %v2136_v59 = vrot.slane %v2135_v31, 2  ;;  %3067 = vpush %v2090_v37  ;;  %v2113_v42 = vrot.slane %v2112_v3, 1 }
 0x6c7   :  { %3069 = vpush %v2102_v23 }
 0x6c8   :  { %v2114_v51 = vadd.f32 %v2113_v42, %v2112_v3  ;;  %v2137_v14 = vmin.f32 %v2135_v31, %v2136_v59 }
 0x6ca   :  { %3071 = vpush %v2114_v51  ;;  %v2138_v36 = vrot.slane %v2137_v14, 1 }
 0x6cb   :  { %3073 = vpush %v2127_v21 }
 0x6cc   :  { %v2139_v26 = vmin.f32 %v2137_v14, %v2138_v36 }
 0x6ce   :  { %3075 = vpush %v2139_v26 }
 0x6d8   :  { %s4886_s23 = spop %3053 }
 0x6d9   :  { %s4888_s24 = spop %3055  ;;  %s1956_s17 = smul.f32 0.00625, %s4886_s23 }
 0x6dc   :  { %s4890_s3 = spop %3057 }
 0x6dd   :  { %s2008_s13 = ssub.f32 %s4888_s24, %s4890_s3 }
 0x6df   :  { %s2009_s5 = smul.f32 0.2, %s2008_s13 }
 0x6e0   :  { %v2271_v34 = vpop.xlane.xlu1 %2270  ;;  %v2258_v1 = vpop.xlane.xlu0 %2257 }
 0x6e1   :  { %v2272_v19 = vrot.slane %v2271_v34, 4  ;;  %v2259_v39 = vrot.slane %v2258_v1, 4  ;;  %s2010_s19 = ssub.f32 %s1956_s17, %s2009_s5 }
 0x6e3   :  { %v2273_v15 = vmax.f32 %v2271_v34, %v2272_v19  ;;  %v2260_v48 = vadd.f32 %v2259_v39, %v2258_v1 }
 0x6e4   :  { %v2283_v16 = vpop.xlane.xlu0 %2282 }
 0x6e5   :  { %v2274_v49 = vrot.slane %v2273_v15, 2  ;;  %v2261_v18 = vrot.slane %v2260_v48, 2  ;;  %v2284_v0 = vrot.slane %v2283_v16, 4 }
 0x6e7   :  { %v2285_v55 = vmin.f32 %v2283_v16, %v2284_v0  ;;  %v2262_v5 = vadd.f32 %v2261_v18, %v2260_v48  ;;  %v2275_v11 = vmax.f32 %v2273_v15, %v2274_v49  ;;  %v2522_v0 = vsub.f32 %v4468_v45, %v4673_v28 }
 0x6e9   :  { %v2286_v10 = vrot.slane %v2285_v55, 2  ;;  %v2263_v44 = vrot.slane %v2262_v5, 1  ;;  %v2276_v29 = vrot.slane %v2275_v11, 1 }
 0x6eb   :  { %v2264_v9 = vadd.f32 %v2263_v44, %v2262_v5  ;;  %v2287_v12 = vmin.f32 %v2285_v55, %v2286_v10  ;;  %v2277_v4 = vmax.f32 %v2275_v11, %v2276_v29  ;;  %v2523_v55 = vsub.f32 %v4465_v20, %v4676_v47 }
 0x6ec   :  { %v2524_v5 = vmul.f32 0.33333334, %v2522_v0  ;;  %v2409_v0 = vsub.f32 1.0, %v4738_v46 }
 0x6ed   :  { %3077 = vpush %v2264_v9  ;;  %v2288_v40 = vrot.slane %v2287_v12, 1  ;;  %v2525_v11 = vmul.f32 0.33333334, %v2523_v55 }
 0x6ee   :  { %3079 = vpush %v2277_v4  ;;  %v2526_v10 = vmul.f32 1.442695, %v2524_v5 }
 0x6ef   :  { %v2289_v52 = vmin.f32 %v2287_v12, %v2288_v40  ;;  %v2528_v44 = vmul.f32 1.442695, %v2525_v11  ;;  %v2408_v11 = vmul.f32 0.75, %v4705_v8 }
 0x6f0   :  { %s3060_s25 = spop %3059 }
 0x6f1   :  { %3081 = vpush %v2289_v52  ;;  %s3062_s26 = spop %3061  ;;  %s1987_s30 = smul.f32 0.00625, %s3060_s25 }
 0x6f3   :  { %s3064_s28 = spop %3063 }
 0x6f4   :  { %s2011_s29 = ssub.f32 %s3062_s26, %s3064_s28  ;;  %s3066_s9 = spop %3065 }
 0x6f5   :  { %s2079_s15 = smul.f32 0.001953125, %s3066_s9 }
 0x6f6   :  { %s2012_s8 = smul.f32 0.2, %s2011_s29 }
 0x6f7   :  { %v2308_v6 = vpop.xlane.xlu0 %2307  ;;  %v2295_v50 = vpop.xlane.xlu1 %2294  ;;  %s3068_s10 = spop %3067 }
 0x6f8   :  { %v2309_v30 = vrot.slane %v2308_v6, 4  ;;  %v2296_v7 = vrot.slane %v2295_v50, 4  ;;  %s4892_s4 = ssub.f32 %s1987_s30, %s2012_s8  ;;  %s3070_s11 = spop %3069 }
 0x6f9   :  { %s2141_s12 = ssub.f32 %s3068_s10, %s3070_s11 }
 0x6fa   :  { %v2310_v27 = vmax.f32 %v2308_v6, %v2309_v30  ;;  %v2297_v58 = vadd.f32 %v2296_v7, %v2295_v50 }
 0x6fb   :  { %v2320_v35 = vpop.xlane.xlu1 %2319  ;;  %s2142_s1 = smul.f32 0.2, %s2141_s12  ;;  %s3072_s14 = spop %3071 }
 0x6fc   :  { %v2311_v38 = vrot.slane %v2310_v27, 2  ;;  %v2298_v33 = vrot.slane %v2297_v58, 2  ;;  %v2321_v53 = vrot.slane %v2320_v35, 4  ;;  %s3074_s16 = spop %3073  ;;  %s2116_s21 = smul.f32 0.001953125, %s3072_s14 }
 0x6fd   :  { %s2143_s27 = ssub.f32 %s2079_s15, %s2142_s1 }
 0x6fe   :  { %v2299_v41 = vadd.f32 %v2298_v33, %v2297_v58  ;;  %v2312_v31 = vmax.f32 %v2310_v27, %v2311_v38  ;;  %v2322_v37 = vmin.f32 %v2320_v35, %v2321_v53 }
 0x6ff   :  { %v2147_v3 = vstv %s2143_s27  ;;  %s3076_s18 = spop %3075 }
 0x700   :  { %v2300_v23 = vrot.slane %v2299_v41, 1  ;;  %v2313_v60 = vrot.slane %v2312_v31, 1  ;;  %v2148_v59 = vsub.f32 %v4468_v45, %v2147_v3  ;;  %v2149_v42 = vsub.f32 %v4465_v20, %v2147_v3  ;;  %s2144_s20 = ssub.f32 %s3074_s16, %s3076_s18 }
 0x701   :  { %v2323_v51 = vrot.slane %v2322_v37, 2  ;;  %v2014_v20 = vstv %s2010_s19 }
 0x702   :  { %v2301_v14 = vadd.f32 %v2300_v23, %v2299_v41  ;;  %v2314_v21 = vmax.f32 %v2312_v31, %v2313_v60  ;;  %v2150_v36 = vmul.f32 0.16666667, %v2148_v59  ;;  %v2151_v26 = vmul.f32 0.16666667, %v2149_v42  ;;  %s2145_s0 = smul.f32 0.2, %s2144_s20 }
 0x703   :  { %v2324_v34 = vmin.f32 %v2322_v37, %v2323_v51  ;;  %v4904_v4 = vsub.f32 %v4705_v8, %v2014_v20  ;;  %v2170_v35 = vmul.f32 0.01, %v2148_v59  ;;  %v2171_v53 = vmul.f32 0.01, %v2149_v42 }
 0x704   :  { %3083 = vpush %v2301_v14  ;;  %v2154_v1 = vand.u32 2147483647, %v2150_v36  ;;  %v2155_v19 = vand.u32 2147483647, %v2151_v26  ;;  %s2146_s2 = ssub.f32 %s2116_s21, %s2145_s0  ;;  %v2152_v27 = vmax.f32 %v2150_v36, 0.0  ;;  %v2153_v38 = vmax.f32 %v2151_v26, 0.0 }
 0x705   :  { %3085 = vpush %v2314_v21  ;;  %v2325_v39 = vrot.slane %v2324_v34, 1  ;;  %v4907_v6 = vmul.f32 0.16666667, %v4904_v4 }
 0x706   :  { %v2156_v15 = vsub.f32 0.0, %v2154_v1  ;;  %v2157_v48 = vsub.f32 0.0, %v2155_v19  ;;  %v2172_v30 = vstv %s2146_s2 }
 0x707   :  { %v2326_v16 = vmin.f32 %v2324_v34, %v2325_v39  ;;  %v2018_v41 = vand.u32 2147483647, %v4907_v6  ;;  %v2173_v37 = vadd.f32 %v2172_v30, %v2170_v35  ;;  %v2174_v60 = vadd.f32 %v2172_v30, %v2171_v53 }
 0x708   :  { %v2158_v49 = vmul.f32 1.442695, %v2156_v15  ;;  %v2160_v18 = vmul.f32 1.442695, %v2157_v48 }
 0x709   :  { %3087 = vpush %v2326_v16  ;;  %v2019_v34 = vsub.f32 0.0, %v2018_v41 }
 0x70a   :  { %3296 = vpow2.f32 %v2158_v49 }
 0x70b   :  { %3298 = vpow2.f32 %v2160_v18  ;;  %v2020_v26 = vmul.f32 1.442695, %v2019_v34 }
 0x70c   :  { %3300 = vpow2.f32 %v2526_v10 }
 0x70d   :  { %3302 = vpow2.f32 %v2528_v44  ;;  %v2410_v44 = vmul.f32 %v2409_v0, %v2408_v11 }
 0x714   :  { %v3297_v29 = vpop.eup %3296 }
 0x715   :  { %v3299_v9 = vpop.eup %3298  ;;  %v2162_v12 = vadd.f32 1.0, %v3297_v29 }
 0x716   :  { %v2163_v45 = vadd.f32 1.0, %v3299_v9  ;;  %v3301_v40 = vpop.eup %3300 }
 0x717   :  { %3304 = vlog2.f32 %v2162_v12  ;;  %v3303_v52 = vpop.eup %3302  ;;  %v2829_v3 = vadd.f32 -1.0, %v3301_v40 }
 0x718   :  { %3306 = vlog2.f32 %v2163_v45  ;;  %v2830_v51 = vadd.f32 -1.0, %v3303_v52  ;;  %v2017_v52 = vmax.f32 %v4907_v6, 0.0 }
 0x719   :  { %v2534_v19 = vmul.f32 0.5, %v2829_v3  ;;  %3308 = vpow2.f32 %v2020_v26 }
 0x71a   :  { %v2535_v36 = vmul.f32 0.5, %v2830_v51 }
 0x71e   :  { %s3078_s22 = spop %3077 }
 0x71f   :  { %s3080_s23 = spop %3079  ;;  %s2266_s26 = smul.f32 0.001953125, %s3078_s22 }
 0x721   :  { %v3305_v50 = vpop.eup %3304 }
 0x722   :  { %v3307_v7 = vpop.eup %3306  ;;  %v2165_v58 = vmul.f32 0.6931472, %v3305_v50  ;;  %v2027_v50 = vstv %s4892_s4  ;;  %s3082_s24 = spop %3081 }
 0x723   :  { %v2167_v33 = vmul.f32 0.6931472, %v3307_v7  ;;  %v3309_v42 = vpop.eup %3308  ;;  %v2026_v7 = vmul.f32 0.01, %v4904_v4  ;;  %s2328_s3 = ssub.f32 %s3080_s23, %s3082_s24 }
 0x724   :  { %v2168_v31 = vadd.f32 %v2165_v58, %v2152_v27  ;;  %v2022_v48 = vadd.f32 1.0, %v3309_v42 }
 0x725   :  { %v2169_v23 = vadd.f32 %v2167_v33, %v2153_v38  ;;  %v2028_v27 = vadd.f32 %v2027_v50, %v2026_v7  ;;  %s2329_s25 = smul.f32 0.2, %s2328_s3 }
 0x726   :  { %v2175_v14 = vadd.f32 %v2173_v37, %v2168_v31  ;;  %3310 = vlog2.f32 %v2022_v48 }
 0x727   :  { %v2176_v21 = vadd.f32 %v2174_v60, %v2169_v23  ;;  %s2330_s28 = ssub.f32 %s2266_s26, %s2329_s25 }
 0x728   :  { %v2532_v1 = vmul.f32 0.5, %v2175_v14 }
 0x729   :  { %v2533_v39 = vmul.f32 0.5, %v2176_v21 }
 0x72a   :  { %v2536_v15 = vadd.f32 %v2534_v19, %v2532_v1 }
 0x72b   :  { %v2537_v59 = vadd.f32 %v2535_v36, %v2533_v39 }
 0x72c   :  { %vm2538_vm0 = vcmp.gt.f32.partialorder %v4673_v28, %v2536_v15  ;;  %v2334_v15 = vstv %s2330_s28 }
 0x72d   :  { %vm2539_vm9 = vcmp.gt.f32.partialorder %v4676_v47, %v2537_v59  ;;  %vm2835_vm10 = vmpackc.low %vm2538_vm0, %vm2538_vm0  ;;  %v2406_v47 = vmul.f32 0.5, %v4702_v61  ;;  %v4952_v48 = vsub.f32 %v4787_v17, %v2334_v15  ;;  %v4955_v0 = vsub.f32 %v4790_v63, %v2334_v15 }
 0x72e   :  { %vm2833_vm11 = vmpackc.low %vm2539_vm9, %vm2539_vm9  ;;  %v2587_v15 = vmul.f32 0.5, %v4782_v13 }
 0x72f   :  { %2834 = vmatprep.mubr.msk.bf16.mxu1 %vm2833_vm11, %v5088_v2 }
 0x730   :  { %2836 = vmatmul.mubr.msk.bf16.vlgmr.msra.gmra.mrb[16].mxu1 %vm2835_vm10, %v5088_v2  ;;  %v3311_v12 = vpop.eup %3310 }
 0x731   :  { %v2024_v40 = vmul.f32 0.6931472, %v3311_v12 }
 0x733   :  { %v2025_v30 = vadd.f32 %v2024_v40, %v2017_v52 }
 0x735   :  { %s4973_s29 = spop %3083 }
 0x736   :  { %s3086_s30 = spop %3085  ;;  %s2303_s4 = smul.f32 0.001953125, %s4973_s29 }
 0x73a   :  { %s3088_s8 = spop %3087 }
 0x73b   :  { %s2331_s9 = ssub.f32 %s3086_s30, %s3088_s8 }
 0x73d   :  { %s2332_s10 = smul.f32 0.2, %s2331_s9 }
 0x73e   :  { %v2929_v16 = vpop.f32.mrb[12].mxu1 }
 0x73f   :  { %v2930_v49 = vpop.f32.mrb[13].mxu1  ;;  %s2333_s11 = ssub.f32 %s2303_s4, %s2332_s10 }
 0x740   :  { %v2931_v18 = vadd.f32 %v2930_v49, %v2929_v16  ;;  %v2932_v55 = vpop.f32.mrb[14].mxu1 }
 0x741   :  { %v2933_v5 = vpop.f32.mrb[15].mxu1 }
 0x742   :  { %v2401_v28 = vadd.f32 %v4697_v43, %v2931_v18  ;;  %v4958_v5 = vmul.f32 0.16666667, %v4952_v48 }
 0x744   :  { %v4918_v10 = vadd.f32 %v2406_v47, %v2401_v28  ;;  %v4961_v47 = vmul.f32 0.16666667, %v4955_v0  ;;  %v2341_v11 = vand.u32 2147483647, %v4958_v5 }
 0x746   :  { %v4921_v29 = vadd.f32 %v2410_v44, %v4918_v10  ;;  %v2342_v44 = vand.u32 2147483647, %v4961_v47 }
 0x748   :  { %v2434_v46 = vsel %vm4045_vm14, %v4921_v29, -inf  ;;  %v2423_v9 = vsel %vm4045_vm14, %v4921_v29, 0.0  ;;  %v2412_v43 = vsub.f32 %v4705_v8, %v4921_v29  ;;  %v2444_v45 = vsel %vm4045_vm14, %v4921_v29, inf }
 0x749   :  { %2435 = vmax.xlane.f32.xlu1 %v2434_v46  ;;  %2424 = vadd.xlane.f32.xlu0 %v2423_v9  ;;  %v2029_v8 = vadd.f32 %v2028_v27, %v2025_v30  ;;  %v2343_v46 = vsub.f32 0.0, %v2341_v11 }
 0x74a   :  { %v2413_v61 = vmul.f32 0.33333334, %v2412_v43 }
 0x74b   :  { %v2417_v38 = vmul.f32 0.5, %v2029_v8  ;;  %v2345_v52 = vmul.f32 1.442695, %v2343_v46 }
 0x74c   :  { %v2414_v20 = vmul.f32 1.442695, %v2413_v61  ;;  %v2344_v61 = vsub.f32 0.0, %v2342_v44 }
 0x74d   :  { %2445 = vmin.xlane.f32.xlu0 %v2444_v45 }
 0x74e   :  { %3312 = vpow2.f32 %v2414_v20  ;;  %v2347_v30 = vmul.f32 1.442695, %v2344_v61 }
 0x74f   :  { %3314 = vpow2.f32 %v2345_v52  ;;  %v2340_v52 = vmax.f32 %v4961_v47, 0.0 }
 0x750   :  { %3316 = vpow2.f32 %v2347_v30 }
 0x758   :  { %v3313_v58 = vpop.eup %3312 }
 0x759   :  { %v2827_v35 = vadd.f32 -1.0, %v3313_v58 }
 0x75b   :  { %v2418_v33 = vmul.f32 0.5, %v2827_v35 }
 0x75d   :  { %v2419_v53 = vadd.f32 %v2418_v33, %v2417_v38 }
 0x75f   :  { %v2465_v41 = vsel %vm4045_vm14, %v2419_v53, -inf  ;;  %v2454_v31 = vsel %vm4045_vm14, %v2419_v53, 0.0  ;;  %vm2420_vm12 = vcmp.gt.f32.partialorder %v4921_v29, %v2419_v53  ;;  %v2475_v37 = vsel %vm4045_vm14, %v2419_v53, inf }
 0x760   :  { %2466 = vmax.xlane.f32.xlu0 %v2465_v41  ;;  %2455 = vadd.xlane.f32.xlu1 %v2454_v31  ;;  %v4943_v6 = vsel %vm2420_vm12, 1.0, %v5108_v24 }
 0x761   :  { %v4947_v4 = vadd.f32 %v4943_v6, %v4741_v62 }
 0x764   :  { %2476 = vmin.xlane.f32.xlu1 %v2475_v37 }
 0x7d6   :  { %v2436_v3 = vpop.xlane.xlu1 %2435  ;;  %v2425_v23 = vpop.xlane.xlu0 %2424 }
 0x7d7   :  { %v2437_v60 = vrot.slane %v2436_v3, 4  ;;  %v2426_v51 = vrot.slane %v2425_v23, 4 }
 0x7d9   :  { %v2438_v14 = vmax.f32 %v2436_v3, %v2437_v60  ;;  %v2427_v21 = vadd.f32 %v2426_v51, %v2425_v23  ;;  %v3315_v51 = vpop.eup %3314 }
 0x7da   :  { %v2446_v34 = vpop.xlane.xlu0 %2445 }
 0x7db   :  { %v2439_v62 = vrot.slane %v2438_v14, 2  ;;  %v2428_v1 = vrot.slane %v2427_v21, 2  ;;  %v2447_v19 = vrot.slane %v2446_v34, 4 }
 0x7dd   :  { %v2448_v32 = vmin.f32 %v2446_v34, %v2447_v19  ;;  %v2429_v39 = vadd.f32 %v2428_v1, %v2427_v21  ;;  %v2440_v36 = vmax.f32 %v2438_v14, %v2439_v62  ;;  %v3317_v14 = vpop.eup %3316  ;;  %v2821_v21 = vsel %vm2248_vm6, 1.0, %v5108_v24 }
 0x7de   :  { %v2822_v34 = vsel %vm2249_vm5, 1.0, %v5108_v24  ;;  %v2349_v62 = vadd.f32 1.0, %v3315_v51  ;;  %v2350_v1 = vadd.f32 1.0, %v3317_v14  ;;  %v2593_v19 = vsub.f32 1.0, %v2821_v21 }
 0x7df   :  { %v2449_v59 = vrot.slane %v2448_v32, 2  ;;  %v2430_v26 = vrot.slane %v2429_v39, 1  ;;  %v2441_v42 = vrot.slane %v2440_v36, 1 }
 0x7e0   :  { %3318 = vlog2.f32 %v2349_v62 }
 0x7e1   :  { %v2431_v16 = vadd.f32 %v2430_v26, %v2429_v39  ;;  %v2442_v49 = vmax.f32 %v2440_v36, %v2441_v42  ;;  %v2450_v18 = vmin.f32 %v2448_v32, %v2449_v59  ;;  %v2594_v32 = vsub.f32 1.0, %v2822_v34 }
 0x7e2   :  { %3320 = vlog2.f32 %v2350_v1  ;;  %v2588_v26 = vmul.f32 0.5, %v4784_v57  ;;  %v2592_v42 = vmul.f32 0.75, %v4790_v63 }
 0x7e3   :  { %3089 = vpush %v2431_v16  ;;  %v2451_v55 = vrot.slane %v2450_v18, 1 }
 0x7e4   :  { %3091 = vpush %v2442_v49 }
 0x7e5   :  { %v2452_v28 = vmin.f32 %v2450_v18, %v2451_v55  ;;  %v2595_v18 = vmul.f32 %v2593_v19, %v2591_v54 }
 0x7e7   :  { %3093 = vpush %v2452_v28 }
 0x7ea   :  { %v3319_v57 = vpop.eup %3318 }
 0x7ec   :  { %v3321_v61 = vpop.eup %3320 }
 0x7ed   :  { %v2467_v9 = vpop.xlane.xlu0 %2466  ;;  %v2456_v43 = vpop.xlane.xlu1 %2455 }
 0x7ee   :  { %v2468_v12 = vrot.slane %v2467_v9, 4  ;;  %v2457_v45 = vrot.slane %v2456_v43, 4 }
 0x7f0   :  { %v2469_v20 = vmax.f32 %v2467_v9, %v2468_v12  ;;  %v2458_v40 = vadd.f32 %v2457_v45, %v2456_v43  ;;  %v2352_v45 = vmul.f32 0.6931472, %v3319_v57 }
 0x7f1   :  { %v2477_v50 = vpop.xlane.xlu1 %2476 }
 0x7f2   :  { %v2470_v7 = vrot.slane %v2469_v20, 2  ;;  %v2459_v27 = vrot.slane %v2458_v40, 2  ;;  %v2478_v8 = vrot.slane %v2477_v50, 4 }
 0x7f4   :  { %v2471_v58 = vmax.f32 %v2469_v20, %v2470_v7  ;;  %v2479_v35 = vmin.f32 %v2477_v50, %v2478_v8  ;;  %v2460_v38 = vadd.f32 %v2459_v27, %v2458_v40  ;;  %v2354_v20 = vmul.f32 0.6931472, %v3321_v61 }
 0x7f5   :  { %v2339_v40 = vmax.f32 %v4958_v5, 0.0  ;;  %v2358_v7 = vmul.f32 0.01, %v4955_v0 }
 0x7f6   :  { %v2480_v33 = vrot.slane %v2479_v35, 2  ;;  %v2461_v53 = vrot.slane %v2460_v38, 1  ;;  %v2472_v41 = vrot.slane %v2471_v58, 1  ;;  %v2356_v30 = vadd.f32 %v2354_v20, %v2340_v52 }
 0x7f7   :  { %v2355_v50 = vadd.f32 %v2352_v45, %v2339_v40 }
 0x7f8   :  { %v2481_v31 = vmin.f32 %v2479_v35, %v2480_v33  ;;  %v2462_v37 = vadd.f32 %v2461_v53, %v2460_v38  ;;  %v2473_v3 = vmax.f32 %v2471_v58, %v2472_v41 }
 0x7fa   :  { %3095 = vpush %v2462_v37  ;;  %v2482_v23 = vrot.slane %v2481_v31, 1 }
 0x7fb   :  { %3097 = vpush %v2473_v3 }
 0x7fc   :  { %v2483_v60 = vmin.f32 %v2481_v31, %v2482_v23 }
 0x7fe   :  { %3099 = vpush %v2483_v60 }
 0x803   :  { %v2580_v39 = vpop.f32.mrb[16].mxu1 }
 0x804   :  { %v2581_v36 = vadd.f32 %v2580_v39, %v5109_v25  ;;  %v2582_v59 = vpop.f32.mrb[17].mxu1  ;;  %v2596_v25 = vmul.f32 %v2594_v32, %v2592_v42  ;;  %v2666_v32 = vsub.f32 1.0, %v4943_v6 }
 0x805   :  { %v2583_v22 = vadd.f32 %v2582_v59, %v5110_v56  ;;  %v2584_v16 = vpop.f32.mrb[18].mxu1  ;;  %v2663_v59 = vmul.f32 0.5, %v4918_v10 }
 0x806   :  { %v2589_v49 = vadd.f32 %v2587_v15, %v2581_v36  ;;  %v2585_v55 = vpop.f32.mrb[19].mxu1  ;;  %v3414_v15 = vld [vmem:[%s5009_s6] ss:$0 sm:$0xff] }
 0x807   :  { %v2590_v28 = vadd.f32 %v2588_v26, %v2583_v22  ;;  %v2665_v22 = vmul.f32 0.75, %v4921_v29 }
 0x808   :  { %v2597_v13 = vadd.f32 %v2595_v18, %v2589_v49 }
 0x809   :  { %v2598_v11 = vadd.f32 %v2596_v25, %v2590_v28  ;;  %v2667_v42 = vmul.f32 %v2666_v32, %v2665_v22 }
 0x80a   :  { %v2599_v44 = vsub.f32 %v4787_v17, %v2597_v13  ;;  %v2359_v17 = vstv %s2333_s11 }
 0x80b   :  { %v2600_v46 = vsub.f32 %v4790_v63, %v2598_v11  ;;  %v2357_v63 = vmul.f32 0.01, %v4952_v48  ;;  %v2361_v8 = vadd.f32 %v2359_v17, %v2358_v7 }
 0x80c   :  { %v2601_v56 = vmul.f32 0.33333334, %v2599_v44 }
 0x80d   :  { %v2602_v9 = vmul.f32 0.33333334, %v2600_v46  ;;  %v2360_v27 = vadd.f32 %v2359_v17, %v2357_v63  ;;  %v2363_v38 = vadd.f32 %v2361_v8, %v2356_v30 }
 0x80e   :  { %v2603_v43 = vmul.f32 1.442695, %v2601_v56 }
 0x80f   :  { %v2605_v12 = vmul.f32 1.442695, %v2602_v9  ;;  %v2362_v58 = vadd.f32 %v2360_v27, %v2355_v50  ;;  %v2610_v5 = vmul.f32 0.5, %v2363_v38 }
 0x810   :  { %3322 = vpow2.f32 %v2603_v43 }
 0x811   :  { %3324 = vpow2.f32 %v2605_v12  ;;  %v2609_v31 = vmul.f32 0.5, %v2362_v58 }
 0x814   :  { %s3090_s12 = spop %3089 }
 0x815   :  { %s3092_s15 = spop %3091  ;;  %s2433_s14 = smul.f32 0.00625, %s3090_s12 }
 0x818   :  { %s3094_s1 = spop %3093 }
 0x819   :  { %s2485_s27 = ssub.f32 %s3092_s15, %s3094_s1 }
 0x81a   :  { %v3323_v35 = vpop.eup %3322 }
 0x81b   :  { %v3325_v33 = vpop.eup %3324  ;;  %v2837_v53 = vadd.f32 -1.0, %v3323_v35  ;;  %s2486_s13 = smul.f32 0.2, %s2485_s27 }
 0x81c   :  { %v2838_v41 = vadd.f32 -1.0, %v3325_v33 }
 0x81d   :  { %v2611_v37 = vmul.f32 0.5, %v2837_v53  ;;  %s2487_s5 = ssub.f32 %s2433_s14, %s2486_s13 }
 0x81e   :  { %v2612_v3 = vmul.f32 0.5, %v2838_v41 }
 0x81f   :  { %v2613_v47 = vadd.f32 %v2611_v37, %v2609_v31  ;;  %v2491_v48 = vstv %s2487_s5 }
 0x820   :  { %v2614_v23 = vadd.f32 %v2612_v3, %v2610_v5  ;;  %v2492_v0 = vsub.f32 %v4921_v29, %v2491_v48 }
 0x821   :  { %vm2615_vm14 = vcmp.gt.f32.partialorder %v2597_v13, %v2613_v47 }
 0x822   :  { %vm2616_vm13 = vcmp.gt.f32.partialorder %v2598_v11, %v2614_v23  ;;  %vm2843_vm1 = vmpackc.low %vm2615_vm14, %vm2615_vm14  ;;  %v2493_v60 = vmul.f32 0.16666667, %v2492_v0  ;;  %v2503_v11 = vmul.f32 0.01, %v2492_v0 }
 0x823   :  { %vm2841_vm15 = vmpackc.low %vm2616_vm13, %vm2616_vm13 }
 0x824   :  { %2842 = vmatprep.mubr.msk.bf16.mxu0 %vm2841_vm15, %v5088_v2  ;;  %v2495_v51 = vand.u32 2147483647, %v2493_v60  ;;  %v2494_v25 = vmax.f32 %v2493_v60, 0.0 }
 0x825   :  { %2844 = vmatmul.mubr.msk.bf16.vlgmr.msra.gmra.mrb[28].mxu0 %vm2843_vm1, %v5088_v2 }
 0x826   :  { %v2496_v14 = vsub.f32 0.0, %v2495_v51 }
 0x828   :  { %v2497_v21 = vmul.f32 1.442695, %v2496_v14 }
 0x82a   :  { %3326 = vpow2.f32 %v2497_v21 }
 0x82b   :  { %s3096_s16 = spop %3095 }
 0x82c   :  { %s3098_s17 = spop %3097  ;;  %s2464_s2 = smul.f32 0.00625, %s3096_s16 }
 0x82f   :  { %s3100_s20 = spop %3099 }
 0x830   :  { %s2488_s0 = ssub.f32 %s3098_s17, %s3100_s20 }
 0x832   :  { %s2489_s21 = smul.f32 0.2, %s2488_s0 }
 0x834   :  { %v3327_v34 = vpop.eup %3326  ;;  %s2490_s22 = ssub.f32 %s2464_s2, %s2489_s21 }
 0x835   :  { %v2499_v62 = vadd.f32 1.0, %v3327_v34 }
 0x836   :  { %v2504_v13 = vstv %s2490_s22 }
 0x837   :  { %3328 = vlog2.f32 %v2499_v62  ;;  %v2505_v44 = vadd.f32 %v2504_v13, %v2503_v11 }
 0x841   :  { %v3329_v18 = vpop.eup %3328 }
 0x842   :  { %v2501_v28 = vmul.f32 0.6931472, %v3329_v18 }
 0x844   :  { %v2502_v10 = vadd.f32 %v2501_v28, %v2494_v25 }
 0x846   :  { %v2506_v46 = vadd.f32 %v2505_v44, %v2502_v10 }
 0x848   :  { %v2674_v57 = vmul.f32 0.5, %v2506_v46 }
 0x8f8   :  { %v2951_v1 = vpop.f32.mrb[28].mxu0 }
 0x8f9   :  { %v2952_v19 = vpop.f32.mrb[29].mxu0 }
 0x8fa   :  { %v2953_v2 = vadd.f32 %v2952_v19, %v2951_v1  ;;  %v2954_v39 = vpop.f32.mrb[30].mxu0 }
 0x8fb   :  { %v2955_v36 = vpop.f32.mrb[31].mxu0 }
 0x8fc   :  { %v2658_v54 = vadd.f32 %v3414_v15, %v2953_v2 }
 0x8fe   :  { %v2664_v26 = vadd.f32 %v2663_v59, %v2658_v54 }
 0x900   :  { %v2668_v16 = vadd.f32 %v2667_v42, %v2664_v26 }
 0x902   :  { %v2669_v6 = vsub.f32 %v4921_v29, %v2668_v16 }
 0x904   :  { %v2670_v49 = vmul.f32 0.33333334, %v2669_v6 }
 0x906   :  { %v2671_v55 = vmul.f32 1.442695, %v2670_v49 }
 0x908   :  { %3330 = vpow2.f32 %v2671_v55 }
 0x912   :  { %v3331_v56 = vpop.eup %3330 }
 0x913   :  { %v2845_v9 = vadd.f32 -1.0, %v3331_v56 }
 0x915   :  { %v2675_v43 = vmul.f32 0.5, %v2845_v9 }
 0x917   :  { %v2676_v61 = vadd.f32 %v2675_v43, %v2674_v57 }
 0x919   :  { %vm2677_vm2 = vcmp.gt.f32.partialorder %v2668_v16, %v2676_v61 }
 0x91a   :  { %v2846_v29 = vsel %vm2677_vm2, 1.0, %v5108_v24 }
 0x91b   :  { %v2680_v12 = vadd.f32 %v2846_v29, %v4947_v4 }
 0x91d   :  { %v2681_v45 = vmul.f32 0.2, %v2680_v12 }
 0x91f   :  { %2682 = vst [vmem:[%s5010_s7] sm:$0xff] %v2681_v45 }
 0x920   :  { %2687 = vsyncpa [#allocation4], 1 }
 0x921   :  { %2688 = vsyncpa [#allocation6], 1 }

</bundles_post_ra>
